<compile_context>
chip_gen: v7x
topology: tpu7x:2x2x1
jax: 0.10.0
libtpu: 0.0.40
codegen_flags: <defaults>
</compile_context>

<pallas_src>
import jax
import jax.numpy as jnp
from jax import lax
from jax.experimental import pallas as pl
from jax.experimental.pallas import tpu as pltpu

K = 7   # conv kernel size
P = 3   # padding


def spatial_attention_kernel(x_ref, w_ref, b_ref, o_ref):
    # x_ref: (NB, C, H, W)  VMEM  -- NB batch elements per grid step
    # w_ref: (2*K*K,)       SMEM  -- conv weight, flat, row-major (c, ky, kx)
    # b_ref: (1,)           SMEM  -- conv bias
    # o_ref: (NB, 1, H, W)  VMEM
    NB, C, H, W = x_ref.shape
    Wp = W + 2 * P                     # per-element padded lane width
    Lacc = NB * Wp - 2 * P             # accumulator lane extent

    zcol = jnp.zeros((H, P), jnp.float32)

    # ---- channel reduction (mean + max over C), streamed ----
    avg_segs = []
    max_segs = []
    for b in range(NB):
        x0 = x_ref[b, 0].astype(jnp.float32)            # (H, W)
        if C <= 16:
            ssum, smax = x0, x0
            for ci in range(1, C):                       # unrolled, tiny state
                xc = x_ref[b, ci].astype(jnp.float32)
                ssum = ssum + xc
                smax = jnp.maximum(smax, xc)
        else:
            xb = x_ref.at[b]                             # (C, H, W) Ref view

            def body(ci, carry):
                s, m = carry
                xc = xb[ci].astype(jnp.float32)
                return s + xc, jnp.maximum(m, xc)

            ssum, smax = lax.fori_loop(1, C, body, (x0, x0))
        avg_segs += [zcol, ssum * (1.0 / C), zcol]
        max_segs += [zcol, smax, zcol]

    # Lane-concatenated, zero-haloed planes: (H+2P, NB*Wp), one per conv
    # input channel (avg, max).  Each batch element owns a Wp-wide lane
    # segment with its own P-wide zero border.
    zrow = jnp.zeros((P, NB * Wp), jnp.float32)
    avg_plane = jnp.concatenate(
        [zrow, jnp.concatenate(avg_segs, axis=1), zrow], axis=0)
    max_plane = jnp.concatenate(
        [zrow, jnp.concatenate(max_segs, axis=1), zrow], axis=0)
    planes = (avg_plane, max_plane)

    # ---- 7x7 conv: kx (lane) shift hoisted, weights read as SMEM scalars ----
    acc = jnp.full((H, Lacc), b_ref[0], jnp.float32)     # bias folded into init
    for c in range(2):
        plane = planes[c]
        for kx in range(K):
            shifted = plane[:, kx:kx + Lacc]             # 14 lane shifts total
            for ky in range(K):
                w_tap = w_ref[c * K * K + ky * K + kx]   # scalar from SMEM
                acc = acc + w_tap * shifted[ky:ky + H, :]

    out = jax.nn.sigmoid(acc)                            # EUP transcendental
    for b in range(NB):
        o_ref[b, 0] = out[:, b * Wp:b * Wp + W].astype(o_ref.dtype)


def spatial_attention(x, w, b, *, nb=2):
    """x: (N, C, H, W), w: (2, 7, 7), b: (1,). Returns (N, 1, H, W)."""
    N, C, H, W = x.shape
    if N % nb != 0:
        nb = 1                                           # keep grid exact
    w_flat = w.astype(jnp.float32).reshape(-1)           # (2*K*K,)
    b = b.astype(jnp.float32)

    block_bytes = nb * C * H * W * x.dtype.itemsize
    vmem_limit = int(min(64 * 1024 * 1024,               # valid on v7x too
                         max(32 * 1024 * 1024, 4 * block_bytes + (4 << 20))))

    grid_spec = pltpu.PrefetchScalarGridSpec(
        num_scalar_prefetch=0,
        grid=(N // nb,),
        in_specs=[
            pl.BlockSpec((nb, C, H, W), lambda n: (n, 0, 0, 0)),
            pl.BlockSpec(memory_space=pltpu.MemorySpace.SMEM),   # weights
            pl.BlockSpec(memory_space=pltpu.MemorySpace.SMEM),   # bias
        ],
        out_specs=pl.BlockSpec((nb, 1, H, W), lambda n: (n, 0, 0, 0)),
    )
    return pl.pallas_call(
        spatial_attention_kernel,
        out_shape=jax.ShapeDtypeStruct((N, 1, H, W), x.dtype),
        grid_spec=grid_spec,
        compiler_params=pltpu.CompilerParams(
            dimension_semantics=("parallel",),
            vmem_limit_bytes=vmem_limit),
    )(x, w_flat, b)


def reference(x, w, b):
    """Pure-JAX reference matching the PyTorch forward."""
    avg = jnp.mean(x, axis=1, keepdims=True)
    mx = jnp.max(x, axis=1, keepdims=True)
    out = jnp.concatenate([avg, mx], axis=1)                      # (N, 2, H, W)
    out = jax.lax.conv_general_dilated(
        out, w[None],                                             # (1, 2, 7, 7)
        window_strides=(1, 1), padding=((P, P), (P, P)),
        dimension_numbers=("NCHW", "OIHW", "NCHW"),
    ) + b[None, :, None, None]
    return jax.nn.sigmoid(out)


if __name__ == "__main__":
    key = jax.random.PRNGKey(0)
    kx, kw, kb = jax.random.split(key, 3)

    N, C, H, W = 2, 4, 16, 16
    x = jax.random.normal(kx, (N, C, H, W), dtype=jnp.float32)

    # Deterministic synthetic parameters (Conv2d(2, 1, 7, padding=3)).
    w = jax.random.normal(kw, (2, K, K), dtype=jnp.float32) * 0.1
    b = jax.random.normal(kb, (1,), dtype=jnp.float32) * 0.1

    out = spatial_attention(x, w, b)
    out = jax.block_until_ready(out)

    ref = reference(x, w, b)
    assert out.shape == (N, 1, H, W)
    assert jnp.allclose(out, ref, atol=1e-5, rtol=1e-5), "mismatch vs reference"

    print("KERNEL_OK")
</pallas_src>

<mosaic_0001>
module attributes {stable_mosaic.version = 11 : i64} {
  func.func @spatial_attention_kernel(%arg0: i32, %arg1: memref<2x4x16x16xf32, #tpu.memory_space<vmem>>, %arg2: memref<98xf32, #tpu.memory_space<smem>>, %arg3: memref<1xf32, #tpu.memory_space<smem>>, %arg4: memref<2x1x16x16xf32, #tpu.memory_space<vmem>>) attributes {dimension_semantics = [#tpu.dimension_semantics<parallel>], iteration_bounds = array<i64: 1>, scalar_prefetch = 0 : i64, scratch_operands = 0 : i64, tpu.core_type = #tpu.core_type<tc>, window_params = [{transform_indices = @transform_0, window_bounds = array<i64: 2, 4, 16, 16>}, {transform_indices = @transform_1, window_bounds = array<i64: 98>}, {transform_indices = @transform_2, window_bounds = array<i64: 1>}, {transform_indices = @transform_3, window_bounds = array<i64: 2, 1, 16, 16>}]} {
    %cst = arith.constant 0.000000e+00 : f32
    %0 = vector.broadcast %cst : f32 to vector<16x3xf32>
    %c0 = arith.constant 0 : index
    %c0_0 = arith.constant 0 : index
    %c0_1 = arith.constant 0 : index
    %c0_2 = arith.constant 0 : index
    %1 = vector.load %arg1[%c0, %c0_0, %c0_1, %c0_2] : memref<2x4x16x16xf32, #tpu.memory_space<vmem>>, vector<1x1x16x16xf32>
    %2 = vector.shape_cast %1 : vector<1x1x16x16xf32> to vector<16x16xf32>
    %c0_3 = arith.constant 0 : index
    %c1 = arith.constant 1 : index
    %c0_4 = arith.constant 0 : index
    %c0_5 = arith.constant 0 : index
    %3 = vector.load %arg1[%c0_3, %c1, %c0_4, %c0_5] : memref<2x4x16x16xf32, #tpu.memory_space<vmem>>, vector<1x1x16x16xf32>
    %4 = vector.shape_cast %3 : vector<1x1x16x16xf32> to vector<16x16xf32>
    %5 = arith.addf %2, %4 : vector<16x16xf32>
    %6 = arith.maximumf %2, %4 : vector<16x16xf32>
    %c0_6 = arith.constant 0 : index
    %c2 = arith.constant 2 : index
    %c0_7 = arith.constant 0 : index
    %c0_8 = arith.constant 0 : index
    %7 = vector.load %arg1[%c0_6, %c2, %c0_7, %c0_8] : memref<2x4x16x16xf32, #tpu.memory_space<vmem>>, vector<1x1x16x16xf32>
    %8 = vector.shape_cast %7 : vector<1x1x16x16xf32> to vector<16x16xf32>
    %9 = arith.addf %5, %8 : vector<16x16xf32>
    %10 = arith.maximumf %6, %8 : vector<16x16xf32>
    %c0_9 = arith.constant 0 : index
    %c3 = arith.constant 3 : index
    %c0_10 = arith.constant 0 : index
    %c0_11 = arith.constant 0 : index
    %11 = vector.load %arg1[%c0_9, %c3, %c0_10, %c0_11] : memref<2x4x16x16xf32, #tpu.memory_space<vmem>>, vector<1x1x16x16xf32>
    %12 = vector.shape_cast %11 : vector<1x1x16x16xf32> to vector<16x16xf32>
    %13 = arith.addf %9, %12 : vector<16x16xf32>
    %14 = arith.maximumf %10, %12 : vector<16x16xf32>
    %cst_12 = arith.constant 2.500000e-01 : f32
    %15 = vector.broadcast %cst_12 : f32 to vector<16x16xf32>
    %16 = arith.mulf %13, %15 : vector<16x16xf32>
    %c1_13 = arith.constant 1 : index
    %c0_14 = arith.constant 0 : index
    %c0_15 = arith.constant 0 : index
    %c0_16 = arith.constant 0 : index
    %17 = vector.load %arg1[%c1_13, %c0_14, %c0_15, %c0_16] : memref<2x4x16x16xf32, #tpu.memory_space<vmem>>, vector<1x1x16x16xf32>
    %18 = vector.shape_cast %17 : vector<1x1x16x16xf32> to vector<16x16xf32>
    %c1_17 = arith.constant 1 : index
    %c1_18 = arith.constant 1 : index
    %c0_19 = arith.constant 0 : index
    %c0_20 = arith.constant 0 : index
    %19 = vector.load %arg1[%c1_17, %c1_18, %c0_19, %c0_20] : memref<2x4x16x16xf32, #tpu.memory_space<vmem>>, vector<1x1x16x16xf32>
    %20 = vector.shape_cast %19 : vector<1x1x16x16xf32> to vector<16x16xf32>
    %21 = arith.addf %18, %20 : vector<16x16xf32>
    %22 = arith.maximumf %18, %20 : vector<16x16xf32>
    %c1_21 = arith.constant 1 : index
    %c2_22 = arith.constant 2 : index
    %c0_23 = arith.constant 0 : index
    %c0_24 = arith.constant 0 : index
    %23 = vector.load %arg1[%c1_21, %c2_22, %c0_23, %c0_24] : memref<2x4x16x16xf32, #tpu.memory_space<vmem>>, vector<1x1x16x16xf32>
    %24 = vector.shape_cast %23 : vector<1x1x16x16xf32> to vector<16x16xf32>
    %25 = arith.addf %21, %24 : vector<16x16xf32>
    %26 = arith.maximumf %22, %24 : vector<16x16xf32>
    %c1_25 = arith.constant 1 : index
    %c3_26 = arith.constant 3 : index
    %c0_27 = arith.constant 0 : index
    %c0_28 = arith.constant 0 : index
    %27 = vector.load %arg1[%c1_25, %c3_26, %c0_27, %c0_28] : memref<2x4x16x16xf32, #tpu.memory_space<vmem>>, vector<1x1x16x16xf32>
    %28 = vector.shape_cast %27 : vector<1x1x16x16xf32> to vector<16x16xf32>
    %29 = arith.addf %25, %28 : vector<16x16xf32>
    %30 = arith.maximumf %26, %28 : vector<16x16xf32>
    %cst_29 = arith.constant 2.500000e-01 : f32
    %31 = vector.broadcast %cst_29 : f32 to vector<16x16xf32>
    %32 = arith.mulf %29, %31 : vector<16x16xf32>
    %cst_30 = arith.constant 0.000000e+00 : f32
    %33 = vector.broadcast %cst_30 : f32 to vector<3x44xf32>
    %34 = tpu.concatenate %0, %16, %0, %0, %32, %0 in 1 : vector<16x3xf32>, vector<16x16xf32>, vector<16x3xf32>, vector<16x3xf32>, vector<16x16xf32>, vector<16x3xf32> -> vector<16x44xf32>
    %35 = tpu.concatenate %33, %34, %33 in 0 : vector<3x44xf32>, vector<16x44xf32>, vector<3x44xf32> -> vector<22x44xf32>
    %36 = tpu.concatenate %0, %14, %0, %0, %30, %0 in 1 : vector<16x3xf32>, vector<16x16xf32>, vector<16x3xf32>, vector<16x3xf32>, vector<16x16xf32>, vector<16x3xf32> -> vector<16x44xf32>
    %37 = tpu.concatenate %33, %36, %33 in 0 : vector<3x44xf32>, vector<16x44xf32>, vector<3x44xf32> -> vector<22x44xf32>
    %c0_31 = arith.constant 0 : index
    %38 = memref.load %arg3[%c0_31] : memref<1xf32, #tpu.memory_space<smem>>
    %39 = vector.broadcast %38 : f32 to vector<16x38xf32>
    %40 = vector.extract_strided_slice %35 {offsets = [0, 0], sizes = [22, 38], strides = [1, 1]} : vector<22x44xf32> to vector<22x38xf32>
    %c0_32 = arith.constant 0 : index
    %41 = memref.load %arg2[%c0_32] : memref<98xf32, #tpu.memory_space<smem>>
    %42 = vector.extract_strided_slice %40 {offsets = [0, 0], sizes = [16, 38], strides = [1, 1]} : vector<22x38xf32> to vector<16x38xf32>
    %43 = vector.broadcast %41 : f32 to vector<16x38xf32>
    %44 = arith.mulf %43, %42 : vector<16x38xf32>
    %45 = arith.addf %39, %44 : vector<16x38xf32>
    %c7 = arith.constant 7 : index
    %46 = memref.load %arg2[%c7] : memref<98xf32, #tpu.memory_space<smem>>
    %47 = vector.extract_strided_slice %40 {offsets = [1, 0], sizes = [16, 38], strides = [1, 1]} : vector<22x38xf32> to vector<16x38xf32>
    %48 = vector.broadcast %46 : f32 to vector<16x38xf32>
    %49 = arith.mulf %48, %47 : vector<16x38xf32>
    %50 = arith.addf %45, %49 : vector<16x38xf32>
    %c14 = arith.constant 14 : index
    %51 = memref.load %arg2[%c14] : memref<98xf32, #tpu.memory_space<smem>>
    %52 = vector.extract_strided_slice %40 {offsets = [2, 0], sizes = [16, 38], strides = [1, 1]} : vector<22x38xf32> to vector<16x38xf32>
    %53 = vector.broadcast %51 : f32 to vector<16x38xf32>
    %54 = arith.mulf %53, %52 : vector<16x38xf32>
    %55 = arith.addf %50, %54 : vector<16x38xf32>
    %c21 = arith.constant 21 : index
    %56 = memref.load %arg2[%c21] : memref<98xf32, #tpu.memory_space<smem>>
    %57 = vector.extract_strided_slice %40 {offsets = [3, 0], sizes = [16, 38], strides = [1, 1]} : vector<22x38xf32> to vector<16x38xf32>
    %58 = vector.broadcast %56 : f32 to vector<16x38xf32>
    %59 = arith.mulf %58, %57 : vector<16x38xf32>
    %60 = arith.addf %55, %59 : vector<16x38xf32>
    %c28 = arith.constant 28 : index
    %61 = memref.load %arg2[%c28] : memref<98xf32, #tpu.memory_space<smem>>
    %62 = vector.extract_strided_slice %40 {offsets = [4, 0], sizes = [16, 38], strides = [1, 1]} : vector<22x38xf32> to vector<16x38xf32>
    %63 = vector.broadcast %61 : f32 to vector<16x38xf32>
    %64 = arith.mulf %63, %62 : vector<16x38xf32>
    %65 = arith.addf %60, %64 : vector<16x38xf32>
    %c35 = arith.constant 35 : index
    %66 = memref.load %arg2[%c35] : memref<98xf32, #tpu.memory_space<smem>>
    %67 = vector.extract_strided_slice %40 {offsets = [5, 0], sizes = [16, 38], strides = [1, 1]} : vector<22x38xf32> to vector<16x38xf32>
    %68 = vector.broadcast %66 : f32 to vector<16x38xf32>
    %69 = arith.mulf %68, %67 : vector<16x38xf32>
    %70 = arith.addf %65, %69 : vector<16x38xf32>
    %c42 = arith.constant 42 : index
    %71 = memref.load %arg2[%c42] : memref<98xf32, #tpu.memory_space<smem>>
    %72 = vector.extract_strided_slice %40 {offsets = [6, 0], sizes = [16, 38], strides = [1, 1]} : vector<22x38xf32> to vector<16x38xf32>
    %73 = vector.broadcast %71 : f32 to vector<16x38xf32>
    %74 = arith.mulf %73, %72 : vector<16x38xf32>
    %75 = arith.addf %70, %74 : vector<16x38xf32>
    %76 = vector.extract_strided_slice %35 {offsets = [0, 1], sizes = [22, 38], strides = [1, 1]} : vector<22x44xf32> to vector<22x38xf32>
    %c1_33 = arith.constant 1 : index
    %77 = memref.load %arg2[%c1_33] : memref<98xf32, #tpu.memory_space<smem>>
    %78 = vector.extract_strided_slice %76 {offsets = [0, 0], sizes = [16, 38], strides = [1, 1]} : vector<22x38xf32> to vector<16x38xf32>
    %79 = vector.broadcast %77 : f32 to vector<16x38xf32>
    %80 = arith.mulf %79, %78 : vector<16x38xf32>
    %81 = arith.addf %75, %80 : vector<16x38xf32>
    %c8 = arith.constant 8 : index
    %82 = memref.load %arg2[%c8] : memref<98xf32, #tpu.memory_space<smem>>
    %83 = vector.extract_strided_slice %76 {offsets = [1, 0], sizes = [16, 38], strides = [1, 1]} : vector<22x38xf32> to vector<16x38xf32>
    %84 = vector.broadcast %82 : f32 to vector<16x38xf32>
    %85 = arith.mulf %84, %83 : vector<16x38xf32>
    %86 = arith.addf %81, %85 : vector<16x38xf32>
    %c15 = arith.constant 15 : index
    %87 = memref.load %arg2[%c15] : memref<98xf32, #tpu.memory_space<smem>>
    %88 = vector.extract_strided_slice %76 {offsets = [2, 0], sizes = [16, 38], strides = [1, 1]} : vector<22x38xf32> to vector<16x38xf32>
    %89 = vector.broadcast %87 : f32 to vector<16x38xf32>
    %90 = arith.mulf %89, %88 : vector<16x38xf32>
    %91 = arith.addf %86, %90 : vector<16x38xf32>
    %c22 = arith.constant 22 : index
    %92 = memref.load %arg2[%c22] : memref<98xf32, #tpu.memory_space<smem>>
    %93 = vector.extract_strided_slice %76 {offsets = [3, 0], sizes = [16, 38], strides = [1, 1]} : vector<22x38xf32> to vector<16x38xf32>
    %94 = vector.broadcast %92 : f32 to vector<16x38xf32>
    %95 = arith.mulf %94, %93 : vector<16x38xf32>
    %96 = arith.addf %91, %95 : vector<16x38xf32>
    %c29 = arith.constant 29 : index
    %97 = memref.load %arg2[%c29] : memref<98xf32, #tpu.memory_space<smem>>
    %98 = vector.extract_strided_slice %76 {offsets = [4, 0], sizes = [16, 38], strides = [1, 1]} : vector<22x38xf32> to vector<16x38xf32>
    %99 = vector.broadcast %97 : f32 to vector<16x38xf32>
    %100 = arith.mulf %99, %98 : vector<16x38xf32>
    %101 = arith.addf %96, %100 : vector<16x38xf32>
    %c36 = arith.constant 36 : index
    %102 = memref.load %arg2[%c36] : memref<98xf32, #tpu.memory_space<smem>>
    %103 = vector.extract_strided_slice %76 {offsets = [5, 0], sizes = [16, 38], strides = [1, 1]} : vector<22x38xf32> to vector<16x38xf32>
    %104 = vector.broadcast %102 : f32 to vector<16x38xf32>
    %105 = arith.mulf %104, %103 : vector<16x38xf32>
    %106 = arith.addf %101, %105 : vector<16x38xf32>
    %c43 = arith.constant 43 : index
    %107 = memref.load %arg2[%c43] : memref<98xf32, #tpu.memory_space<smem>>
    %108 = vector.extract_strided_slice %76 {offsets = [6, 0], sizes = [16, 38], strides = [1, 1]} : vector<22x38xf32> to vector<16x38xf32>
    %109 = vector.broadcast %107 : f32 to vector<16x38xf32>
    %110 = arith.mulf %109, %108 : vector<16x38xf32>
    %111 = arith.addf %106, %110 : vector<16x38xf32>
    %112 = vector.extract_strided_slice %35 {offsets = [0, 2], sizes = [22, 38], strides = [1, 1]} : vector<22x44xf32> to vector<22x38xf32>
    %c2_34 = arith.constant 2 : index
    %113 = memref.load %arg2[%c2_34] : memref<98xf32, #tpu.memory_space<smem>>
    %114 = vector.extract_strided_slice %112 {offsets = [0, 0], sizes = [16, 38], strides = [1, 1]} : vector<22x38xf32> to vector<16x38xf32>
    %115 = vector.broadcast %113 : f32 to vector<16x38xf32>
    %116 = arith.mulf %115, %114 : vector<16x38xf32>
    %117 = arith.addf %111, %116 : vector<16x38xf32>
    %c9 = arith.constant 9 : index
    %118 = memref.load %arg2[%c9] : memref<98xf32, #tpu.memory_space<smem>>
    %119 = vector.extract_strided_slice %112 {offsets = [1, 0], sizes = [16, 38], strides = [1, 1]} : vector<22x38xf32> to vector<16x38xf32>
    %120 = vector.broadcast %118 : f32 to vector<16x38xf32>
    %121 = arith.mulf %120, %119 : vector<16x38xf32>
    %122 = arith.addf %117, %121 : vector<16x38xf32>
    %c16 = arith.constant 16 : index
    %123 = memref.load %arg2[%c16] : memref<98xf32, #tpu.memory_space<smem>>
    %124 = vector.extract_strided_slice %112 {offsets = [2, 0], sizes = [16, 38], strides = [1, 1]} : vector<22x38xf32> to vector<16x38xf32>
    %125 = vector.broadcast %123 : f32 to vector<16x38xf32>
    %126 = arith.mulf %125, %124 : vector<16x38xf32>
    %127 = arith.addf %122, %126 : vector<16x38xf32>
    %c23 = arith.constant 23 : index
    %128 = memref.load %arg2[%c23] : memref<98xf32, #tpu.memory_space<smem>>
    %129 = vector.extract_strided_slice %112 {offsets = [3, 0], sizes = [16, 38], strides = [1, 1]} : vector<22x38xf32> to vector<16x38xf32>
    %130 = vector.broadcast %128 : f32 to vector<16x38xf32>
    %131 = arith.mulf %130, %129 : vector<16x38xf32>
    %132 = arith.addf %127, %131 : vector<16x38xf32>
    %c30 = arith.constant 30 : index
    %133 = memref.load %arg2[%c30] : memref<98xf32, #tpu.memory_space<smem>>
    %134 = vector.extract_strided_slice %112 {offsets = [4, 0], sizes = [16, 38], strides = [1, 1]} : vector<22x38xf32> to vector<16x38xf32>
    %135 = vector.broadcast %133 : f32 to vector<16x38xf32>
    %136 = arith.mulf %135, %134 : vector<16x38xf32>
    %137 = arith.addf %132, %136 : vector<16x38xf32>
    %c37 = arith.constant 37 : index
    %138 = memref.load %arg2[%c37] : memref<98xf32, #tpu.memory_space<smem>>
    %139 = vector.extract_strided_slice %112 {offsets = [5, 0], sizes = [16, 38], strides = [1, 1]} : vector<22x38xf32> to vector<16x38xf32>
    %140 = vector.broadcast %138 : f32 to vector<16x38xf32>
    %141 = arith.mulf %140, %139 : vector<16x38xf32>
    %142 = arith.addf %137, %141 : vector<16x38xf32>
    %c44 = arith.constant 44 : index
    %143 = memref.load %arg2[%c44] : memref<98xf32, #tpu.memory_space<smem>>
    %144 = vector.extract_strided_slice %112 {offsets = [6, 0], sizes = [16, 38], strides = [1, 1]} : vector<22x38xf32> to vector<16x38xf32>
    %145 = vector.broadcast %143 : f32 to vector<16x38xf32>
    %146 = arith.mulf %145, %144 : vector<16x38xf32>
    %147 = arith.addf %142, %146 : vector<16x38xf32>
    %148 = vector.extract_strided_slice %35 {offsets = [0, 3], sizes = [22, 38], strides = [1, 1]} : vector<22x44xf32> to vector<22x38xf32>
    %c3_35 = arith.constant 3 : index
    %149 = memref.load %arg2[%c3_35] : memref<98xf32, #tpu.memory_space<smem>>
    %150 = vector.extract_strided_slice %148 {offsets = [0, 0], sizes = [16, 38], strides = [1, 1]} : vector<22x38xf32> to vector<16x38xf32>
    %151 = vector.broadcast %149 : f32 to vector<16x38xf32>
    %152 = arith.mulf %151, %150 : vector<16x38xf32>
    %153 = arith.addf %147, %152 : vector<16x38xf32>
    %c10 = arith.constant 10 : index
    %154 = memref.load %arg2[%c10] : memref<98xf32, #tpu.memory_space<smem>>
    %155 = vector.extract_strided_slice %148 {offsets = [1, 0], sizes = [16, 38], strides = [1, 1]} : vector<22x38xf32> to vector<16x38xf32>
    %156 = vector.broadcast %154 : f32 to vector<16x38xf32>
    %157 = arith.mulf %156, %155 : vector<16x38xf32>
    %158 = arith.addf %153, %157 : vector<16x38xf32>
    %c17 = arith.constant 17 : index
    %159 = memref.load %arg2[%c17] : memref<98xf32, #tpu.memory_space<smem>>
    %160 = vector.extract_strided_slice %148 {offsets = [2, 0], sizes = [16, 38], strides = [1, 1]} : vector<22x38xf32> to vector<16x38xf32>
    %161 = vector.broadcast %159 : f32 to vector<16x38xf32>
    %162 = arith.mulf %161, %160 : vector<16x38xf32>
    %163 = arith.addf %158, %162 : vector<16x38xf32>
    %c24 = arith.constant 24 : index
    %164 = memref.load %arg2[%c24] : memref<98xf32, #tpu.memory_space<smem>>
    %165 = vector.extract_strided_slice %148 {offsets = [3, 0], sizes = [16, 38], strides = [1, 1]} : vector<22x38xf32> to vector<16x38xf32>
    %166 = vector.broadcast %164 : f32 to vector<16x38xf32>
    %167 = arith.mulf %166, %165 : vector<16x38xf32>
    %168 = arith.addf %163, %167 : vector<16x38xf32>
    %c31 = arith.constant 31 : index
    %169 = memref.load %arg2[%c31] : memref<98xf32, #tpu.memory_space<smem>>
    %170 = vector.extract_strided_slice %148 {offsets = [4, 0], sizes = [16, 38], strides = [1, 1]} : vector<22x38xf32> to vector<16x38xf32>
    %171 = vector.broadcast %169 : f32 to vector<16x38xf32>
    %172 = arith.mulf %171, %170 : vector<16x38xf32>
    %173 = arith.addf %168, %172 : vector<16x38xf32>
    %c38 = arith.constant 38 : index
    %174 = memref.load %arg2[%c38] : memref<98xf32, #tpu.memory_space<smem>>
    %175 = vector.extract_strided_slice %148 {offsets = [5, 0], sizes = [16, 38], strides = [1, 1]} : vector<22x38xf32> to vector<16x38xf32>
    %176 = vector.broadcast %174 : f32 to vector<16x38xf32>
    %177 = arith.mulf %176, %175 : vector<16x38xf32>
    %178 = arith.addf %173, %177 : vector<16x38xf32>
    %c45 = arith.constant 45 : index
    %179 = memref.load %arg2[%c45] : memref<98xf32, #tpu.memory_space<smem>>
    %180 = vector.extract_strided_slice %148 {offsets = [6, 0], sizes = [16, 38], strides = [1, 1]} : vector<22x38xf32> to vector<16x38xf32>
    %181 = vector.broadcast %179 : f32 to vector<16x38xf32>
    %182 = arith.mulf %181, %180 : vector<16x38xf32>
    %183 = arith.addf %178, %182 : vector<16x38xf32>
    %184 = vector.extract_strided_slice %35 {offsets = [0, 4], sizes = [22, 38], strides = [1, 1]} : vector<22x44xf32> to vector<22x38xf32>
    %c4 = arith.constant 4 : index
    %185 = memref.load %arg2[%c4] : memref<98xf32, #tpu.memory_space<smem>>
    %186 = vector.extract_strided_slice %184 {offsets = [0, 0], sizes = [16, 38], strides = [1, 1]} : vector<22x38xf32> to vector<16x38xf32>
    %187 = vector.broadcast %185 : f32 to vector<16x38xf32>
    %188 = arith.mulf %187, %186 : vector<16x38xf32>
    %189 = arith.addf %183, %188 : vector<16x38xf32>
    %c11 = arith.constant 11 : index
    %190 = memref.load %arg2[%c11] : memref<98xf32, #tpu.memory_space<smem>>
    %191 = vector.extract_strided_slice %184 {offsets = [1, 0], sizes = [16, 38], strides = [1, 1]} : vector<22x38xf32> to vector<16x38xf32>
    %192 = vector.broadcast %190 : f32 to vector<16x38xf32>
    %193 = arith.mulf %192, %191 : vector<16x38xf32>
    %194 = arith.addf %189, %193 : vector<16x38xf32>
    %c18 = arith.constant 18 : index
    %195 = memref.load %arg2[%c18] : memref<98xf32, #tpu.memory_space<smem>>
    %196 = vector.extract_strided_slice %184 {offsets = [2, 0], sizes = [16, 38], strides = [1, 1]} : vector<22x38xf32> to vector<16x38xf32>
    %197 = vector.broadcast %195 : f32 to vector<16x38xf32>
    %198 = arith.mulf %197, %196 : vector<16x38xf32>
    %199 = arith.addf %194, %198 : vector<16x38xf32>
    %c25 = arith.constant 25 : index
    %200 = memref.load %arg2[%c25] : memref<98xf32, #tpu.memory_space<smem>>
    %201 = vector.extract_strided_slice %184 {offsets = [3, 0], sizes = [16, 38], strides = [1, 1]} : vector<22x38xf32> to vector<16x38xf32>
    %202 = vector.broadcast %200 : f32 to vector<16x38xf32>
    %203 = arith.mulf %202, %201 : vector<16x38xf32>
    %204 = arith.addf %199, %203 : vector<16x38xf32>
    %c32 = arith.constant 32 : index
    %205 = memref.load %arg2[%c32] : memref<98xf32, #tpu.memory_space<smem>>
    %206 = vector.extract_strided_slice %184 {offsets = [4, 0], sizes = [16, 38], strides = [1, 1]} : vector<22x38xf32> to vector<16x38xf32>
    %207 = vector.broadcast %205 : f32 to vector<16x38xf32>
    %208 = arith.mulf %207, %206 : vector<16x38xf32>
    %209 = arith.addf %204, %208 : vector<16x38xf32>
    %c39 = arith.constant 39 : index
    %210 = memref.load %arg2[%c39] : memref<98xf32, #tpu.memory_space<smem>>
    %211 = vector.extract_strided_slice %184 {offsets = [5, 0], sizes = [16, 38], strides = [1, 1]} : vector<22x38xf32> to vector<16x38xf32>
    %212 = vector.broadcast %210 : f32 to vector<16x38xf32>
    %213 = arith.mulf %212, %211 : vector<16x38xf32>
    %214 = arith.addf %209, %213 : vector<16x38xf32>
    %c46 = arith.constant 46 : index
    %215 = memref.load %arg2[%c46] : memref<98xf32, #tpu.memory_space<smem>>
    %216 = vector.extract_strided_slice %184 {offsets = [6, 0], sizes = [16, 38], strides = [1, 1]} : vector<22x38xf32> to vector<16x38xf32>
    %217 = vector.broadcast %215 : f32 to vector<16x38xf32>
    %218 = arith.mulf %217, %216 : vector<16x38xf32>
    %219 = arith.addf %214, %218 : vector<16x38xf32>
    %220 = vector.extract_strided_slice %35 {offsets = [0, 5], sizes = [22, 38], strides = [1, 1]} : vector<22x44xf32> to vector<22x38xf32>
    %c5 = arith.constant 5 : index
    %221 = memref.load %arg2[%c5] : memref<98xf32, #tpu.memory_space<smem>>
    %222 = vector.extract_strided_slice %220 {offsets = [0, 0], sizes = [16, 38], strides = [1, 1]} : vector<22x38xf32> to vector<16x38xf32>
    %223 = vector.broadcast %221 : f32 to vector<16x38xf32>
    %224 = arith.mulf %223, %222 : vector<16x38xf32>
    %225 = arith.addf %219, %224 : vector<16x38xf32>
    %c12 = arith.constant 12 : index
    %226 = memref.load %arg2[%c12] : memref<98xf32, #tpu.memory_space<smem>>
    %227 = vector.extract_strided_slice %220 {offsets = [1, 0], sizes = [16, 38], strides = [1, 1]} : vector<22x38xf32> to vector<16x38xf32>
    %228 = vector.broadcast %226 : f32 to vector<16x38xf32>
    %229 = arith.mulf %228, %227 : vector<16x38xf32>
    %230 = arith.addf %225, %229 : vector<16x38xf32>
    %c19 = arith.constant 19 : index
    %231 = memref.load %arg2[%c19] : memref<98xf32, #tpu.memory_space<smem>>
    %232 = vector.extract_strided_slice %220 {offsets = [2, 0], sizes = [16, 38], strides = [1, 1]} : vector<22x38xf32> to vector<16x38xf32>
    %233 = vector.broadcast %231 : f32 to vector<16x38xf32>
    %234 = arith.mulf %233, %232 : vector<16x38xf32>
    %235 = arith.addf %230, %234 : vector<16x38xf32>
    %c26 = arith.constant 26 : index
    %236 = memref.load %arg2[%c26] : memref<98xf32, #tpu.memory_space<smem>>
    %237 = vector.extract_strided_slice %220 {offsets = [3, 0], sizes = [16, 38], strides = [1, 1]} : vector<22x38xf32> to vector<16x38xf32>
    %238 = vector.broadcast %236 : f32 to vector<16x38xf32>
    %239 = arith.mulf %238, %237 : vector<16x38xf32>
    %240 = arith.addf %235, %239 : vector<16x38xf32>
    %c33 = arith.constant 33 : index
    %241 = memref.load %arg2[%c33] : memref<98xf32, #tpu.memory_space<smem>>
    %242 = vector.extract_strided_slice %220 {offsets = [4, 0], sizes = [16, 38], strides = [1, 1]} : vector<22x38xf32> to vector<16x38xf32>
    %243 = vector.broadcast %241 : f32 to vector<16x38xf32>
    %244 = arith.mulf %243, %242 : vector<16x38xf32>
    %245 = arith.addf %240, %244 : vector<16x38xf32>
    %c40 = arith.constant 40 : index
    %246 = memref.load %arg2[%c40] : memref<98xf32, #tpu.memory_space<smem>>
    %247 = vector.extract_strided_slice %220 {offsets = [5, 0], sizes = [16, 38], strides = [1, 1]} : vector<22x38xf32> to vector<16x38xf32>
    %248 = vector.broadcast %246 : f32 to vector<16x38xf32>
    %249 = arith.mulf %248, %247 : vector<16x38xf32>
    %250 = arith.addf %245, %249 : vector<16x38xf32>
    %c47 = arith.constant 47 : index
    %251 = memref.load %arg2[%c47] : memref<98xf32, #tpu.memory_space<smem>>
    %252 = vector.extract_strided_slice %220 {offsets = [6, 0], sizes = [16, 38], strides = [1, 1]} : vector<22x38xf32> to vector<16x38xf32>
    %253 = vector.broadcast %251 : f32 to vector<16x38xf32>
    %254 = arith.mulf %253, %252 : vector<16x38xf32>
    %255 = arith.addf %250, %254 : vector<16x38xf32>
    %256 = vector.extract_strided_slice %35 {offsets = [0, 6], sizes = [22, 38], strides = [1, 1]} : vector<22x44xf32> to vector<22x38xf32>
    %c6 = arith.constant 6 : index
    %257 = memref.load %arg2[%c6] : memref<98xf32, #tpu.memory_space<smem>>
    %258 = vector.extract_strided_slice %256 {offsets = [0, 0], sizes = [16, 38], strides = [1, 1]} : vector<22x38xf32> to vector<16x38xf32>
    %259 = vector.broadcast %257 : f32 to vector<16x38xf32>
    %260 = arith.mulf %259, %258 : vector<16x38xf32>
    %261 = arith.addf %255, %260 : vector<16x38xf32>
    %c13 = arith.constant 13 : index
    %262 = memref.load %arg2[%c13] : memref<98xf32, #tpu.memory_space<smem>>
    %263 = vector.extract_strided_slice %256 {offsets = [1, 0], sizes = [16, 38], strides = [1, 1]} : vector<22x38xf32> to vector<16x38xf32>
    %264 = vector.broadcast %262 : f32 to vector<16x38xf32>
    %265 = arith.mulf %264, %263 : vector<16x38xf32>
    %266 = arith.addf %261, %265 : vector<16x38xf32>
    %c20 = arith.constant 20 : index
    %267 = memref.load %arg2[%c20] : memref<98xf32, #tpu.memory_space<smem>>
    %268 = vector.extract_strided_slice %256 {offsets = [2, 0], sizes = [16, 38], strides = [1, 1]} : vector<22x38xf32> to vector<16x38xf32>
    %269 = vector.broadcast %267 : f32 to vector<16x38xf32>
    %270 = arith.mulf %269, %268 : vector<16x38xf32>
    %271 = arith.addf %266, %270 : vector<16x38xf32>
    %c27 = arith.constant 27 : index
    %272 = memref.load %arg2[%c27] : memref<98xf32, #tpu.memory_space<smem>>
    %273 = vector.extract_strided_slice %256 {offsets = [3, 0], sizes = [16, 38], strides = [1, 1]} : vector<22x38xf32> to vector<16x38xf32>
    %274 = vector.broadcast %272 : f32 to vector<16x38xf32>
    %275 = arith.mulf %274, %273 : vector<16x38xf32>
    %276 = arith.addf %271, %275 : vector<16x38xf32>
    %c34 = arith.constant 34 : index
    %277 = memref.load %arg2[%c34] : memref<98xf32, #tpu.memory_space<smem>>
    %278 = vector.extract_strided_slice %256 {offsets = [4, 0], sizes = [16, 38], strides = [1, 1]} : vector<22x38xf32> to vector<16x38xf32>
    %279 = vector.broadcast %277 : f32 to vector<16x38xf32>
    %280 = arith.mulf %279, %278 : vector<16x38xf32>
    %281 = arith.addf %276, %280 : vector<16x38xf32>
    %c41 = arith.constant 41 : index
    %282 = memref.load %arg2[%c41] : memref<98xf32, #tpu.memory_space<smem>>
    %283 = vector.extract_strided_slice %256 {offsets = [5, 0], sizes = [16, 38], strides = [1, 1]} : vector<22x38xf32> to vector<16x38xf32>
    %284 = vector.broadcast %282 : f32 to vector<16x38xf32>
    %285 = arith.mulf %284, %283 : vector<16x38xf32>
    %286 = arith.addf %281, %285 : vector<16x38xf32>
    %c48 = arith.constant 48 : index
    %287 = memref.load %arg2[%c48] : memref<98xf32, #tpu.memory_space<smem>>
    %288 = vector.extract_strided_slice %256 {offsets = [6, 0], sizes = [16, 38], strides = [1, 1]} : vector<22x38xf32> to vector<16x38xf32>
    %289 = vector.broadcast %287 : f32 to vector<16x38xf32>
    %290 = arith.mulf %289, %288 : vector<16x38xf32>
    %291 = arith.addf %286, %290 : vector<16x38xf32>
    %292 = vector.extract_strided_slice %37 {offsets = [0, 0], sizes = [22, 38], strides = [1, 1]} : vector<22x44xf32> to vector<22x38xf32>
    %c49 = arith.constant 49 : index
    %293 = memref.load %arg2[%c49] : memref<98xf32, #tpu.memory_space<smem>>
    %294 = vector.extract_strided_slice %292 {offsets = [0, 0], sizes = [16, 38], strides = [1, 1]} : vector<22x38xf32> to vector<16x38xf32>
    %295 = vector.broadcast %293 : f32 to vector<16x38xf32>
    %296 = arith.mulf %295, %294 : vector<16x38xf32>
    %297 = arith.addf %291, %296 : vector<16x38xf32>
    %c56 = arith.constant 56 : index
    %298 = memref.load %arg2[%c56] : memref<98xf32, #tpu.memory_space<smem>>
    %299 = vector.extract_strided_slice %292 {offsets = [1, 0], sizes = [16, 38], strides = [1, 1]} : vector<22x38xf32> to vector<16x38xf32>
    %300 = vector.broadcast %298 : f32 to vector<16x38xf32>
    %301 = arith.mulf %300, %299 : vector<16x38xf32>
    %302 = arith.addf %297, %301 : vector<16x38xf32>
    %c63 = arith.constant 63 : index
    %303 = memref.load %arg2[%c63] : memref<98xf32, #tpu.memory_space<smem>>
    %304 = vector.extract_strided_slice %292 {offsets = [2, 0], sizes = [16, 38], strides = [1, 1]} : vector<22x38xf32> to vector<16x38xf32>
    %305 = vector.broadcast %303 : f32 to vector<16x38xf32>
    %306 = arith.mulf %305, %304 : vector<16x38xf32>
    %307 = arith.addf %302, %306 : vector<16x38xf32>
    %c70 = arith.constant 70 : index
    %308 = memref.load %arg2[%c70] : memref<98xf32, #tpu.memory_space<smem>>
    %309 = vector.extract_strided_slice %292 {offsets = [3, 0], sizes = [16, 38], strides = [1, 1]} : vector<22x38xf32> to vector<16x38xf32>
    %310 = vector.broadcast %308 : f32 to vector<16x38xf32>
    %311 = arith.mulf %310, %309 : vector<16x38xf32>
    %312 = arith.addf %307, %311 : vector<16x38xf32>
    %c77 = arith.constant 77 : index
    %313 = memref.load %arg2[%c77] : memref<98xf32, #tpu.memory_space<smem>>
    %314 = vector.extract_strided_slice %292 {offsets = [4, 0], sizes = [16, 38], strides = [1, 1]} : vector<22x38xf32> to vector<16x38xf32>
    %315 = vector.broadcast %313 : f32 to vector<16x38xf32>
    %316 = arith.mulf %315, %314 : vector<16x38xf32>
    %317 = arith.addf %312, %316 : vector<16x38xf32>
    %c84 = arith.constant 84 : index
    %318 = memref.load %arg2[%c84] : memref<98xf32, #tpu.memory_space<smem>>
    %319 = vector.extract_strided_slice %292 {offsets = [5, 0], sizes = [16, 38], strides = [1, 1]} : vector<22x38xf32> to vector<16x38xf32>
    %320 = vector.broadcast %318 : f32 to vector<16x38xf32>
    %321 = arith.mulf %320, %319 : vector<16x38xf32>
    %322 = arith.addf %317, %321 : vector<16x38xf32>
    %c91 = arith.constant 91 : index
    %323 = memref.load %arg2[%c91] : memref<98xf32, #tpu.memory_space<smem>>
    %324 = vector.extract_strided_slice %292 {offsets = [6, 0], sizes = [16, 38], strides = [1, 1]} : vector<22x38xf32> to vector<16x38xf32>
    %325 = vector.broadcast %323 : f32 to vector<16x38xf32>
    %326 = arith.mulf %325, %324 : vector<16x38xf32>
    %327 = arith.addf %322, %326 : vector<16x38xf32>
    %328 = vector.extract_strided_slice %37 {offsets = [0, 1], sizes = [22, 38], strides = [1, 1]} : vector<22x44xf32> to vector<22x38xf32>
    %c50 = arith.constant 50 : index
    %329 = memref.load %arg2[%c50] : memref<98xf32, #tpu.memory_space<smem>>
    %330 = vector.extract_strided_slice %328 {offsets = [0, 0], sizes = [16, 38], strides = [1, 1]} : vector<22x38xf32> to vector<16x38xf32>
    %331 = vector.broadcast %329 : f32 to vector<16x38xf32>
    %332 = arith.mulf %331, %330 : vector<16x38xf32>
    %333 = arith.addf %327, %332 : vector<16x38xf32>
    %c57 = arith.constant 57 : index
    %334 = memref.load %arg2[%c57] : memref<98xf32, #tpu.memory_space<smem>>
    %335 = vector.extract_strided_slice %328 {offsets = [1, 0], sizes = [16, 38], strides = [1, 1]} : vector<22x38xf32> to vector<16x38xf32>
    %336 = vector.broadcast %334 : f32 to vector<16x38xf32>
    %337 = arith.mulf %336, %335 : vector<16x38xf32>
    %338 = arith.addf %333, %337 : vector<16x38xf32>
    %c64 = arith.constant 64 : index
    %339 = memref.load %arg2[%c64] : memref<98xf32, #tpu.memory_space<smem>>
    %340 = vector.extract_strided_slice %328 {offsets = [2, 0], sizes = [16, 38], strides = [1, 1]} : vector<22x38xf32> to vector<16x38xf32>
    %341 = vector.broadcast %339 : f32 to vector<16x38xf32>
    %342 = arith.mulf %341, %340 : vector<16x38xf32>
    %343 = arith.addf %338, %342 : vector<16x38xf32>
    %c71 = arith.constant 71 : index
    %344 = memref.load %arg2[%c71] : memref<98xf32, #tpu.memory_space<smem>>
    %345 = vector.extract_strided_slice %328 {offsets = [3, 0], sizes = [16, 38], strides = [1, 1]} : vector<22x38xf32> to vector<16x38xf32>
    %346 = vector.broadcast %344 : f32 to vector<16x38xf32>
    %347 = arith.mulf %346, %345 : vector<16x38xf32>
    %348 = arith.addf %343, %347 : vector<16x38xf32>
    %c78 = arith.constant 78 : index
    %349 = memref.load %arg2[%c78] : memref<98xf32, #tpu.memory_space<smem>>
    %350 = vector.extract_strided_slice %328 {offsets = [4, 0], sizes = [16, 38], strides = [1, 1]} : vector<22x38xf32> to vector<16x38xf32>
    %351 = vector.broadcast %349 : f32 to vector<16x38xf32>
    %352 = arith.mulf %351, %350 : vector<16x38xf32>
    %353 = arith.addf %348, %352 : vector<16x38xf32>
    %c85 = arith.constant 85 : index
    %354 = memref.load %arg2[%c85] : memref<98xf32, #tpu.memory_space<smem>>
    %355 = vector.extract_strided_slice %328 {offsets = [5, 0], sizes = [16, 38], strides = [1, 1]} : vector<22x38xf32> to vector<16x38xf32>
    %356 = vector.broadcast %354 : f32 to vector<16x38xf32>
    %357 = arith.mulf %356, %355 : vector<16x38xf32>
    %358 = arith.addf %353, %357 : vector<16x38xf32>
    %c92 = arith.constant 92 : index
    %359 = memref.load %arg2[%c92] : memref<98xf32, #tpu.memory_space<smem>>
    %360 = vector.extract_strided_slice %328 {offsets = [6, 0], sizes = [16, 38], strides = [1, 1]} : vector<22x38xf32> to vector<16x38xf32>
    %361 = vector.broadcast %359 : f32 to vector<16x38xf32>
    %362 = arith.mulf %361, %360 : vector<16x38xf32>
    %363 = arith.addf %358, %362 : vector<16x38xf32>
    %364 = vector.extract_strided_slice %37 {offsets = [0, 2], sizes = [22, 38], strides = [1, 1]} : vector<22x44xf32> to vector<22x38xf32>
    %c51 = arith.constant 51 : index
    %365 = memref.load %arg2[%c51] : memref<98xf32, #tpu.memory_space<smem>>
    %366 = vector.extract_strided_slice %364 {offsets = [0, 0], sizes = [16, 38], strides = [1, 1]} : vector<22x38xf32> to vector<16x38xf32>
    %367 = vector.broadcast %365 : f32 to vector<16x38xf32>
    %368 = arith.mulf %367, %366 : vector<16x38xf32>
    %369 = arith.addf %363, %368 : vector<16x38xf32>
    %c58 = arith.constant 58 : index
    %370 = memref.load %arg2[%c58] : memref<98xf32, #tpu.memory_space<smem>>
    %371 = vector.extract_strided_slice %364 {offsets = [1, 0], sizes = [16, 38], strides = [1, 1]} : vector<22x38xf32> to vector<16x38xf32>
    %372 = vector.broadcast %370 : f32 to vector<16x38xf32>
    %373 = arith.mulf %372, %371 : vector<16x38xf32>
    %374 = arith.addf %369, %373 : vector<16x38xf32>
    %c65 = arith.constant 65 : index
    %375 = memref.load %arg2[%c65] : memref<98xf32, #tpu.memory_space<smem>>
    %376 = vector.extract_strided_slice %364 {offsets = [2, 0], sizes = [16, 38], strides = [1, 1]} : vector<22x38xf32> to vector<16x38xf32>
    %377 = vector.broadcast %375 : f32 to vector<16x38xf32>
    %378 = arith.mulf %377, %376 : vector<16x38xf32>
    %379 = arith.addf %374, %378 : vector<16x38xf32>
    %c72 = arith.constant 72 : index
    %380 = memref.load %arg2[%c72] : memref<98xf32, #tpu.memory_space<smem>>
    %381 = vector.extract_strided_slice %364 {offsets = [3, 0], sizes = [16, 38], strides = [1, 1]} : vector<22x38xf32> to vector<16x38xf32>
    %382 = vector.broadcast %380 : f32 to vector<16x38xf32>
    %383 = arith.mulf %382, %381 : vector<16x38xf32>
    %384 = arith.addf %379, %383 : vector<16x38xf32>
    %c79 = arith.constant 79 : index
    %385 = memref.load %arg2[%c79] : memref<98xf32, #tpu.memory_space<smem>>
    %386 = vector.extract_strided_slice %364 {offsets = [4, 0], sizes = [16, 38], strides = [1, 1]} : vector<22x38xf32> to vector<16x38xf32>
    %387 = vector.broadcast %385 : f32 to vector<16x38xf32>
    %388 = arith.mulf %387, %386 : vector<16x38xf32>
    %389 = arith.addf %384, %388 : vector<16x38xf32>
    %c86 = arith.constant 86 : index
    %390 = memref.load %arg2[%c86] : memref<98xf32, #tpu.memory_space<smem>>
    %391 = vector.extract_strided_slice %364 {offsets = [5, 0], sizes = [16, 38], strides = [1, 1]} : vector<22x38xf32> to vector<16x38xf32>
    %392 = vector.broadcast %390 : f32 to vector<16x38xf32>
    %393 = arith.mulf %392, %391 : vector<16x38xf32>
    %394 = arith.addf %389, %393 : vector<16x38xf32>
    %c93 = arith.constant 93 : index
    %395 = memref.load %arg2[%c93] : memref<98xf32, #tpu.memory_space<smem>>
    %396 = vector.extract_strided_slice %364 {offsets = [6, 0], sizes = [16, 38], strides = [1, 1]} : vector<22x38xf32> to vector<16x38xf32>
    %397 = vector.broadcast %395 : f32 to vector<16x38xf32>
    %398 = arith.mulf %397, %396 : vector<16x38xf32>
    %399 = arith.addf %394, %398 : vector<16x38xf32>
    %400 = vector.extract_strided_slice %37 {offsets = [0, 3], sizes = [22, 38], strides = [1, 1]} : vector<22x44xf32> to vector<22x38xf32>
    %c52 = arith.constant 52 : index
    %401 = memref.load %arg2[%c52] : memref<98xf32, #tpu.memory_space<smem>>
    %402 = vector.extract_strided_slice %400 {offsets = [0, 0], sizes = [16, 38], strides = [1, 1]} : vector<22x38xf32> to vector<16x38xf32>
    %403 = vector.broadcast %401 : f32 to vector<16x38xf32>
    %404 = arith.mulf %403, %402 : vector<16x38xf32>
    %405 = arith.addf %399, %404 : vector<16x38xf32>
    %c59 = arith.constant 59 : index
    %406 = memref.load %arg2[%c59] : memref<98xf32, #tpu.memory_space<smem>>
    %407 = vector.extract_strided_slice %400 {offsets = [1, 0], sizes = [16, 38], strides = [1, 1]} : vector<22x38xf32> to vector<16x38xf32>
    %408 = vector.broadcast %406 : f32 to vector<16x38xf32>
    %409 = arith.mulf %408, %407 : vector<16x38xf32>
    %410 = arith.addf %405, %409 : vector<16x38xf32>
    %c66 = arith.constant 66 : index
    %411 = memref.load %arg2[%c66] : memref<98xf32, #tpu.memory_space<smem>>
    %412 = vector.extract_strided_slice %400 {offsets = [2, 0], sizes = [16, 38], strides = [1, 1]} : vector<22x38xf32> to vector<16x38xf32>
    %413 = vector.broadcast %411 : f32 to vector<16x38xf32>
    %414 = arith.mulf %413, %412 : vector<16x38xf32>
    %415 = arith.addf %410, %414 : vector<16x38xf32>
    %c73 = arith.constant 73 : index
    %416 = memref.load %arg2[%c73] : memref<98xf32, #tpu.memory_space<smem>>
    %417 = vector.extract_strided_slice %400 {offsets = [3, 0], sizes = [16, 38], strides = [1, 1]} : vector<22x38xf32> to vector<16x38xf32>
    %418 = vector.broadcast %416 : f32 to vector<16x38xf32>
    %419 = arith.mulf %418, %417 : vector<16x38xf32>
    %420 = arith.addf %415, %419 : vector<16x38xf32>
    %c80 = arith.constant 80 : index
    %421 = memref.load %arg2[%c80] : memref<98xf32, #tpu.memory_space<smem>>
    %422 = vector.extract_strided_slice %400 {offsets = [4, 0], sizes = [16, 38], strides = [1, 1]} : vector<22x38xf32> to vector<16x38xf32>
    %423 = vector.broadcast %421 : f32 to vector<16x38xf32>
    %424 = arith.mulf %423, %422 : vector<16x38xf32>
    %425 = arith.addf %420, %424 : vector<16x38xf32>
    %c87 = arith.constant 87 : index
    %426 = memref.load %arg2[%c87] : memref<98xf32, #tpu.memory_space<smem>>
    %427 = vector.extract_strided_slice %400 {offsets = [5, 0], sizes = [16, 38], strides = [1, 1]} : vector<22x38xf32> to vector<16x38xf32>
    %428 = vector.broadcast %426 : f32 to vector<16x38xf32>
    %429 = arith.mulf %428, %427 : vector<16x38xf32>
    %430 = arith.addf %425, %429 : vector<16x38xf32>
    %c94 = arith.constant 94 : index
    %431 = memref.load %arg2[%c94] : memref<98xf32, #tpu.memory_space<smem>>
    %432 = vector.extract_strided_slice %400 {offsets = [6, 0], sizes = [16, 38], strides = [1, 1]} : vector<22x38xf32> to vector<16x38xf32>
    %433 = vector.broadcast %431 : f32 to vector<16x38xf32>
    %434 = arith.mulf %433, %432 : vector<16x38xf32>
    %435 = arith.addf %430, %434 : vector<16x38xf32>
    %436 = vector.extract_strided_slice %37 {offsets = [0, 4], sizes = [22, 38], strides = [1, 1]} : vector<22x44xf32> to vector<22x38xf32>
    %c53 = arith.constant 53 : index
    %437 = memref.load %arg2[%c53] : memref<98xf32, #tpu.memory_space<smem>>
    %438 = vector.extract_strided_slice %436 {offsets = [0, 0], sizes = [16, 38], strides = [1, 1]} : vector<22x38xf32> to vector<16x38xf32>
    %439 = vector.broadcast %437 : f32 to vector<16x38xf32>
    %440 = arith.mulf %439, %438 : vector<16x38xf32>
    %441 = arith.addf %435, %440 : vector<16x38xf32>
    %c60 = arith.constant 60 : index
    %442 = memref.load %arg2[%c60] : memref<98xf32, #tpu.memory_space<smem>>
    %443 = vector.extract_strided_slice %436 {offsets = [1, 0], sizes = [16, 38], strides = [1, 1]} : vector<22x38xf32> to vector<16x38xf32>
    %444 = vector.broadcast %442 : f32 to vector<16x38xf32>
    %445 = arith.mulf %444, %443 : vector<16x38xf32>
    %446 = arith.addf %441, %445 : vector<16x38xf32>
    %c67 = arith.constant 67 : index
    %447 = memref.load %arg2[%c67] : memref<98xf32, #tpu.memory_space<smem>>
    %448 = vector.extract_strided_slice %436 {offsets = [2, 0], sizes = [16, 38], strides = [1, 1]} : vector<22x38xf32> to vector<16x38xf32>
    %449 = vector.broadcast %447 : f32 to vector<16x38xf32>
    %450 = arith.mulf %449, %448 : vector<16x38xf32>
    %451 = arith.addf %446, %450 : vector<16x38xf32>
    %c74 = arith.constant 74 : index
    %452 = memref.load %arg2[%c74] : memref<98xf32, #tpu.memory_space<smem>>
    %453 = vector.extract_strided_slice %436 {offsets = [3, 0], sizes = [16, 38], strides = [1, 1]} : vector<22x38xf32> to vector<16x38xf32>
    %454 = vector.broadcast %452 : f32 to vector<16x38xf32>
    %455 = arith.mulf %454, %453 : vector<16x38xf32>
    %456 = arith.addf %451, %455 : vector<16x38xf32>
    %c81 = arith.constant 81 : index
    %457 = memref.load %arg2[%c81] : memref<98xf32, #tpu.memory_space<smem>>
    %458 = vector.extract_strided_slice %436 {offsets = [4, 0], sizes = [16, 38], strides = [1, 1]} : vector<22x38xf32> to vector<16x38xf32>
    %459 = vector.broadcast %457 : f32 to vector<16x38xf32>
    %460 = arith.mulf %459, %458 : vector<16x38xf32>
    %461 = arith.addf %456, %460 : vector<16x38xf32>
    %c88 = arith.constant 88 : index
    %462 = memref.load %arg2[%c88] : memref<98xf32, #tpu.memory_space<smem>>
    %463 = vector.extract_strided_slice %436 {offsets = [5, 0], sizes = [16, 38], strides = [1, 1]} : vector<22x38xf32> to vector<16x38xf32>
    %464 = vector.broadcast %462 : f32 to vector<16x38xf32>
    %465 = arith.mulf %464, %463 : vector<16x38xf32>
    %466 = arith.addf %461, %465 : vector<16x38xf32>
    %c95 = arith.constant 95 : index
    %467 = memref.load %arg2[%c95] : memref<98xf32, #tpu.memory_space<smem>>
    %468 = vector.extract_strided_slice %436 {offsets = [6, 0], sizes = [16, 38], strides = [1, 1]} : vector<22x38xf32> to vector<16x38xf32>
    %469 = vector.broadcast %467 : f32 to vector<16x38xf32>
    %470 = arith.mulf %469, %468 : vector<16x38xf32>
    %471 = arith.addf %466, %470 : vector<16x38xf32>
    %472 = vector.extract_strided_slice %37 {offsets = [0, 5], sizes = [22, 38], strides = [1, 1]} : vector<22x44xf32> to vector<22x38xf32>
    %c54 = arith.constant 54 : index
    %473 = memref.load %arg2[%c54] : memref<98xf32, #tpu.memory_space<smem>>
    %474 = vector.extract_strided_slice %472 {offsets = [0, 0], sizes = [16, 38], strides = [1, 1]} : vector<22x38xf32> to vector<16x38xf32>
    %475 = vector.broadcast %473 : f32 to vector<16x38xf32>
    %476 = arith.mulf %475, %474 : vector<16x38xf32>
    %477 = arith.addf %471, %476 : vector<16x38xf32>
    %c61 = arith.constant 61 : index
    %478 = memref.load %arg2[%c61] : memref<98xf32, #tpu.memory_space<smem>>
    %479 = vector.extract_strided_slice %472 {offsets = [1, 0], sizes = [16, 38], strides = [1, 1]} : vector<22x38xf32> to vector<16x38xf32>
    %480 = vector.broadcast %478 : f32 to vector<16x38xf32>
    %481 = arith.mulf %480, %479 : vector<16x38xf32>
    %482 = arith.addf %477, %481 : vector<16x38xf32>
    %c68 = arith.constant 68 : index
    %483 = memref.load %arg2[%c68] : memref<98xf32, #tpu.memory_space<smem>>
    %484 = vector.extract_strided_slice %472 {offsets = [2, 0], sizes = [16, 38], strides = [1, 1]} : vector<22x38xf32> to vector<16x38xf32>
    %485 = vector.broadcast %483 : f32 to vector<16x38xf32>
    %486 = arith.mulf %485, %484 : vector<16x38xf32>
    %487 = arith.addf %482, %486 : vector<16x38xf32>
    %c75 = arith.constant 75 : index
    %488 = memref.load %arg2[%c75] : memref<98xf32, #tpu.memory_space<smem>>
    %489 = vector.extract_strided_slice %472 {offsets = [3, 0], sizes = [16, 38], strides = [1, 1]} : vector<22x38xf32> to vector<16x38xf32>
    %490 = vector.broadcast %488 : f32 to vector<16x38xf32>
    %491 = arith.mulf %490, %489 : vector<16x38xf32>
    %492 = arith.addf %487, %491 : vector<16x38xf32>
    %c82 = arith.constant 82 : index
    %493 = memref.load %arg2[%c82] : memref<98xf32, #tpu.memory_space<smem>>
    %494 = vector.extract_strided_slice %472 {offsets = [4, 0], sizes = [16, 38], strides = [1, 1]} : vector<22x38xf32> to vector<16x38xf32>
    %495 = vector.broadcast %493 : f32 to vector<16x38xf32>
    %496 = arith.mulf %495, %494 : vector<16x38xf32>
    %497 = arith.addf %492, %496 : vector<16x38xf32>
    %c89 = arith.constant 89 : index
    %498 = memref.load %arg2[%c89] : memref<98xf32, #tpu.memory_space<smem>>
    %499 = vector.extract_strided_slice %472 {offsets = [5, 0], sizes = [16, 38], strides = [1, 1]} : vector<22x38xf32> to vector<16x38xf32>
    %500 = vector.broadcast %498 : f32 to vector<16x38xf32>
    %501 = arith.mulf %500, %499 : vector<16x38xf32>
    %502 = arith.addf %497, %501 : vector<16x38xf32>
    %c96 = arith.constant 96 : index
    %503 = memref.load %arg2[%c96] : memref<98xf32, #tpu.memory_space<smem>>
    %504 = vector.extract_strided_slice %472 {offsets = [6, 0], sizes = [16, 38], strides = [1, 1]} : vector<22x38xf32> to vector<16x38xf32>
    %505 = vector.broadcast %503 : f32 to vector<16x38xf32>
    %506 = arith.mulf %505, %504 : vector<16x38xf32>
    %507 = arith.addf %502, %506 : vector<16x38xf32>
    %508 = vector.extract_strided_slice %37 {offsets = [0, 6], sizes = [22, 38], strides = [1, 1]} : vector<22x44xf32> to vector<22x38xf32>
    %c55 = arith.constant 55 : index
    %509 = memref.load %arg2[%c55] : memref<98xf32, #tpu.memory_space<smem>>
    %510 = vector.extract_strided_slice %508 {offsets = [0, 0], sizes = [16, 38], strides = [1, 1]} : vector<22x38xf32> to vector<16x38xf32>
    %511 = vector.broadcast %509 : f32 to vector<16x38xf32>
    %512 = arith.mulf %511, %510 : vector<16x38xf32>
    %513 = arith.addf %507, %512 : vector<16x38xf32>
    %c62 = arith.constant 62 : index
    %514 = memref.load %arg2[%c62] : memref<98xf32, #tpu.memory_space<smem>>
    %515 = vector.extract_strided_slice %508 {offsets = [1, 0], sizes = [16, 38], strides = [1, 1]} : vector<22x38xf32> to vector<16x38xf32>
    %516 = vector.broadcast %514 : f32 to vector<16x38xf32>
    %517 = arith.mulf %516, %515 : vector<16x38xf32>
    %518 = arith.addf %513, %517 : vector<16x38xf32>
    %c69 = arith.constant 69 : index
    %519 = memref.load %arg2[%c69] : memref<98xf32, #tpu.memory_space<smem>>
    %520 = vector.extract_strided_slice %508 {offsets = [2, 0], sizes = [16, 38], strides = [1, 1]} : vector<22x38xf32> to vector<16x38xf32>
    %521 = vector.broadcast %519 : f32 to vector<16x38xf32>
    %522 = arith.mulf %521, %520 : vector<16x38xf32>
    %523 = arith.addf %518, %522 : vector<16x38xf32>
    %c76 = arith.constant 76 : index
    %524 = memref.load %arg2[%c76] : memref<98xf32, #tpu.memory_space<smem>>
    %525 = vector.extract_strided_slice %508 {offsets = [3, 0], sizes = [16, 38], strides = [1, 1]} : vector<22x38xf32> to vector<16x38xf32>
    %526 = vector.broadcast %524 : f32 to vector<16x38xf32>
    %527 = arith.mulf %526, %525 : vector<16x38xf32>
    %528 = arith.addf %523, %527 : vector<16x38xf32>
    %c83 = arith.constant 83 : index
    %529 = memref.load %arg2[%c83] : memref<98xf32, #tpu.memory_space<smem>>
    %530 = vector.extract_strided_slice %508 {offsets = [4, 0], sizes = [16, 38], strides = [1, 1]} : vector<22x38xf32> to vector<16x38xf32>
    %531 = vector.broadcast %529 : f32 to vector<16x38xf32>
    %532 = arith.mulf %531, %530 : vector<16x38xf32>
    %533 = arith.addf %528, %532 : vector<16x38xf32>
    %c90 = arith.constant 90 : index
    %534 = memref.load %arg2[%c90] : memref<98xf32, #tpu.memory_space<smem>>
    %535 = vector.extract_strided_slice %508 {offsets = [5, 0], sizes = [16, 38], strides = [1, 1]} : vector<22x38xf32> to vector<16x38xf32>
    %536 = vector.broadcast %534 : f32 to vector<16x38xf32>
    %537 = arith.mulf %536, %535 : vector<16x38xf32>
    %538 = arith.addf %533, %537 : vector<16x38xf32>
    %c97 = arith.constant 97 : index
    %539 = memref.load %arg2[%c97] : memref<98xf32, #tpu.memory_space<smem>>
    %540 = vector.extract_strided_slice %508 {offsets = [6, 0], sizes = [16, 38], strides = [1, 1]} : vector<22x38xf32> to vector<16x38xf32>
    %541 = vector.broadcast %539 : f32 to vector<16x38xf32>
    %542 = arith.mulf %541, %540 : vector<16x38xf32>
    %543 = arith.addf %538, %542 : vector<16x38xf32>
    %544 = arith.negf %543 : vector<16x38xf32>
    %545 = math.exp %544 : vector<16x38xf32>
    %cst_36 = arith.constant 1.000000e+00 : f32
    %546 = vector.broadcast %cst_36 : f32 to vector<16x38xf32>
    %547 = arith.addf %546, %545 : vector<16x38xf32>
    %548 = arith.divf %546, %547 : vector<16x38xf32>
    %549 = vector.extract_strided_slice %548 {offsets = [0, 0], sizes = [16, 16], strides = [1, 1]} : vector<16x38xf32> to vector<16x16xf32>
    %c0_37 = arith.constant 0 : index
    %c0_38 = arith.constant 0 : index
    %c0_39 = arith.constant 0 : index
    %c0_40 = arith.constant 0 : index
    %550 = vector.load %arg4[%c0_37, %c0_38, %c0_39, %c0_40] : memref<2x1x16x16xf32, #tpu.memory_space<vmem>>, vector<1x1x16x16xf32>
    %551 = vector.shape_cast %550 : vector<1x1x16x16xf32> to vector<16x16xf32>
    %552 = vector.shape_cast %549 : vector<16x16xf32> to vector<1x1x16x16xf32>
    tpu.vector_store %arg4[%c0_37, %c0_38, %c0_39, %c0_40], %552 {strides = array<i32>} : memref<2x1x16x16xf32, #tpu.memory_space<vmem>>, vector<1x1x16x16xf32>,
    %553 = vector.extract_strided_slice %548 {offsets = [0, 22], sizes = [16, 16], strides = [1, 1]} : vector<16x38xf32> to vector<16x16xf32>
    %c1_41 = arith.constant 1 : index
    %c0_42 = arith.constant 0 : index
    %c0_43 = arith.constant 0 : index
    %c0_44 = arith.constant 0 : index
    %554 = vector.load %arg4[%c1_41, %c0_42, %c0_43, %c0_44] : memref<2x1x16x16xf32, #tpu.memory_space<vmem>>, vector<1x1x16x16xf32>
    %555 = vector.shape_cast %554 : vector<1x1x16x16xf32> to vector<16x16xf32>
    %556 = vector.shape_cast %553 : vector<16x16xf32> to vector<1x1x16x16xf32>
    tpu.vector_store %arg4[%c1_41, %c0_42, %c0_43, %c0_44], %556 {strides = array<i32>} : memref<2x1x16x16xf32, #tpu.memory_space<vmem>>, vector<1x1x16x16xf32>,
    return
  }
  func.func @transform_0(%arg0: i32) -> (i32, i32, i32, i32) {
    %c0_i32 = arith.constant 0 : i32
    %c0_i32_0 = arith.constant 0 : i32
    %c0_i32_1 = arith.constant 0 : i32
    %c0_i32_2 = arith.constant 0 : i32
    return %arg0, %c0_i32, %c0_i32_0, %c0_i32_1 : i32, i32, i32, i32
  }
  func.func @transform_1(%arg0: i32) -> i32 {
    %c0_i32 = arith.constant 0 : i32
    %c0_i32_0 = arith.constant 0 : i32
    return %c0_i32 : i32
  }
  func.func @transform_2(%arg0: i32) -> i32 {
    %c0_i32 = arith.constant 0 : i32
    %c0_i32_0 = arith.constant 0 : i32
    return %c0_i32 : i32
  }
  func.func @transform_3(%arg0: i32) -> (i32, i32, i32, i32) {
    %c0_i32 = arith.constant 0 : i32
    %c0_i32_0 = arith.constant 0 : i32
    %c0_i32_1 = arith.constant 0 : i32
    %c0_i32_2 = arith.constant 0 : i32
    return %arg0, %c0_i32, %c0_i32_0, %c0_i32_1 : i32, i32, i32, i32
  }
}

</mosaic_0001>

<bundles_post_ra>
// kernel: tpu_custom_call.1
= control target key start
LH: loop header
LB: loop body
LE: loop exit
PB: predicated region body
PF: predicated region fallthrough
CT: control target
= control target key end

     0   :  { %9 = vsyncpa [#allocation4], 0  ;;  %s3639_s0 = inlined_call_operand.hbm [shape: f32[2,4,16,16], index: 0, kind: input, shape index: {}]   ;;  %s3640_s1 = inlined_call_operand.vmem [shape: f32[98], index: 1, kind: input, shape index: {}]   ;;  %s3641_s2 = inlined_call_operand.<no memory space> [shape: f32[1], index: 2, kind: input, shape index: {}]   ;;  %s3642_s3 = inlined_call_operand.hbm [shape: f32[2,1,16,16], index: 3, kind: output, shape index: {}]  }
   0x1   :  { %10 = vsyncpa [#allocation6], 0 }
   0x2   :  { %11 = vsyncpa [#allocation5], 0  ;;  %s2302_s12 = smov [#allocation3]   ;;  %s30_s16 = sshll.u32 %s3640_s1, 4  ;;  %s31_s16 = int_to_ptr.vmem [resolvable:$true] %s30_s16 }
   0x3   :  { %s17_s13 = sshll.u32 %s2302_s12, 4  ;;  %s2240_s19 = scalar_lea.hbm %s3639_s0, 2048  ;;  %s18_s13 = int_to_ptr.vmem [resolvable:$true] %s17_s13 }
   0x4   :  { %p2241_p0 = scmp.ne.s32.totalorder %s3639_s0, %s2240_s19  ;;  %p2244_p1 = scmp.lt.u32.totalorder %s2240_s19, %s3639_s0 }
   0x6   :  { %p2246_p2 = pnand %p2244_p1, %p2241_p0 }
   0x8   :  { %2249 = shalt.err (!%p2246_p2)
}
   0x9   :  { %s2250_s24 = scalar_lea.vmem %s18_s13, 2048  ;;  %p2255_p4 = scmp.lt.s32.totalorder %s18_s13, %s18_s13 }
   0xa   :  { %p2251_p3 = scmp.ne.s32.totalorder %s18_s13, %s2250_s24  ;;  %p2256_p5 = scmp.lt.s32.totalorder %s2250_s24, %s2250_s24 }
   0xc   :  { %p2257_p6 = por %p2256_p5, %p2255_p4 }
   0xe   :  { %p2258_p7 = pnand %p2257_p6, %p2251_p3 }
  0x10   :  { %2261 = shalt.err (!%p2258_p7)
}
  0x11   :  { %s2303_s1 = smov 128   ;;  %s2304_s25 = smov 8  }
  0x12   :  { %23 = dma.hbm_to_vmem [thread:$0]  %s3639_s0, 2048, %s18_s13, [#allocation4], %s2303_s1, %s2303_s1, %s2304_s25  }
  0x13   :  { %s2262_s28 = scalar_lea.vmem %s31_s16, 16  ;;  %p2267_p9 = scmp.lt.s32.totalorder %s31_s16, %s31_s16 }
  0x14   :  { %p2263_p8 = scmp.ne.s32.totalorder %s31_s16, %s2262_s28  ;;  %p2268_p10 = scmp.lt.s32.totalorder %s2262_s28, %s2262_s28 }
  0x16   :  { %p2269_p11 = por %p2268_p10, %p2267_p9 }
  0x18   :  { %p2270_p12 = pnand %p2269_p11, %p2263_p8 }
  0x1a   :  { %2273 = shalt.err (!%p2270_p12)
}
  0x1b   :  { %s2305_s29 = smov [#allocation7]  }
  0x1c   :  { %33 = dma.vmem_to_smem %s31_s16, 16, %s2305_s29, [#allocation6]  }
  0x1d   :  { %2296 = dma.done.wait [#allocation4], 2048  }
  0x1e   :  { %2297 = vsyncadd [#allocation4], 4294965248 }
  0x1f   :  { %2298 = dma.done.wait [#allocation6], 16  }
  0x20   :  { %2299 = vsyncadd [#allocation6], 4294967280 }
  0x21   :  { %42 = sfence }
  0x22   :  { %v44_v0 = vld [vmem:[#allocation3 + $0x8] sm:$0xff]  ;;  %v47_v1 = vld [vmem:[#allocation3 + $0x18] sm:$0xff]  ;;  %v43_v5 = vld [vmem:[#allocation3] sm:$0xff]  ;;  %s2306_s0 = smov 3   ;;  %s2307_s30 = smov 25   ;;  %vm110_vm0 = vcmask 23552  }
  0x23   :  { %v54_v2 = vld [vmem:[#allocation3 + $0x28] sm:$0xff]  ;;  %v51_v3 = vmax.f32 %v44_v0, %v47_v1  ;;  %v49_v4 = vadd.f32 %v47_v1, %v44_v0  ;;  %v46_v6 = vld [vmem:[#allocation3 + $0x10] sm:$0xff]  ;;  %v61_v7 = vld [vmem:[#allocation3 + $0x38] sm:$0xff]  ;;  %vm113_vm1 = vcmask 154624   ;;  %vm116_vm2 = vcmask 179200   ;;  %s2359_s4 = sld [smem:[#allocation7 + $0x1]] }
  0x24   :  { %v50_v8 = vmax.f32 %v43_v5, %v46_v6  ;;  %v53_v9 = vld [vmem:[#allocation3 + $0x20] sm:$0xff]  ;;  %v48_v10 = vadd.f32 %v46_v6, %v43_v5  ;;  %v60_v13 = vld [vmem:[#allocation3 + $0x30] sm:$0xff]  ;;  %v70_v20 = vld [vmem:[#allocation3 + $0x48] sm:$0xff]  ;;  %vm119_vm3 = vcmask 203776   ;;  %vm122_vm4 = vcmask 334848   ;;  %s2364_s5 = sld [smem:[#allocation7 + $0x2]] }
  0x25   :  { %v69_v11 = vld [vmem:[#allocation3 + $0x40] sm:$0xff]  ;;  %v58_v12 = vmax.f32 %v51_v3, %v54_v2  ;;  %v72_v14 = vld [vmem:[#allocation3 + $0x50] sm:$0xff]  ;;  %v56_v16 = vadd.f32 %v54_v2, %v49_v4  ;;  %v73_v21 = vld [vmem:[#allocation3 + $0x58] sm:$0xff]  ;;  %vm127_vm5 = vcmask 1042432   ;;  %s2372_s6 = sld [smem:[#allocation7 + $0x3]]  ;;  %s2390_s7 = sld [smem:[#allocation7 + $0x4]] }
  0x26   :  { %v79_v15 = vld [vmem:[#allocation3 + $0x60] sm:$0xff]  ;;  %v57_v17 = vmax.f32 %v50_v8, %v53_v9  ;;  %v55_v18 = vadd.f32 %v53_v9, %v48_v10  ;;  %v74_v19 = vadd.f32 %v72_v14, %v69_v11  ;;  %v80_v22 = vld [vmem:[#allocation3 + $0x68] sm:$0xff]  ;;  %v86_v24 = vld [vmem:[#allocation3 + $0x70] sm:$0xff]  ;;  %v75_v25 = vadd.f32 %v73_v21, %v70_v20  ;;  %s2308_s8 = smov 127   ;;  %s2126_s9 = sld [smem:[#allocation7 + $0x8]] }
  0x27   :  { %v65_v23 = vmax.f32 %v58_v12, %v61_v7  ;;  %v87_v29 = vld [vmem:[#allocation3 + $0x78] sm:$0xff]  ;;  %v76_v31 = vmax.f32 %v69_v11, %v72_v14  ;;  %v63_v32 = vadd.f32 %v61_v7, %v56_v16  ;;  %v77_v35 = vmax.f32 %v70_v20, %v73_v21  ;;  %s2408_s10 = sld [smem:[#allocation7 + $0x5]]  ;;  %s2309_s11 = smov 126  }
  0x28   :  { %v64_v26 = vmax.f32 %v57_v17, %v60_v13  ;;  %v62_v27 = vadd.f32 %v60_v13, %v55_v18  ;;  %v81_v28 = vadd.f32 %v79_v15, %v74_v19  ;;  %v82_v30 = vadd.f32 %v80_v22, %v75_v25  ;;  %s2127_s12 = sld [smem:[#allocation7 + $0xf]]  ;;  %s2310_s13 = smov 125  }
  0x29   :  { %140 = vrot.lane.b32.xlu1 %v65_v23, %s2306_s0  ;;  %v67_v39 = vmul.f32 0.25, %v63_v32  ;;  %v84_v40 = vmax.f32 %v77_v35, %v80_v22  ;;  %v83_v41 = vmax.f32 %v76_v31, %v79_v15  ;;  %v288_v0 = vstv %s2359_s4  ;;  %s2128_s14 = sld [smem:[#allocation7 + $0x16]]  ;;  %s2311_s15 = smov 124  }
  0x2a   :  { %138 = vrot.lane.b32.xlu0 %v64_v26, %s2306_s0  ;;  %v88_v33 = vadd.f32 %v86_v24, %v81_v28  ;;  %v66_v34 = vmul.f32 0.25, %v62_v27  ;;  %v89_v36 = vadd.f32 %v87_v29, %v82_v30  ;;  %v428_v13 = vstv %s2364_s5  ;;  %s2129_s16 = sld [smem:[#allocation7 + $0x1d]]  ;;  %s2312_s17 = smov 123  }
  0x2b   :  { %v91_v42 = vmax.f32 %v84_v40, %v87_v29  ;;  %v90_v43 = vmax.f32 %v83_v41, %v86_v24  ;;  %v568_v20 = vstv %s2372_s6  ;;  %v708_v23 = vstv %s2390_s7  ;;  %s2130_s18 = sld [smem:[#allocation7 + $0x24]]  ;;  %s2131_s19 = sld [smem:[#allocation7 + $0x2b]] }
  0x2c   :  { %v92_v37 = vmul.f32 0.25, %v88_v33  ;;  %v93_v38 = vmul.f32 0.25, %v89_v36  ;;  %v302_v26 = vstv %s2126_s9  ;;  %vm188_vm6 = vcmask 1046528   ;;  %s2133_s20 = sld [smem:[#allocation7 + $0x9]]  ;;  %s2134_s21 = sld [smem:[#allocation7 + $0x10]] }
  0x2d   :  { %v848_v27 = vstv %s2408_s10  ;;  %vm206_vm7 = vcmask 1045504   ;;  %vm224_vm8 = vcmask 1044480   ;;  %vm242_vm9 = vcmask 1043456   ;;  %s2135_s22 = sld [smem:[#allocation7 + $0x17]]  ;;  %s2136_s23 = sld [smem:[#allocation7 + $0x1e]] }
  0x2e   :  { %104 = vrot.lane.b32.xlu1 %v92_v37, %s2307_s30  ;;  %96 = vrot.lane.b32.xlu0 %v66_v34, %s2306_s0  ;;  %v323_v33 = vstv %s2127_s12  ;;  %vm277_vm10 = vcmask 1041408   ;;  %s2137_s24 = sld [smem:[#allocation7 + $0x25]]  ;;  %s2138_s26 = sld [smem:[#allocation7 + $0x2c]]  ;;  %vm2087_vm11 = vcmask 130048  }
  0x2f   :  { %s2140_s27 = sld [smem:[#allocation7 + $0xa]]  ;;  %s2141_s28 = sld [smem:[#allocation7 + $0x11]] }
  0x30   :  { %s2142_s29 = sld [smem:[#allocation7 + $0x18]]  ;;  %s2145_s4 = sld [smem:[#allocation7 + $0x2d]] }
  0x31   :  { %s2147_s5 = sld [smem:[#allocation7 + $0xb]]  ;;  %s2148_s6 = sld [smem:[#allocation7 + $0x12]] }
  0x32   :  { %106 = vrot.lane.b32.xlu1 %v93_v38, %s2307_s30  ;;  %98 = vrot.lane.b32.xlu0 %v67_v39, %s2306_s0  ;;  %v344_v39 = vstv %s2128_s14  ;;  %s2143_s0 = sld [smem:[#allocation7 + $0x1f]]  ;;  %s2149_s7 = sld [smem:[#allocation7 + $0x19]] }
  0x33   :  { %s2150_s9 = sld [smem:[#allocation7 + $0x20]]  ;;  %s2151_s10 = sld [smem:[#allocation7 + $0x27]] }
  0x34   :  { %s2152_s12 = sld [smem:[#allocation7 + $0x2e]]  ;;  %s2154_s14 = sld [smem:[#allocation7 + $0xc]] }
  0x36   :  { %148 = vrot.lane.b32.xlu1 %v91_v42, %s2307_s30  ;;  %146 = vrot.lane.b32.xlu0 %v90_v43, %s2307_s30  ;;  %s2144_s30 = sld [smem:[#allocation7 + $0x26]] }
  0x9b   :  { %v141_v44 = vpop.permute.xlu1 %140 }
  0x9c   :  { %v153_v45 = vsel %vm110_vm0, 0.0, %v141_v44  ;;  %v139_v46 = vpop.permute.xlu0 %138 }
  0x9d   :  { %v155_v47 = vsel %vm113_vm1, %v153_v45, 0.0  ;;  %v152_v48 = vsel %vm110_vm0, 0.0, %v139_v46 }
  0x9e   :  { %v157_v49 = vsel %vm116_vm2, %v155_v47, 0.0  ;;  %v154_v50 = vsel %vm113_vm1, %v152_v48, 0.0  ;;  %v365_v48 = vstv %s2129_s16  ;;  %s2155_s16 = sld [smem:[#allocation7 + $0x13]] }
  0x9f   :  { %v156_v51 = vsel %vm116_vm2, %v154_v50, 0.0 }
  0xa0   :  { %v105_v52 = vpop.permute.xlu1 %104  ;;  %v97_v53 = vpop.permute.xlu0 %96 }
  0xa1   :  { %v111_v54 = vsel %vm110_vm0, 0.0, %v97_v53 }
  0xa2   :  { %v114_v55 = vsel %vm113_vm1, %v111_v54, 0.0 }
  0xa3   :  { %v117_v56 = vsel %vm116_vm2, %v114_v55, 0.0 }
  0xa4   :  { %v107_v57 = vpop.permute.xlu1 %106  ;;  %v99_v58 = vpop.permute.xlu0 %98  ;;  %v120_v59 = vsel %vm119_vm3, %v117_v56, %v105_v52 }
  0xa5   :  { %v112_v60 = vsel %vm110_vm0, 0.0, %v99_v58  ;;  %v123_v61 = vsel %vm122_vm4, %v120_v59, 0.0  ;;  %v386_v59 = vstv %s2130_s18  ;;  %s2156_s18 = sld [smem:[#allocation7 + $0x1a]] }
  0xa6   :  { %v115_v62 = vsel %vm113_vm1, %v112_v60, 0.0  ;;  %v128_v63 = vrot.slane %v123_v61, 5 }
  0xa7   :  { %v118_v1 = vsel %vm116_vm2, %v115_v62, 0.0 }
  0xa8   :  { %v149_v2 = vpop.permute.xlu1 %148  ;;  %v121_v3 = vsel %vm119_vm3, %v118_v1, %v107_v57  ;;  %v2377_v4 = vsel %vm127_vm5, 0.0, %v128_v63  ;;  %v147_v5 = vpop.permute.xlu0 %146 }
  0xa9   :  { %v124_v6 = vsel %vm122_vm4, %v121_v3, 0.0  ;;  %v159_v7 = vsel %vm119_vm3, %v157_v49, %v149_v2  ;;  %v158_v8 = vsel %vm119_vm3, %v156_v51, %v147_v5  ;;  %v289_v9 = vmul.f32 %v288_v0, %v2377_v4 }
  0xaa   :  { %v129_v10 = vrot.slane %v124_v6, 5  ;;  %v2384_v11 = vsel %vm122_vm4, %v159_v7, 0.0  ;;  %v2387_v12 = vsel %vm122_vm4, %v158_v8, 0.0  ;;  %v429_v18 = vmul.f32 %v428_v13, %v2377_v4 }
  0xab   :  { %v165_v14 = vrot.slane %v2384_v11, 5  ;;  %v164_v15 = vrot.slane %v2387_v12, 5  ;;  %293 = vrot.lane.b32.xlu0 %v289_v9, %s2308_s8  ;;  %v569_v21 = vmul.f32 %v568_v20, %v2377_v4  ;;  %v709_v24 = vmul.f32 %v708_v23, %v2377_v4 }
  0xac   :  { %v2396_v16 = vsel %vm127_vm5, %v128_v63, %v129_v10  ;;  %v2422_v29 = vsel %vm127_vm5, %v129_v10, 0.0  ;;  %v303_v30 = vmul.f32 %v302_v26, %v2377_v4  ;;  %v849_v31 = vmul.f32 %v848_v27, %v2377_v4 }
  0xad   :  { %v2403_v17 = vsel %vm127_vm5, %v164_v15, %v165_v14  ;;  %v290_v19 = vmul.f32 %v288_v0, %v2396_v16  ;;  %v430_v22 = vmul.f32 %v428_v13, %v2396_v16  ;;  %v570_v25 = vmul.f32 %v568_v20, %v2396_v16 }
  0xae   :  { %v304_v28 = vmul.f32 %v302_v26, %v2396_v16  ;;  %v710_v32 = vmul.f32 %v708_v23, %v2396_v16  ;;  %v325_v35 = vmul.f32 %v323_v33, %v2396_v16  ;;  %v305_v36 = vmul.f32 %v302_v26, %v2422_v29 }
  0xaf   :  { %433 = vrot.lane.b32.xlu0 %v429_v18, %s2309_s11  ;;  %295 = vrot.lane.b32.xlu1 %v290_v19, %s2308_s8  ;;  %v309_v37 = vrot.slane %v303_v30, 1  ;;  %v324_v38 = vmul.f32 %v323_v33, %v2377_v4  ;;  %v850_v40 = vmul.f32 %v848_v27, %v2396_v16  ;;  %v346_v41 = vmul.f32 %v344_v39, %v2396_v16 }
  0xb0   :  { %v310_v34 = vrot.slane %v304_v28, 1  ;;  %v331_v43 = vrot.slane %v325_v35, 2  ;;  %v312_v44 = vrot.slane %v305_v36, 1  ;;  %v326_v45 = vmul.f32 %v323_v33, %v2422_v29 }
  0xb1   :  { %v345_v46 = vmul.f32 %v344_v39, %v2377_v4  ;;  %v330_v47 = vrot.slane %v324_v38, 2  ;;  %v352_v49 = vrot.slane %v346_v41, 3  ;;  %v367_v50 = vmul.f32 %v365_v48, %v2396_v16 }
  0xb2   :  { %v311_v42 = vsel %vm188_vm6, %v309_v37, %v310_v34  ;;  %v313_v52 = vsel %vm188_vm6, %v310_v34, %v312_v44  ;;  %v333_v53 = vrot.slane %v326_v45, 2  ;;  %v347_v54 = vmul.f32 %v344_v39, %v2422_v29 }
  0xb3   :  { %573 = vrot.lane.b32.xlu0 %v569_v21, %s2310_s13  ;;  %435 = vrot.lane.b32.xlu1 %v430_v22, %s2309_s11  ;;  %v332_v51 = vsel %vm206_vm7, %v330_v47, %v331_v43  ;;  %v351_v55 = vrot.slane %v345_v46, 3  ;;  %v366_v56 = vmul.f32 %v365_v48, %v2377_v4  ;;  %v373_v58 = vrot.slane %v367_v50, 4 }
  0xb4   :  { %v334_v60 = vsel %vm206_vm7, %v331_v43, %v333_v53  ;;  %v354_v61 = vrot.slane %v347_v54, 3  ;;  %v388_v62 = vmul.f32 %v386_v59, %v2396_v16  ;;  %v368_v63 = vmul.f32 %v365_v48, %v2422_v29 }
  0xb5   :  { %v353_v57 = vsel %vm224_vm8, %v351_v55, %v352_v49  ;;  %v372_v0 = vrot.slane %v366_v56, 4  ;;  %v387_v1 = vmul.f32 %v386_v59, %v2377_v4  ;;  %v407_v2 = vstv %s2131_s19  ;;  %s2157_s19 = sld [smem:[#allocation7 + $0x21]] }
  0xb6   :  { %v409_v5 = vmul.f32 %v407_v2, %v2396_v16  ;;  %v355_v6 = vsel %vm224_vm8, %v352_v49, %v354_v61  ;;  %v394_v7 = vrot.slane %v388_v62, 5  ;;  %v375_v8 = vrot.slane %v368_v63, 4 }
  0xb7   :  { %713 = vrot.lane.b32.xlu0 %v709_v24, %s2311_s15  ;;  %575 = vrot.lane.b32.xlu1 %v570_v25, %s2310_s13  ;;  %v374_v3 = vsel %vm242_vm9, %v372_v0, %v373_v58  ;;  %v389_v9 = vmul.f32 %v386_v59, %v2422_v29  ;;  %v408_v10 = vmul.f32 %v407_v2, %v2377_v4  ;;  %v393_v13 = vrot.slane %v387_v1, 5 }
  0xb8   :  { %v442_v18 = vstv %s2133_s20  ;;  %v415_v19 = vrot.slane %v409_v5, 6  ;;  %v376_v22 = vsel %vm242_vm9, %v373_v58, %v375_v8  ;;  %v410_v24 = vmul.f32 %v407_v2, %v2422_v29  ;;  %s2158_s20 = sld [smem:[#allocation7 + $0x28]] }
  0xb9   :  { %v444_v20 = vmul.f32 %v442_v18, %v2396_v16  ;;  %v395_v21 = vsel %vm127_vm5, %v393_v13, %v394_v7  ;;  %v396_v23 = vrot.slane %v389_v9, 5  ;;  %v414_v25 = vrot.slane %v408_v10, 6 }
  0xba   :  { %v443_v26 = vmul.f32 %v442_v18, %v2377_v4  ;;  %v463_v30 = vstv %s2134_s21  ;;  %v445_v34 = vmul.f32 %v442_v18, %v2422_v29  ;;  %v484_v37 = vstv %s2135_s22  ;;  %s2617_s21 = sld [smem:[#allocation7 + $0x2f]]  ;;  %s2624_s22 = sld [smem:[#allocation7]] }
  0xbb   :  { %853 = vrot.lane.b32.xlu0 %v849_v31, %s2312_s17  ;;  %715 = vrot.lane.b32.xlu1 %v710_v32, %s2311_s15  ;;  %v416_v27 = vsel %vm277_vm10, %v414_v25, %v415_v19  ;;  %v450_v28 = vrot.slane %v444_v20, 1  ;;  %v397_v31 = vsel %vm127_vm5, %v394_v7, %v396_v23  ;;  %v417_v32 = vrot.slane %v410_v24, 6 }
  0xbc   :  { %v465_v33 = vmul.f32 %v463_v30, %v2396_v16  ;;  %v449_v35 = vrot.slane %v443_v26, 1  ;;  %v464_v36 = vmul.f32 %v463_v30, %v2377_v4  ;;  %v486_v39 = vmul.f32 %v484_v37, %v2396_v16 }
  0xbd   :  { %v466_v43 = vmul.f32 %v463_v30, %v2422_v29  ;;  %v485_v44 = vmul.f32 %v484_v37, %v2377_v4  ;;  %v505_v46 = vstv %s2136_s23  ;;  %v547_v0 = vstv %s2138_s26  ;;  %s2631_s23 = sld [smem:[#allocation7 + $0x7]]  ;;  %s2638_s26 = sld [smem:[#allocation7 + $0x15]] }
  0xbe   :  { %v451_v38 = vsel %vm188_vm6, %v449_v35, %v450_v28  ;;  %v471_v41 = vrot.slane %v465_v33, 2  ;;  %v470_v45 = vrot.slane %v464_v36, 2  ;;  %v492_v47 = vrot.slane %v486_v39, 3 }
  0xbf   :  { %314 = vrot.lane.b32.xlu0 %v311_v42, %s2308_s8  ;;  %855 = vrot.lane.b32.xlu1 %v850_v40, %s2312_s17  ;;  %v418_v40 = vsel %vm277_vm10, %v415_v19, %v417_v32  ;;  %v452_v42 = vrot.slane %v445_v34, 1  ;;  %v507_v48 = vmul.f32 %v505_v46, %v2396_v16  ;;  %v491_v53 = vrot.slane %v485_v44, 3 }
  0xc0   :  { %v472_v49 = vsel %vm206_vm7, %v470_v45, %v471_v41  ;;  %v506_v54 = vmul.f32 %v505_v46, %v2377_v4  ;;  %v508_v61 = vmul.f32 %v505_v46, %v2422_v29  ;;  %v549_v2 = vmul.f32 %v547_v0, %v2396_v16 }
  0xc1   :  { %v453_v50 = vsel %vm188_vm6, %v450_v28, %v452_v42  ;;  %v493_v55 = vsel %vm224_vm8, %v491_v53, %v492_v47  ;;  %v513_v56 = vrot.slane %v507_v48, 4  ;;  %v548_v8 = vmul.f32 %v547_v0, %v2377_v4 }
  0xc2   :  { %v512_v62 = vrot.slane %v506_v54, 4  ;;  %v582_v10 = vstv %s2140_s27  ;;  %v555_v13 = vrot.slane %v549_v2, 6  ;;  %v624_v35 = vstv %s2142_s29  ;;  %s2640_s27 = sld [smem:[#allocation7 + $0x1c]]  ;;  %s2647_s29 = sld [smem:[#allocation7 + $0x2a]] }
  0xc3   :  { %335 = vrot.lane.b32.xlu0 %v332_v51, %s2308_s8  ;;  %316 = vrot.lane.b32.xlu1 %v313_v52, %s2308_s8  ;;  %v473_v51 = vrot.slane %v466_v43, 2  ;;  %v487_v52 = vmul.f32 %v484_v37, %v2422_v29  ;;  %v584_v18 = vmul.f32 %v582_v10, %v2396_v16  ;;  %v554_v23 = vrot.slane %v548_v8, 6 }
  0xc4   :  { %v514_v1 = vsel %vm242_vm9, %v512_v62, %v513_v56  ;;  %v583_v24 = vmul.f32 %v582_v10, %v2377_v4  ;;  %v585_v32 = vmul.f32 %v582_v10, %v2422_v29  ;;  %v626_v37 = vmul.f32 %v624_v35, %v2396_v16 }
  0xc5   :  { %v474_v58 = vsel %vm206_vm7, %v471_v41, %v473_v51  ;;  %v494_v59 = vrot.slane %v487_v52, 3  ;;  %v556_v25 = vsel %vm277_vm10, %v554_v23, %v555_v13  ;;  %v590_v26 = vrot.slane %v584_v18, 1 }
  0xc6   :  { %v589_v33 = vrot.slane %v583_v24, 1  ;;  %v625_v42 = vmul.f32 %v624_v35, %v2377_v4  ;;  %v645_v44 = vstv %s2143_s0  ;;  %v632_v45 = vrot.slane %v626_v37, 3  ;;  %s2655_s0 = sld [smem:[#allocation7 + $0x6]] }
  0xc7   :  { %356 = vrot.lane.b32.xlu0 %v353_v57, %s2308_s8  ;;  %337 = vrot.lane.b32.xlu1 %v334_v60, %s2308_s8  ;;  %v526_v57 = vstv %s2137_s24  ;;  %v647_v46 = vmul.f32 %v645_v44, %v2396_v16  ;;  %v646_v52 = vmul.f32 %v645_v44, %v2377_v4  ;;  %v687_v62 = vstv %s2145_s4  ;;  %s2633_s24 = sld [smem:[#allocation7 + $0xe]]  ;;  %s2664_s4 = sld [smem:[#allocation7 + $0x14]] }
  0xc8   :  { %v528_v60 = vmul.f32 %v526_v57, %v2396_v16  ;;  %v527_v63 = vmul.f32 %v526_v57, %v2377_v4  ;;  %v529_v7 = vmul.f32 %v526_v57, %v2422_v29  ;;  %v591_v36 = vsel %vm188_vm6, %v589_v33, %v590_v26 }
  0xc9   :  { %v631_v51 = vrot.slane %v625_v42, 3  ;;  %v653_v54 = vrot.slane %v647_v46, 4  ;;  %v722_v8 = vstv %s2147_s5  ;;  %v764_v33 = vstv %s2149_s7  ;;  %s2666_s5 = sld [smem:[#allocation7 + $0x1b]]  ;;  %s2671_s7 = sld [smem:[#allocation7 + $0x29]] }
  0xca   :  { %v534_v5 = vrot.slane %v528_v60, 5  ;;  %v533_v9 = vrot.slane %v527_v63, 5  ;;  %v652_v60 = vrot.slane %v646_v52, 4  ;;  %v724_v10 = vmul.f32 %v722_v8, %v2396_v16 }
  0xcb   :  { %377 = vrot.lane.b32.xlu0 %v374_v3, %s2308_s8  ;;  %358 = vrot.lane.b32.xlu1 %v355_v6, %s2308_s8  ;;  %v495_v3 = vsel %vm224_vm8, %v492_v47, %v494_v59  ;;  %v515_v6 = vrot.slane %v508_v61, 4  ;;  %v633_v53 = vsel %vm224_vm8, %v631_v51, %v632_v45  ;;  %v648_v59 = vmul.f32 %v645_v44, %v2422_v29 }
  0xcc   :  { %v535_v19 = vsel %vm127_vm5, %v533_v9, %v534_v5  ;;  %v654_v63 = vsel %vm242_vm9, %v652_v60, %v653_v54  ;;  %v730_v24 = vrot.slane %v724_v10, 1  ;;  %v785_v42 = vstv %s2150_s9  ;;  %s2679_s9 = sld [smem:[#allocation7 + $0x30]] }
  0xcd   :  { %v516_v20 = vsel %vm242_vm9, %v513_v56, %v515_v6  ;;  %v688_v6 = vmul.f32 %v687_v62, %v2377_v4  ;;  %v787_v44 = vmul.f32 %v785_v42, %v2396_v16  ;;  %v827_v60 = vstv %s2152_s12  ;;  %s3151_s12 = sld [smem:[#allocation7 + $0x50]] }
  0xcf   :  { %398 = vrot.lane.b32.xlu0 %v395_v21, %s2308_s8  ;;  %379 = vrot.lane.b32.xlu1 %v376_v22, %s2308_s8  ;;  %v536_v21 = vrot.slane %v529_v7, 5  ;;  %v550_v22 = vmul.f32 %v547_v0, %v2422_v29  ;;  %v689_v0 = vmul.f32 %v687_v62, %v2396_v16  ;;  %v793_v52 = vrot.slane %v787_v44, 4 }
  0xd1   :  { %v537_v28 = vsel %vm127_vm5, %v534_v5, %v536_v21  ;;  %v557_v30 = vrot.slane %v550_v22, 6  ;;  %v695_v9 = vrot.slane %v689_v0, 6  ;;  %v694_v21 = vrot.slane %v688_v6, 6 }
  0xd2   :  { %v723_v22 = vmul.f32 %v722_v8, %v2377_v4  ;;  %v862_v6 = vstv %s2154_s14  ;;  %s3156_s14 = sld [smem:[#allocation7 + $0x57]] }
  0xd3   :  { %419 = vrot.lane.b32.xlu0 %v416_v27, %s2308_s8  ;;  %400 = vrot.lane.b32.xlu1 %v397_v31, %s2308_s8  ;;  %v603_v27 = vstv %s2141_s28  ;;  %v696_v23 = vsel %vm277_vm10, %v694_v21, %v695_v9  ;;  %v883_v21 = vstv %s2155_s16  ;;  %s2645_s28 = sld [smem:[#allocation7 + $0x23]]  ;;  %s2691_s16 = sld [smem:[#allocation7 + $0x39]] }
  0xd4   :  { %v605_v31 = vmul.f32 %v603_v27, %v2396_v16  ;;  %v604_v34 = vmul.f32 %v603_v27, %v2377_v4  ;;  %v606_v41 = vmul.f32 %v603_v27, %v2422_v29 }
  0xd6   :  { %v611_v39 = vrot.slane %v605_v31, 2  ;;  %v610_v43 = vrot.slane %v604_v34, 2  ;;  %v729_v31 = vrot.slane %v723_v22, 1 }
  0xd7   :  { %454 = vrot.lane.b32.xlu0 %v451_v38, %s2309_s11  ;;  %421 = vrot.lane.b32.xlu1 %v418_v40, %s2308_s8  ;;  %v558_v38 = vsel %vm277_vm10, %v555_v13, %v557_v30  ;;  %v592_v40 = vrot.slane %v585_v32, 1  ;;  %v725_v30 = vmul.f32 %v722_v8, %v2422_v29  ;;  %v864_v8 = vmul.f32 %v862_v6, %v2396_v16 }
  0xd8   :  { %v612_v47 = vsel %vm206_vm7, %v610_v43, %v611_v39  ;;  %v731_v34 = vsel %vm188_vm6, %v729_v31, %v730_v24 }
  0xd9   :  { %v593_v48 = vsel %vm188_vm6, %v590_v26, %v592_v40  ;;  %v765_v40 = vmul.f32 %v764_v33, %v2377_v4  ;;  %v870_v22 = vrot.slane %v864_v8, 1 }
  0xdb   :  { %475 = vrot.lane.b32.xlu0 %v472_v49, %s2309_s11  ;;  %456 = vrot.lane.b32.xlu1 %v453_v50, %s2309_s11  ;;  %v613_v49 = vrot.slane %v606_v41, 2  ;;  %v627_v50 = vmul.f32 %v624_v35, %v2422_v29  ;;  %v766_v35 = vmul.f32 %v764_v33, %v2396_v16 }
  0xdd   :  { %v614_v56 = vsel %vm206_vm7, %v611_v39, %v613_v49  ;;  %v634_v57 = vrot.slane %v627_v50, 3  ;;  %v772_v43 = vrot.slane %v766_v35, 3  ;;  %v771_v49 = vrot.slane %v765_v40, 3 }
  0xde   :  { %v786_v50 = vmul.f32 %v785_v42, %v2377_v4 }
  0xdf   :  { %496 = vrot.lane.b32.xlu0 %v493_v55, %s2309_s11  ;;  %477 = vrot.lane.b32.xlu1 %v474_v58, %s2309_s11  ;;  %v666_v55 = vstv %s2144_s30  ;;  %v773_v51 = vsel %vm224_vm8, %v771_v49, %v772_v43  ;;  %s2657_s30 = sld [smem:[#allocation7 + $0xd]] }
  0xe0   :  { %v668_v58 = vmul.f32 %v666_v55, %v2396_v16  ;;  %v667_v61 = vmul.f32 %v666_v55, %v2377_v4  ;;  %v669_v5 = vmul.f32 %v666_v55, %v2422_v29 }
  0xe2   :  { %v674_v2 = vrot.slane %v668_v58, 5  ;;  %v673_v7 = vrot.slane %v667_v61, 5  ;;  %v792_v58 = vrot.slane %v786_v50, 4 }
  0xe3   :  { %517 = vrot.lane.b32.xlu0 %v514_v1, %s2309_s11  ;;  %498 = vrot.lane.b32.xlu1 %v495_v3, %s2309_s11  ;;  %v635_v1 = vsel %vm224_vm8, %v632_v45, %v634_v57  ;;  %v655_v3 = vrot.slane %v648_v59, 4  ;;  %v788_v57 = vmul.f32 %v785_v42, %v2422_v29 }
  0xe4   :  { %v675_v13 = vsel %vm127_vm5, %v673_v7, %v674_v2  ;;  %v794_v61 = vsel %vm242_vm9, %v792_v58, %v793_v52 }
  0xe5   :  { %v656_v18 = vsel %vm242_vm9, %v653_v54, %v655_v3 }
  0xe7   :  { %538 = vrot.lane.b32.xlu0 %v535_v19, %s2309_s11  ;;  %519 = vrot.lane.b32.xlu1 %v516_v20, %s2309_s11  ;;  %v676_v19 = vrot.slane %v669_v5, 5  ;;  %v690_v20 = vmul.f32 %v687_v62, %v2422_v29  ;;  %v829_v62 = vmul.f32 %v827_v60, %v2396_v16  ;;  %v828_v5 = vmul.f32 %v827_v60, %v2377_v4 }
  0xe9   :  { %v677_v26 = vsel %vm127_vm5, %v674_v2, %v676_v19  ;;  %v697_v27 = vrot.slane %v690_v20, 6  ;;  %v835_v7 = vrot.slane %v829_v62, 6  ;;  %v863_v19 = vmul.f32 %v862_v6, %v2377_v4 }
  0xea   :  { %v834_v20 = vrot.slane %v828_v5, 6 }
  0xeb   :  { %559 = vrot.lane.b32.xlu0 %v556_v25, %s2309_s11  ;;  %540 = vrot.lane.b32.xlu1 %v537_v28, %s2309_s11  ;;  %v743_v25 = vstv %s2148_s6  ;;  %s2669_s6 = sld [smem:[#allocation7 + $0x22]] }
  0xec   :  { %v745_v28 = vmul.f32 %v743_v25, %v2396_v16  ;;  %v744_v32 = vmul.f32 %v743_v25, %v2377_v4  ;;  %v746_v39 = vmul.f32 %v743_v25, %v2422_v29 }
  0xee   :  { %v751_v37 = vrot.slane %v745_v28, 2  ;;  %v750_v41 = vrot.slane %v744_v32, 2  ;;  %v869_v28 = vrot.slane %v863_v19, 1 }
  0xef   :  { %594 = vrot.lane.b32.xlu0 %v591_v36, %s2310_s13  ;;  %561 = vrot.lane.b32.xlu1 %v558_v38, %s2309_s11  ;;  %v698_v36 = vsel %vm277_vm10, %v695_v9, %v697_v27  ;;  %v732_v38 = vrot.slane %v725_v30, 1  ;;  %v865_v27 = vmul.f32 %v862_v6, %v2422_v29  ;;  %v884_v30 = vmul.f32 %v883_v21, %v2377_v4 }
  0xf0   :  { %v752_v45 = vsel %vm206_vm7, %v750_v41, %v751_v37  ;;  %v871_v32 = vsel %vm188_vm6, %v869_v28, %v870_v22  ;;  %v925_v41 = vstv %s2157_s19  ;;  %v2697_v28 = vstv %s2638_s26  ;;  %s2921_s26 = sld [smem:[#allocation7 + $0x55]] }
  0xf1   :  { %v733_v46 = vsel %vm188_vm6, %v730_v24, %v732_v38  ;;  %v836_v24 = vsel %vm277_vm10, %v834_v20, %v835_v7  ;;  %v886_v38 = vmul.f32 %v883_v21, %v2422_v29  ;;  %v926_v50 = vmul.f32 %v925_v41, %v2377_v4  ;;  %s3203_s19 = sld [smem:[#allocation7 + $0x35]] }
  0xf3   :  { %615 = vrot.lane.b32.xlu0 %v612_v47, %s2310_s13  ;;  %596 = vrot.lane.b32.xlu1 %v593_v48, %s2310_s13  ;;  %v753_v47 = vrot.slane %v746_v39, 2  ;;  %v767_v48 = vmul.f32 %v764_v33, %v2422_v29  ;;  %v890_v39 = vrot.slane %v884_v30, 2  ;;  %v2700_v30 = vstv %s2640_s27  ;;  %s2942_s27 = sld [smem:[#allocation7 + $0x5c]] }
  0xf5   :  { %v754_v54 = vsel %vm206_vm7, %v751_v37, %v753_v47  ;;  %v774_v55 = vrot.slane %v767_v48, 3  ;;  %v893_v48 = vrot.slane %v886_v38, 2  ;;  %v1002_v38 = vstv %s2657_s30  ;;  %s3016_s30 = sld [smem:[#allocation7 + $0x48]] }
  0xf7   :  { %636 = vrot.lane.b32.xlu0 %v633_v53, %s2310_s13  ;;  %617 = vrot.lane.b32.xlu1 %v614_v56, %s2310_s13  ;;  %v806_v53 = vstv %s2151_s10  ;;  %s2683_s10 = sld [smem:[#allocation7 + $0x32]] }
  0xf8   :  { %v808_v56 = vmul.f32 %v806_v53, %v2396_v16  ;;  %v807_v59 = vmul.f32 %v806_v53, %v2377_v4  ;;  %v809_v2 = vmul.f32 %v806_v53, %v2422_v29 }
  0xfa   :  { %v814_v0 = vrot.slane %v808_v56, 5  ;;  %v813_v3 = vrot.slane %v807_v59, 5 }
  0xfb   :  { %657 = vrot.lane.b32.xlu0 %v654_v63, %s2310_s13  ;;  %638 = vrot.lane.b32.xlu1 %v635_v1, %s2310_s13  ;;  %v775_v63 = vsel %vm224_vm8, %v772_v43, %v774_v55  ;;  %v795_v1 = vrot.slane %v788_v57, 4 }
  0xfc   :  { %v815_v9 = vsel %vm127_vm5, %v813_v3, %v814_v0  ;;  %v967_v3 = vstv %s2617_s21  ;;  %s3226_s21 = sld [smem:[#allocation7 + $0x4a]] }
  0xfd   :  { %v796_v10 = vsel %vm242_vm9, %v793_v52, %v795_v1  ;;  %v946_v52 = vstv %s2158_s20  ;;  %s3220_s20 = sld [smem:[#allocation7 + $0x43]] }
  0xfe   :  { %v948_v56 = vmul.f32 %v946_v52, %v2396_v16  ;;  %v947_v62 = vmul.f32 %v946_v52, %v2377_v4  ;;  %v949_v8 = vmul.f32 %v946_v52, %v2422_v29 }
  0xff   :  { %678 = vrot.lane.b32.xlu0 %v675_v13, %s2310_s13  ;;  %659 = vrot.lane.b32.xlu1 %v656_v18, %s2310_s13  ;;  %v816_v13 = vrot.slane %v809_v2, 5  ;;  %v830_v18 = vmul.f32 %v827_v60, %v2422_v29  ;;  %v928_v60 = vmul.f32 %v925_v41, %v2422_v29 }
 0x100   :  { %v954_v2 = vrot.slane %v948_v56, 5 }
 0x101   :  { %v817_v25 = vsel %vm127_vm5, %v814_v0, %v816_v13  ;;  %v935_v6 = vrot.slane %v928_v60, 4  ;;  %v175_v13 = vstv %s2624_s22  ;;  %s3238_s22 = sld [smem:[#allocation7 + $0x51]] }
 0x103   :  { %699 = vrot.lane.b32.xlu0 %v696_v23, %s2310_s13  ;;  %680 = vrot.lane.b32.xlu1 %v677_v26, %s2310_s13  ;;  %v885_v23 = vmul.f32 %v883_v21, %v2396_v16  ;;  %v837_v26 = vrot.slane %v830_v18, 6 }
 0x105   :  { %v891_v33 = vrot.slane %v885_v23, 2  ;;  %v838_v35 = vsel %vm277_vm10, %v835_v7, %v837_v26  ;;  %v969_v7 = vmul.f32 %v967_v3, %v2396_v16  ;;  %v956_v23 = vrot.slane %v949_v8, 5 }
 0x106   :  { %v181_v26 = vstv %s2631_s23  ;;  %s2874_s23 = sld [smem:[#allocation7 + $0x47]] }
 0x107   :  { %734 = vrot.lane.b32.xlu0 %v731_v34, %s2311_s15  ;;  %701 = vrot.lane.b32.xlu1 %v698_v36, %s2310_s13  ;;  %v904_v34 = vstv %s2156_s18  ;;  %v872_v36 = vrot.slane %v865_v27, 1  ;;  %v892_v44 = vsel %vm206_vm7, %v890_v39, %v891_v33  ;;  %v894_v58 = vsel %vm206_vm7, %v891_v33, %v893_v48  ;;  %s2313_s18 = smov 122  }
 0x108   :  { %v906_v37 = vmul.f32 %v904_v34, %v2396_v16  ;;  %v905_v40 = vmul.f32 %v904_v34, %v2377_v4  ;;  %v907_v49 = vmul.f32 %v904_v34, %v2422_v29  ;;  %v2694_v27 = vstv %s2633_s24  ;;  %s2897_s24 = sld [smem:[#allocation7 + $0x4e]] }
 0x109   :  { %v2703_v33 = vstv %s2645_s28  ;;  %v2706_v34 = vstv %s2647_s29  ;;  %v1003_v48 = vmul.f32 %v1002_v38, %v2377_v4  ;;  %v2768_v8 = vmul.f32 %v2694_v27, %v2396_v16  ;;  %s2989_s28 = sld [smem:[#allocation7 + $0x3a]]  ;;  %s3001_s29 = sld [smem:[#allocation7 + $0x33]] }
 0x10a   :  { %v912_v47 = vrot.slane %v906_v37, 3  ;;  %v914_v59 = vrot.slane %v907_v49, 3  ;;  %v988_v37 = vstv %s2655_s0  ;;  %v2726_v49 = vstv %s2669_s6  ;;  %s2183_s0 = sld [smem:[#allocation7 + $0x41]]  ;;  %s3059_s6 = sld [smem:[#allocation7 + $0x5d]] }
 0x10b   :  { %755 = vrot.lane.b32.xlu0 %v752_v45, %s2311_s15  ;;  %736 = vrot.lane.b32.xlu1 %v733_v46, %s2311_s15  ;;  %v927_v45 = vmul.f32 %v925_v41, %v2396_v16  ;;  %v873_v46 = vsel %vm188_vm6, %v870_v22, %v872_v36  ;;  %v975_v22 = vrot.slane %v969_v7, 6  ;;  %v989_v56 = vmul.f32 %v988_v37, %v2377_v4 }
 0x10c   :  { %v915_v5 = vsel %vm224_vm8, %v912_v47, %v914_v59 }
 0x10d   :  { %v933_v55 = vrot.slane %v927_v45, 4  ;;  %v1023_v45 = vstv %s2664_s4  ;;  %s3036_s4 = sld [smem:[#allocation7 + $0x4f]] }
 0x10f   :  { %776 = vrot.lane.b32.xlu0 %v773_v51, %s2311_s15  ;;  %757 = vrot.lane.b32.xlu1 %v754_v54, %s2311_s15  ;;  %v911_v51 = vrot.slane %v905_v40, 3  ;;  %v936_v21 = vsel %vm242_vm9, %v933_v55, %v935_v6  ;;  %v957_v40 = vsel %vm127_vm5, %v954_v2, %v956_v23  ;;  %v2760_v6 = vsel %vm127_vm5, 0.0, %v164_v15 }
 0x110   :  { %v990_v15 = vmul.f32 %v988_v37, %v2396_v16  ;;  %v208_v37 = vrot.slane %v2768_v8, 2 }
 0x111   :  { %v913_v57 = vsel %vm224_vm8, %v911_v51, %v912_v47  ;;  %v176_v47 = vmul.f32 %v175_v13, %v2377_v4  ;;  %v2732_v51 = vmul.f32 %v181_v26, %v2396_v16 }
 0x113   :  { %797 = vrot.lane.b32.xlu0 %v794_v61, %s2311_s15  ;;  %778 = vrot.lane.b32.xlu1 %v775_v63, %s2311_s15  ;;  %v932_v61 = vrot.slane %v926_v50, 4  ;;  %v2729_v50 = vstv %s2671_s7  ;;  %s3111_s7 = sld [smem:[#allocation7 + $0x34]] }
 0x115   :  { %v934_v1 = vsel %vm242_vm9, %v932_v61, %v933_v55  ;;  %v1005_v61 = vmul.f32 %v1002_v38, %v2422_v29 }
 0x117   :  { %818 = vrot.lane.b32.xlu0 %v815_v9, %s2311_s15  ;;  %799 = vrot.lane.b32.xlu1 %v796_v10, %s2311_s15  ;;  %v953_v9 = vrot.slane %v947_v62, 5  ;;  %v968_v10 = vmul.f32 %v967_v3, %v2377_v4  ;;  %v1236_v62 = vstv %s2683_s10  ;;  %s3122_s10 = sld [smem:[#allocation7 + $0x49]] }
 0x119   :  { %v955_v20 = vsel %vm127_vm5, %v953_v9, %v954_v2  ;;  %v200_v2 = vmul.f32 %v2694_v27, %v2377_v4  ;;  %v1009_v9 = vrot.slane %v1003_v48, 1 }
 0x11b   :  { %839 = vrot.lane.b32.xlu0 %v836_v24, %s2311_s15  ;;  %820 = vrot.lane.b32.xlu1 %v817_v25, %s2311_s15  ;;  %v970_v24 = vmul.f32 %v967_v3, %v2422_v29  ;;  %v173_v25 = vstv %s3641_s2  ;;  %v1024_v3 = vmul.f32 %v1023_v45, %v2377_v4  ;;  %s2848_s2 = sld [smem:[#allocation7 + $0x40]] }
 0x11c   :  { %v178_v7 = vadd.f32 %v176_v47, %v173_v25  ;;  %v177_v47 = vmul.f32 %v175_v13, %v2396_v16 }
 0x11d   :  { %v2602_v31 = vpop.permute.xlu0 %293  ;;  %v977_v41 = vrot.slane %v970_v24, 6  ;;  %v1012_v24 = vrot.slane %v1005_v61, 1  ;;  %v2802_v61 = vmul.f32 %v2726_v49, %v2396_v16 }
 0x11f   :  { %874 = vrot.lane.b32.xlu0 %v871_v32, %s2312_s17  ;;  %841 = vrot.lane.b32.xlu1 %v838_v35, %s2311_s15  ;;  %v974_v32 = vrot.slane %v968_v10, 6  ;;  %v978_v59 = vsel %vm277_vm10, %v975_v22, %v977_v41  ;;  %v190_v10 = vrot.slane %v2732_v51, 1  ;;  %v1030_v41 = vrot.slane %v1024_v3, 2 }
 0x121   :  { %v2611_v42 = vpop.permute.xlu1 %295  ;;  %v2613_v43 = vpop.permute.xlu0 %433  ;;  %v976_v39 = vsel %vm277_vm10, %v974_v32, %v975_v22 }
 0x123   :  { %895 = vrot.lane.b32.xlu0 %v892_v44, %s2312_s17  ;;  %876 = vrot.lane.b32.xlu1 %v873_v46, %s2312_s17  ;;  %v1004_v44 = vmul.f32 %v1002_v38, %v2396_v16  ;;  %v1044_v46 = vstv %s2666_s5  ;;  %v1026_v38 = vmul.f32 %v1023_v45, %v2422_v29  ;;  %s3038_s5 = sld [smem:[#allocation7 + $0x56]] }
 0x124   :  { %v1046_v32 = vmul.f32 %v1044_v46, %v2396_v16  ;;  %v1047_v13 = vmul.f32 %v1044_v46, %v2422_v29 }
 0x125   :  { %v2626_v53 = vpop.permute.xlu1 %435  ;;  %v2628_v54 = vpop.permute.xlu0 %573  ;;  %v1010_v60 = vrot.slane %v1004_v44, 1  ;;  %v2788_v44 = vmul.f32 %v2697_v28, %v2396_v16  ;;  %v1033_v3 = vrot.slane %v1026_v38, 2 }
 0x127   :  { %916 = vrot.lane.b32.xlu0 %v913_v57, %s2312_s17  ;;  %897 = vrot.lane.b32.xlu1 %v894_v58, %s2312_s17  ;;  %v2740_v57 = vmul.f32 %v1023_v45, %v2396_v16  ;;  %v2743_v58 = vstv %s2679_s9  ;;  %v1011_v23 = vsel %vm188_vm6, %v1009_v9, %v1010_v60  ;;  %v1045_v45 = vmul.f32 %v1044_v46, %v2377_v4  ;;  %s3119_s9 = sld [smem:[#allocation7 + $0x42]] }
 0x128   :  { %v2808_v9 = vmul.f32 %v2700_v30, %v2396_v16  ;;  %v179_v46 = vadd.f32 %v177_v47, %v173_v25  ;;  %v1054_v25 = vrot.slane %v1047_v13, 3 }
 0x129   :  { %v2649_v63 = vpop.permute.xlu1 %575  ;;  %v2651_v0 = vpop.permute.xlu0 %713  ;;  %v1031_v22 = vrot.slane %v2740_v57, 2 }
 0x12b   :  { %937 = vrot.lane.b32.xlu0 %v934_v1, %s2312_s17  ;;  %918 = vrot.lane.b32.xlu1 %v915_v5, %s2312_s17  ;;  %v182_v1 = vmul.f32 %v181_v26, %v2377_v4  ;;  %v2755_v5 = vstv %s2691_s16  ;;  %s3170_s16 = sld [smem:[#allocation7 + $0x5e]] }
 0x12d   :  { %v2674_v18 = vpop.permute.xlu1 %715  ;;  %v2676_v19 = vpop.permute.xlu0 %853 }
 0x12f   :  { %958 = vrot.lane.b32.xlu0 %v955_v20, %s2312_s17  ;;  %939 = vrot.lane.b32.xlu1 %v936_v21, %s2312_s17  ;;  %v184_v20 = vmul.f32 %v181_v26, %v2422_v29  ;;  %v218_v26 = vmul.f32 %v2697_v28, %v2377_v4 }
 0x131   :  { %v2708_v35 = vpop.permute.xlu1 %855  ;;  %v2710_v36 = vpop.permute.xlu0 %314  ;;  %v192_v51 = vrot.slane %v184_v20, 1  ;;  %v225_v8 = vrot.slane %v218_v26, 3  ;;  %v202_v20 = vmul.f32 %v2694_v27, %v2422_v29  ;;  %v1073_v26 = vrot.slane %v2802_v61, 4 }
 0x132   :  { %v244_v61 = vrot.slane %v2808_v9, 4  ;;  %v238_v9 = vmul.f32 %v2700_v30, %v2422_v29 }
 0x133   :  { %979 = vrot.lane.b32.xlu0 %v976_v39, %s2312_s17  ;;  %960 = vrot.lane.b32.xlu1 %v957_v40, %s2312_s17  ;;  %v189_v39 = vrot.slane %v182_v1, 1  ;;  %v207_v40 = vrot.slane %v200_v2, 2  ;;  %v1013_v1 = vsel %vm188_vm6, %v1010_v60, %v1012_v24  ;;  %v1052_v2 = vrot.slane %v1046_v32, 3 }
 0x134   :  { %v1051_v24 = vrot.slane %v1045_v45, 3  ;;  %v193_v27 = vsel %vm188_vm6, %v190_v10, %v192_v51  ;;  %v210_v47 = vrot.slane %v202_v20, 2 }
 0x135   :  { %v2734_v52 = vpop.permute.xlu1 %316  ;;  %v2736_v55 = vpop.permute.xlu0 %335  ;;  %v191_v48 = vsel %vm188_vm6, %v189_v39, %v190_v10  ;;  %v209_v32 = vsel %vm206_vm7, %v207_v40, %v208_v37  ;;  %v1068_v40 = vmul.f32 %v2726_v49, %v2422_v29  ;;  %v220_v10 = vmul.f32 %v2697_v28, %v2422_v29 }
 0x136   :  { %v196_v60 = vadd.f32 %v191_v48, %v178_v7  ;;  %v2830_v7 = vmul.f32 %v2729_v50, %v2396_v16  ;;  %v1087_v48 = vmul.f32 %v2729_v50, %v2377_v4 }
 0x137   :  { %993 = vrot.lane.b32.xlu0 %v989_v56, %s2313_s18  ;;  %981 = vrot.lane.b32.xlu1 %v978_v59, %s2312_s17  ;;  %v1032_v59 = vsel %vm206_vm7, %v1030_v41, %v1031_v22  ;;  %v1053_v41 = vsel %vm224_vm8, %v1051_v24, %v1052_v2  ;;  %v228_v24 = vrot.slane %v220_v10, 3 }
 0x138   :  { %v214_v51 = vadd.f32 %v209_v32, %v196_v60  ;;  %v1094_v20 = vrot.slane %v2830_v7, 5  ;;  %v1075_v60 = vrot.slane %v1068_v40, 4  ;;  %v211_v32 = vsel %vm206_vm7, %v208_v37, %v210_v47 }
 0x139   :  { %v2772_v21 = vpop.permute.xlu1 %337  ;;  %v2774_v12 = vpop.permute.xlu0 %356  ;;  %v254_v7 = vmul.f32 %v2703_v33, %v2377_v4  ;;  %v2879_v37 = vmul.f32 %v2706_v34, %v2396_v16 }
 0x13a   :  { %v1076_v10 = vsel %vm242_vm9, %v1073_v26, %v1075_v60 }
 0x13b   :  { %1014 = vrot.lane.b32.xlu0 %v1011_v23, %s2313_s18  ;;  %995 = vrot.lane.b32.xlu1 %v990_v15, %s2313_s18  ;;  %v1066_v15 = vmul.f32 %v2726_v49, %v2377_v4  ;;  %v226_v23 = vrot.slane %v2788_v44, 3  ;;  %v1034_v44 = vsel %vm206_vm7, %v1031_v22, %v1033_v3  ;;  %v236_v22 = vmul.f32 %v2700_v30, %v2377_v4 }
 0x13c   :  { %v197_v49 = vadd.f32 %v193_v27, %v179_v46  ;;  %v2861_v46 = vmul.f32 %v2743_v58, %v2396_v16  ;;  %v1093_v27 = vrot.slane %v1087_v48, 5  ;;  %v260_v60 = vrot.slane %v254_v7, 5 }
 0x13d   :  { %v2795_v56 = vpop.permute.xlu1 %358  ;;  %v2797_v57 = vpop.permute.xlu0 %377  ;;  %v1072_v45 = vrot.slane %v1066_v15, 4  ;;  %v227_v28 = vsel %vm224_vm8, %v225_v8, %v226_v23  ;;  %v1055_v15 = vsel %vm224_vm8, %v1052_v2, %v1054_v25  ;;  %v1089_v8 = vmul.f32 %v2729_v50, %v2422_v29 }
 0x13e   :  { %v232_v2 = vadd.f32 %v227_v28, %v214_v51  ;;  %v243_v50 = vrot.slane %v236_v22, 4  ;;  %v1095_v47 = vsel %vm127_vm5, %v1093_v27, %v1094_v20  ;;  %v1110_v51 = vmul.f32 %v2743_v58, %v2422_v29 }
 0x13f   :  { %1035 = vrot.lane.b32.xlu0 %v1032_v59, %s2313_s18  ;;  %1016 = vrot.lane.b32.xlu1 %v1013_v1, %s2313_s18  ;;  %v2846_v59 = vmul.f32 %v2703_v33, %v2396_v16  ;;  %v1074_v13 = vsel %vm242_vm9, %v1072_v45, %v1073_v26  ;;  %v1115_v45 = vrot.slane %v2861_v46, 6  ;;  %v1096_v48 = vrot.slane %v1089_v8, 5 }
 0x140   :  { %v245_v22 = vsel %vm242_vm9, %v243_v50, %v244_v61  ;;  %v256_v16 = vmul.f32 %v2703_v33, %v2422_v29  ;;  %v271_v33 = vmul.f32 %v2706_v34, %v2377_v4  ;;  %v1251_v8 = vmul.f32 %v2755_v5, %v2760_v6 }
 0x141   :  { %v2823_v38 = vpop.permute.xlu1 %379  ;;  %v2825_v39 = vpop.permute.xlu0 %398  ;;  %v261_v30 = vrot.slane %v2846_v59, 5  ;;  %v246_v59 = vrot.slane %v238_v9, 4  ;;  %v250_v28 = vadd.f32 %v245_v22, %v232_v2  ;;  %v1097_v9 = vsel %vm127_vm5, %v1094_v20, %v1096_v48 }
 0x142   :  { %v1117_v11 = vrot.slane %v1110_v51, 6  ;;  %v263_v27 = vrot.slane %v256_v16, 5  ;;  %v273_v20 = vmul.f32 %v2706_v34, %v2422_v29  ;;  %v278_v50 = vrot.slane %v271_v33, 6 }
 0x143   :  { %1056 = vrot.lane.b32.xlu0 %v1053_v41, %s2313_s18  ;;  %1037 = vrot.lane.b32.xlu1 %v1034_v44, %s2313_s18  ;;  %v215_v41 = vadd.f32 %v211_v32, %v197_v49  ;;  %v1108_v44 = vmul.f32 %v2743_v58, %v2377_v4  ;;  %v229_v49 = vsel %vm224_vm8, %v226_v23, %v228_v24  ;;  %v2902_v58 = vsel %vm127_vm5, %v165_v14, 0.0 }
 0x144   :  { %v1252_v14 = vmul.f32 %v2755_v5, %v2403_v17  ;;  %v262_v32 = vsel %vm127_vm5, %v260_v60, %v261_v30  ;;  %v279_v4 = vrot.slane %v2879_v37, 6  ;;  %v247_v2 = vsel %vm242_vm9, %v244_v61, %v246_v59 }
 0x145   :  { %v2852_v1 = vpop.permute.xlu1 %400  ;;  %v2854_v3 = vpop.permute.xlu0 %419  ;;  %v233_v26 = vadd.f32 %v229_v49, %v215_v41  ;;  %v267_v7 = vadd.f32 %v262_v32, %v250_v28  ;;  %v1237_v61 = vmul.f32 %v1236_v62, %v2760_v6  ;;  %v1257_v37 = vrot.slane %v1251_v8, 1 }
 0x146   :  { %v1118_v51 = vsel %vm277_vm10, %v1115_v45, %v1117_v11  ;;  %v1258_v22 = vrot.slane %v1252_v14, 1  ;;  %v1253_v34 = vmul.f32 %v2755_v5, %v2902_v58  ;;  %v280_v59 = vsel %vm277_vm10, %v278_v50, %v279_v4 }
 0x147   :  { %1077 = vrot.lane.b32.xlu0 %v1074_v13, %s2313_s18  ;;  %1058 = vrot.lane.b32.xlu1 %v1055_v15, %s2313_s18  ;;  %v1114_v13 = vrot.slane %v1108_v44, 6  ;;  %v1271_v15 = vstv %s2848_s2  ;;  %v251_v41 = vadd.f32 %v247_v2, %v233_v26  ;;  %v1292_v44 = vstv %s2874_s23  ;;  %s3246_s2 = sld [smem:[#allocation7 + $0x58]]  ;;  %s3263_s23 = sld [smem:[#allocation7 + $0x5f]] }
 0x148   :  { %v1272_v48 = vmul.f32 %v1271_v15, %v2760_v6  ;;  %v1273_v29 = vmul.f32 %v1271_v15, %v2403_v17  ;;  %v264_v16 = vsel %vm127_vm5, %v261_v30, %v263_v27  ;;  %v285_v49 = vadd.f32 %v280_v59, %v267_v7 }
 0x149   :  { %v2881_v25 = vpop.permute.xlu1 %421  ;;  %v2883_v40 = vpop.permute.xlu0 %454  ;;  %v1116_v24 = vsel %vm277_vm10, %v1114_v13, %v1115_v45  ;;  %v281_v28 = vrot.slane %v273_v20, 6  ;;  %v268_v45 = vadd.f32 %v264_v16, %v251_v41  ;;  %v1313_v26 = vstv %s2897_s24  ;;  %s3275_s24 = sld [smem:[#allocation7 + $0x38]] }
 0x14a   :  { %v1238_v5 = vmul.f32 %v1236_v62, %v2403_v17  ;;  %v1293_v30 = vmul.f32 %v1292_v44, %v2760_v6  ;;  %v1294_v33 = vmul.f32 %v1292_v44, %v2403_v17  ;;  %v1274_v8 = vmul.f32 %v1271_v15, %v2902_v58 }
 0x14b   :  { %1098 = vrot.lane.b32.xlu0 %v1095_v47, %s2313_s18  ;;  %1079 = vrot.lane.b32.xlu1 %v1076_v10, %s2313_s18  ;;  %v1279_v11 = vrot.slane %v1273_v29, 2  ;;  %v1260_v14 = vrot.slane %v1253_v34, 1  ;;  %v1334_v32 = vstv %s2921_s26  ;;  %v299_v27 = vadd.f32 %v2602_v31, %v285_v49  ;;  %s3281_s26 = sld [smem:[#allocation7 + $0x31]] }
 0x14c   :  { %v282_v62 = vsel %vm277_vm10, %v279_v4, %v281_v28  ;;  %v1314_v2 = vmul.f32 %v1313_v26, %v2760_v6  ;;  %v1315_v7 = vmul.f32 %v1313_v26, %v2403_v17  ;;  %v1299_v50 = vrot.slane %v1293_v30, 3 }
 0x14d   :  { %v2906_v23 = vpop.permute.xlu1 %456  ;;  %v2908_v46 = vpop.permute.xlu0 %475  ;;  %v286_v15 = vadd.f32 %v282_v62, %v268_v45  ;;  %v1261_v31 = vsel %vm188_vm6, %v1258_v22, %v1260_v14  ;;  %v1295_v4 = vmul.f32 %v1292_v44, %v2902_v58  ;;  %v1355_v29 = vstv %s2942_s27  ;;  %s3284_s27 = sld [smem:[#allocation7 + $0x3f]] }
 0x14e   :  { %v1320_v16 = vrot.slane %v1314_v2, 4  ;;  %v1321_v49 = vrot.slane %v1315_v7, 4  ;;  %v1335_v44 = vmul.f32 %v1334_v32, %v2760_v6  ;;  %v1337_v62 = vmul.f32 %v1334_v32, %v2902_v58 }
 0x14f   :  { %1119 = vrot.lane.b32.xlu0 %v1116_v24, %s2313_s18  ;;  %1100 = vrot.lane.b32.xlu1 %v1097_v9, %s2313_s18  ;;  %v1259_v24 = vsel %vm188_vm6, %v1257_v37, %v1258_v22  ;;  %v1278_v9 = vrot.slane %v1272_v48, 2  ;;  %v1281_v37 = vrot.slane %v1274_v8, 2  ;;  %v320_v48 = vadd.f32 %v2710_v36, %v299_v27 }
 0x150   :  { %v300_v34 = vadd.f32 %v2611_v42, %v286_v15  ;;  %v1341_v14 = vrot.slane %v1335_v44, 5  ;;  %v1357_v27 = vmul.f32 %v1355_v29, %v2403_v17 }
 0x151   :  { %v2926_v47 = vpop.permute.xlu1 %477  ;;  %v2928_v10 = vpop.permute.xlu0 %496  ;;  %v341_v59 = vadd.f32 %v2736_v55, %v320_v48  ;;  %v1282_v22 = vsel %vm206_vm7, %v1279_v11, %v1281_v37  ;;  %v1316_v55 = vmul.f32 %v1313_v26, %v2902_v58 }
 0x152   :  { %v321_v30 = vadd.f32 %v2734_v52, %v300_v34 }
 0x153   :  { %1121 = vrot.lane.b32.xlu1 %v1118_v51, %s2313_s18  ;;  %1241 = vrot.lane.b32.xlu0 %v1237_v61, %s2308_s8  ;;  %v1300_v61 = vrot.slane %v1294_v33, 3  ;;  %v1280_v51 = vsel %vm206_vm7, %v1278_v9, %v1279_v11  ;;  %v362_v42 = vadd.f32 %v2774_v12, %v341_v59  ;;  %v1302_v33 = vrot.slane %v1295_v4, 3 }
 0x154   :  { %v342_v8 = vadd.f32 %v2772_v21, %v321_v30  ;;  %v1322_v9 = vsel %vm242_vm9, %v1320_v16, %v1321_v49  ;;  %v1356_v11 = vmul.f32 %v1355_v29, %v2760_v6  ;;  %v1323_v7 = vrot.slane %v1316_v55, 4 }
 0x155   :  { %v2945_v13 = vpop.permute.xlu1 %498  ;;  %v2947_v60 = vpop.permute.xlu0 %517  ;;  %v1301_v45 = vsel %vm224_vm8, %v1299_v50, %v1300_v61  ;;  %v1303_v2 = vsel %vm224_vm8, %v1300_v61, %v1302_v33  ;;  %v1358_v61 = vmul.f32 %v1355_v29, %v2902_v58 }
 0x156   :  { %v363_v21 = vadd.f32 %v2795_v56, %v342_v8 }
 0x157   :  { %1262 = vrot.lane.b32.xlu0 %v1259_v24, %s2308_s8  ;;  %1243 = vrot.lane.b32.xlu1 %v1238_v5, %s2308_s8  ;;  %v1336_v5 = vmul.f32 %v1334_v32, %v2403_v17  ;;  %v383_v24 = vadd.f32 %v2797_v57, %v362_v42  ;;  %v1365_v16 = vrot.slane %v1358_v61, 6  ;;  %v1453_v61 = vstv %s3036_s4  ;;  %s3362_s4 = sld [smem:[#allocation7 + $0x36]] }
 0x158   :  { %v384_v15 = vadd.f32 %v2823_v38, %v363_v21  ;;  %v1344_v38 = vrot.slane %v1337_v62, 5 }
 0x159   :  { %v2963_v20 = vpop.permute.xlu1 %519  ;;  %v2965_v41 = vpop.permute.xlu0 %538  ;;  %v1342_v26 = vrot.slane %v1336_v5, 5  ;;  %v404_v57 = vadd.f32 %v2825_v39, %v383_v24  ;;  %v1362_v39 = vrot.slane %v1356_v11, 6 }
 0x15a   :  { %v405_v48 = vadd.f32 %v2852_v1, %v384_v15  ;;  %v1411_v1 = vstv %s2183_s0  ;;  %s3326_s0 = sld [smem:[#allocation7 + $0x5b]] }
 0x15b   :  { %1283 = vrot.lane.b32.xlu0 %v1280_v51, %s2308_s8  ;;  %1264 = vrot.lane.b32.xlu1 %v1261_v31, %s2308_s8  ;;  %v425_v50 = vadd.f32 %v2854_v3, %v404_v57  ;;  %v1343_v56 = vsel %vm127_vm5, %v1341_v14, %v1342_v26  ;;  %v1324_v51 = vsel %vm242_vm9, %v1321_v49, %v1323_v7  ;;  %v1363_v31 = vrot.slane %v1357_v27, 6 }
 0x15c   :  { %v1390_v3 = vstv %s2989_s28  ;;  %v426_v34 = vadd.f32 %v2881_v25, %v405_v48  ;;  %v1412_v8 = vmul.f32 %v1411_v1, %v2760_v6  ;;  %v1413_v24 = vmul.f32 %v1411_v1, %v2403_v17  ;;  %s3295_s28 = sld [smem:[#allocation7 + $0x4d]] }
 0x15d   :  { %v2976_v28 = vpop.permute.xlu1 %540  ;;  %v2978_v36 = vpop.permute.xlu0 %559  ;;  %v439_v4 = vadd.f32 %v2613_v43, %v425_v50  ;;  %v1364_v49 = vsel %vm277_vm10, %v1362_v39, %v1363_v31  ;;  %v1391_v44 = vmul.f32 %v1390_v3, %v2760_v6  ;;  %v1392_v5 = vmul.f32 %v1390_v3, %v2403_v17 }
 0x15e   :  { %v440_v43 = vadd.f32 %v2626_v53, %v426_v34  ;;  %v1393_v30 = vmul.f32 %v1390_v3, %v2902_v58  ;;  %v1366_v14 = vsel %vm277_vm10, %v1363_v31, %v1365_v16  ;;  %v1414_v57 = vmul.f32 %v1411_v1, %v2902_v58 }
 0x15f   :  { %1304 = vrot.lane.b32.xlu0 %v1301_v45, %s2308_s8  ;;  %1285 = vrot.lane.b32.xlu1 %v1282_v22, %s2308_s8  ;;  %v1376_v45 = vstv %s3001_s29  ;;  %v1345_v22 = vsel %vm127_vm5, %v1342_v26, %v1344_v38  ;;  %v460_v25 = vadd.f32 %v2883_v40, %v439_v4  ;;  %v1397_v53 = vrot.slane %v1391_v44, 1  ;;  %s3297_s29 = sld [smem:[#allocation7 + $0x54]] }
 0x160   :  { %v1377_v55 = vmul.f32 %v1376_v45, %v2760_v6  ;;  %v1398_v26 = vrot.slane %v1392_v5, 1  ;;  %v1378_v40 = vmul.f32 %v1376_v45, %v2403_v17  ;;  %v461_v27 = vadd.f32 %v2906_v23, %v440_v43 }
 0x161   :  { %v2995_v52 = vpop.permute.xlu1 %561  ;;  %v2997_v12 = vpop.permute.xlu0 %594  ;;  %v481_v11 = vadd.f32 %v2908_v46, %v460_v25  ;;  %v1400_v21 = vrot.slane %v1393_v30, 1  ;;  %v1418_v7 = vrot.slane %v1412_v8, 2  ;;  %v1419_v15 = vrot.slane %v1413_v24, 2 }
 0x162   :  { %v482_v23 = vadd.f32 %v2926_v47, %v461_v27  ;;  %v1399_v39 = vsel %vm188_vm6, %v1397_v53, %v1398_v26  ;;  %v1474_v48 = vstv %s3038_s5  ;;  %v1421_v34 = vrot.slane %v1414_v57, 2  ;;  %s3382_s5 = sld [smem:[#allocation7 + $0x44]] }
 0x163   :  { %1325 = vrot.lane.b32.xlu0 %v1322_v9, %s2308_s8  ;;  %1306 = vrot.lane.b32.xlu1 %v1303_v2, %s2308_s8  ;;  %v1432_v9 = vstv %s3016_s30  ;;  %v502_v62 = vadd.f32 %v2928_v10, %v481_v11  ;;  %v1401_v38 = vsel %vm188_vm6, %v1398_v26, %v1400_v21  ;;  %v1420_v4 = vsel %vm206_vm7, %v1418_v7, %v1419_v15  ;;  %s3341_s30 = sld [smem:[#allocation7 + $0x3d]] }
 0x164   :  { %v1433_v50 = vmul.f32 %v1432_v9, %v2760_v6  ;;  %v1435_v3 = vmul.f32 %v1432_v9, %v2902_v58  ;;  %v1456_v5 = vmul.f32 %v1453_v61, %v2902_v58  ;;  %v1495_v43 = vstv %s3059_s6  ;;  %s3400_s6 = sld [smem:[#allocation7 + $0x4b]] }
 0x165   :  { %v3010_v32 = vpop.permute.xlu1 %596  ;;  %v3012_v37 = vpop.permute.xlu0 %615  ;;  %v523_v10 = vadd.f32 %v2947_v60, %v502_v62  ;;  %v1476_v8 = vmul.f32 %v1474_v48, %v2403_v17  ;;  %v1477_v21 = vmul.f32 %v1474_v48, %v2902_v58 }
 0x166   :  { %v1439_v16 = vrot.slane %v1433_v50, 3  ;;  %v1442_v44 = vrot.slane %v1435_v3, 3  ;;  %v1463_v53 = vrot.slane %v1456_v5, 4 }
 0x167   :  { %1346 = vrot.lane.b32.xlu0 %v1343_v56, %s2308_s8  ;;  %1327 = vrot.lane.b32.xlu1 %v1324_v51, %s2308_s8  ;;  %v1434_v56 = vmul.f32 %v1432_v9, %v2403_v17  ;;  %v503_v51 = vadd.f32 %v2945_v13, %v482_v23  ;;  %v544_v31 = vadd.f32 %v2965_v41, %v523_v10  ;;  %v1482_v62 = vrot.slane %v1476_v8, 5 }
 0x168   :  { %v1454_v41 = vmul.f32 %v1453_v61, %v2760_v6 }
 0x169   :  { %v3025_v59 = vpop.permute.xlu1 %617  ;;  %v3027_v29 = vpop.permute.xlu0 %636  ;;  %v1440_v45 = vrot.slane %v1434_v56, 3  ;;  %v524_v1 = vadd.f32 %v2963_v20, %v503_v51  ;;  %v565_v13 = vadd.f32 %v2978_v36, %v544_v31  ;;  %v1422_v36 = vsel %vm206_vm7, %v1419_v15, %v1421_v34 }
 0x16a   :  { %v1460_v9 = vrot.slane %v1454_v41, 4  ;;  %v1497_v15 = vmul.f32 %v1495_v43, %v2403_v17 }
 0x16b   :  { %1367 = vrot.lane.b32.xlu0 %v1364_v49, %s2308_s8  ;;  %1348 = vrot.lane.b32.xlu1 %v1345_v22, %s2308_s8  ;;  %v1455_v49 = vmul.f32 %v1453_v61, %v2403_v17  ;;  %v545_v22 = vadd.f32 %v2976_v28, %v524_v1  ;;  %v1441_v30 = vsel %vm224_vm8, %v1439_v16, %v1440_v45 }
 0x16c   :  { %v579_v24 = vadd.f32 %v2628_v54, %v565_v13  ;;  %v1496_v54 = vmul.f32 %v1495_v43, %v2760_v6  ;;  %v1498_v61 = vmul.f32 %v1495_v43, %v2902_v58  ;;  %v1503_v31 = vrot.slane %v1497_v15, 6 }
 0x16d   :  { %v3043_v42 = vpop.permute.xlu1 %638  ;;  %v3045_v33 = vpop.permute.xlu0 %657  ;;  %v566_v28 = vadd.f32 %v2995_v52, %v545_v22  ;;  %v1461_v11 = vrot.slane %v1455_v49, 4  ;;  %v1614_v15 = vstv %s3156_s14  ;;  %s3553_s14 = sld [smem:[#allocation7 + $0x4c]] }
 0x16e   :  { %v600_v57 = vadd.f32 %v2997_v12, %v579_v24  ;;  %v1505_v16 = vrot.slane %v1498_v61, 6 }
 0x16f   :  { %1369 = vrot.lane.b32.xlu1 %v1366_v14, %s2308_s8  ;;  %1381 = vrot.lane.b32.xlu0 %v1377_v55, %s2309_s11  ;;  %s2189_s8 = sld [smem:[#allocation7 + $0x3b]]  ;;  %v1475_v55 = vmul.f32 %v1474_v48, %v2760_v6  ;;  %v1443_v14 = vsel %vm224_vm8, %v1440_v45, %v1442_v44  ;;  %v580_v52 = vadd.f32 %v2649_v63, %v566_v28  ;;  %v1572_v44 = vstv %s3122_s10  ;;  %s3534_s10 = sld [smem:[#allocation7 + $0x37]] }
 0x170   :  { %v1462_v7 = vsel %vm242_vm9, %v1460_v9, %v1461_v11  ;;  %v621_v50 = vadd.f32 %v3012_v37, %v600_v57  ;;  %v1464_v12 = vsel %vm242_vm9, %v1461_v11, %v1463_v53  ;;  %v1502_v37 = vrot.slane %v1496_v54, 6 }
 0x171   :  { %v3061_v46 = vpop.permute.xlu1 %659  ;;  %v3063_v2 = vpop.permute.xlu0 %678  ;;  %v1481_v27 = vrot.slane %v1475_v55, 5  ;;  %v601_v48 = vadd.f32 %v3010_v32, %v580_v52  ;;  %v1506_v5 = vsel %vm277_vm10, %v1503_v31, %v1505_v16 }
 0x172   :  { %v642_v51 = vadd.f32 %v3027_v29, %v621_v50  ;;  %v1516_v29 = vstv %s3111_s7  ;;  %v1504_v41 = vsel %vm277_vm10, %v1502_v37, %v1503_v31  ;;  %s3462_s7 = sld [smem:[#allocation7 + $0x59]] }
 0x173   :  { %1383 = vrot.lane.b32.xlu1 %v1378_v40, %s2309_s11  ;;  %1402 = vrot.lane.b32.xlu0 %v1399_v39, %s2309_s11  ;;  %v1483_v10 = vsel %vm127_vm5, %v1481_v27, %v1482_v62  ;;  %v1484_v39 = vrot.slane %v1477_v21, 5  ;;  %v1517_v43 = vmul.f32 %v1516_v29, %v2760_v6  ;;  %v1518_v9 = vmul.f32 %v1516_v29, %v2403_v17 }
 0x174   :  { %v663_v3 = vadd.f32 %v3045_v33, %v642_v51  ;;  %v1551_v33 = vstv %s3119_s9  ;;  %v1573_v27 = vmul.f32 %v1572_v44, %v2760_v6  ;;  %s3518_s9 = sld [smem:[#allocation7 + $0x3e]] }
 0x175   :  { %v3078_v47 = vpop.permute.xlu1 %680  ;;  %v3080_v60 = vpop.permute.xlu0 %699  ;;  %v1530_v56 = vstv %s2189_s8  ;;  %v1485_v32 = vsel %vm127_vm5, %v1482_v62, %v1484_v39  ;;  %v1554_v53 = vmul.f32 %v1551_v33, %v2902_v58  ;;  %v1574_v62 = vmul.f32 %v1572_v44, %v2403_v17  ;;  %s3437_s8 = sld [smem:[#allocation7 + $0x52]] }
 0x176   :  { %v1531_v45 = vmul.f32 %v1530_v56, %v2760_v6  ;;  %v684_v13 = vadd.f32 %v3063_v2, %v663_v3  ;;  %v1579_v39 = vrot.slane %v1573_v27, 3 }
 0x177   :  { %1404 = vrot.lane.b32.xlu1 %v1401_v38, %s2309_s11  ;;  %1423 = vrot.lane.b32.xlu0 %v1420_v4, %s2309_s11  ;;  %v622_v38 = vadd.f32 %v3025_v59, %v601_v48  ;;  %v1532_v59 = vmul.f32 %v1530_v56, %v2403_v17  ;;  %v1580_v61 = vrot.slane %v1574_v62, 3 }
 0x178   :  { %v705_v22 = vadd.f32 %v3080_v60, %v684_v13  ;;  %v1553_v60 = vmul.f32 %v1551_v33, %v2403_v17  ;;  %v1616_v13 = vmul.f32 %v1614_v15, %v2403_v17 }
 0x179   :  { %v3092_v25 = vpop.permute.xlu1 %701  ;;  %v3094_v20 = vpop.permute.xlu0 %734  ;;  %v643_v1 = vadd.f32 %v3043_v42, %v622_v38  ;;  %v1538_v8 = vrot.slane %v1532_v59, 1 }
 0x17a   :  { %v719_v24 = vadd.f32 %v2651_v0, %v705_v22  ;;  %v1559_v52 = vrot.slane %v1553_v60, 2  ;;  %v1593_v0 = vstv %s3151_s12  ;;  %s3541_s12 = sld [smem:[#allocation7 + $0x45]] }
 0x17b   :  { %1425 = vrot.lane.b32.xlu1 %v1422_v36, %s2309_s11  ;;  %1444 = vrot.lane.b32.xlu0 %v1441_v30, %s2309_s11  ;;  %v664_v49 = vadd.f32 %v3061_v46, %v643_v1  ;;  %v1537_v36 = vrot.slane %v1531_v45, 1  ;;  %v1533_v30 = vmul.f32 %v1530_v56, %v2902_v58  ;;  %v1552_v46 = vmul.f32 %v1551_v33, %v2760_v6 }
 0x17c   :  { %v740_v57 = vadd.f32 %v3094_v20, %v719_v24  ;;  %v1595_v37 = vmul.f32 %v1593_v0, %v2403_v17  ;;  %v1635_v20 = vstv %s3170_s16  ;;  %v1581_v45 = vsel %vm224_vm8, %v1579_v39, %v1580_v61  ;;  %s3563_s16 = sld [smem:[#allocation7 + $0x53]] }
 0x17d   :  { %v3105_v26 = vpop.permute.xlu1 %736  ;;  %v3107_v40 = vpop.permute.xlu0 %755  ;;  %v685_v55 = vadd.f32 %v3078_v47, %v664_v49  ;;  %v1539_v21 = vsel %vm188_vm6, %v1537_v36, %v1538_v8  ;;  %v1558_v54 = vrot.slane %v1552_v46, 2  ;;  %v1615_v1 = vmul.f32 %v1614_v15, %v2760_v6 }
 0x17e   :  { %v761_v48 = vadd.f32 %v3107_v40, %v740_v57  ;;  %v1596_v40 = vmul.f32 %v1593_v0, %v2902_v58  ;;  %v1601_v59 = vrot.slane %v1595_v37, 4  ;;  %v1636_v36 = vmul.f32 %v1635_v20, %v2760_v6 }
 0x17f   :  { %1446 = vrot.lane.b32.xlu1 %v1443_v14, %s2309_s11  ;;  %1465 = vrot.lane.b32.xlu0 %v1462_v7, %s2309_s11  ;;  %v706_v28 = vadd.f32 %v3092_v25, %v685_v55  ;;  %v1540_v14 = vrot.slane %v1533_v30, 1  ;;  %v1575_v7 = vmul.f32 %v1572_v44, %v2902_v58  ;;  %v1560_v51 = vsel %vm206_vm7, %v1558_v54, %v1559_v52 }
 0x180   :  { %v1603_v22 = vrot.slane %v1596_v40, 4  ;;  %v1617_v44 = vmul.f32 %v1614_v15, %v2902_v58  ;;  %v1637_v30 = vmul.f32 %v1635_v20, %v2403_v17  ;;  %v1642_v27 = vrot.slane %v1636_v36, 6 }
 0x181   :  { %v3124_v23 = vpop.permute.xlu1 %757  ;;  %v3126_v63 = vpop.permute.xlu0 %776  ;;  %v720_v25 = vadd.f32 %v2674_v18, %v706_v28  ;;  %v1594_v18 = vmul.f32 %v1593_v0, %v2760_v6  ;;  %v1582_v3 = vrot.slane %v1575_v7, 3  ;;  %v1638_v28 = vmul.f32 %v1635_v20, %v2902_v58 }
 0x182   :  { %v782_v38 = vadd.f32 %v3126_v63, %v761_v48  ;;  %v1604_v24 = vsel %vm242_vm9, %v1601_v59, %v1603_v22  ;;  %v1643_v62 = vrot.slane %v1637_v30, 6  ;;  %v1691_v57 = vstv %s3220_s20 }
 0x183   :  { %1467 = vrot.lane.b32.xlu1 %v1464_v12, %s2309_s11  ;;  %1486 = vrot.lane.b32.xlu0 %v1483_v10, %s2309_s11  ;;  %v1541_v12 = vsel %vm188_vm6, %v1538_v8, %v1540_v14  ;;  %v1561_v10 = vrot.slane %v1554_v53, 2  ;;  %v741_v31 = vadd.f32 %v3105_v26, %v720_v25  ;;  %v1583_v55 = vsel %vm224_vm8, %v1580_v61, %v1582_v3 }
 0x184   :  { %v1624_v53 = vrot.slane %v1617_v44, 5  ;;  %v1645_v0 = vrot.slane %v1638_v28, 6  ;;  %v1692_v37 = vmul.f32 %v1691_v57, %v2760_v6  ;;  %v1693_v20 = vmul.f32 %v1691_v57, %v2403_v17 }
 0x185   :  { %v3137_v4 = vpop.permute.xlu1 %778  ;;  %v3139_v34 = vpop.permute.xlu0 %797  ;;  %v1562_v29 = vsel %vm206_vm7, %v1559_v52, %v1561_v10  ;;  %v762_v26 = vadd.f32 %v3124_v23, %v741_v31  ;;  %v1712_v10 = vstv %s3226_s21 }
 0x186   :  { %v803_v63 = vadd.f32 %v3139_v34, %v782_v38  ;;  %v1621_v34 = vrot.slane %v1615_v1, 5  ;;  %v1733_v38 = vstv %s3238_s22  ;;  %v1714_v1 = vmul.f32 %v1712_v10, %v2403_v17 }
 0x187   :  { %1488 = vrot.lane.b32.xlu1 %v1485_v32, %s2309_s11  ;;  %1507 = vrot.lane.b32.xlu0 %v1504_v41, %s2309_s11  ;;  %v1600_v41 = vrot.slane %v1594_v18, 4  ;;  %v783_v33 = vadd.f32 %v3137_v4, %v762_v26  ;;  %v1735_v22 = vmul.f32 %v1733_v38, %v2403_v17 }
 0x188   :  { %v1720_v30 = vrot.slane %v1714_v1, 3 }
 0x189   :  { %v3158_v42 = vpop.permute.xlu1 %799  ;;  %v3160_v2 = vpop.permute.xlu0 %818  ;;  %v1602_v8 = vsel %vm242_vm9, %v1600_v41, %v1601_v59  ;;  %v1698_v59 = vrot.slane %v1692_v37, 2 }
 0x18a   :  { %v824_v49 = vadd.f32 %v3160_v2, %v803_v63  ;;  %v804_v4 = vadd.f32 %v3158_v42, %v783_v33  ;;  %v1699_v33 = vrot.slane %v1693_v20, 2 }
 0x18b   :  { %1509 = vrot.lane.b32.xlu1 %v1506_v5, %s2309_s11  ;;  %1521 = vrot.lane.b32.xlu0 %v1517_v43, %s2310_s13  ;;  %s3198_s11 = sld [smem:[#allocation7 + $0x3c]]  ;;  %v1622_v43 = vrot.slane %v1616_v13, 5  ;;  %v1715_v13 = vmul.f32 %v1712_v10, %v2902_v58 }
 0x18d   :  { %v3175_v47 = vpop.permute.xlu1 %820  ;;  %v840_v11 = vpop.permute.xlu0 %839  ;;  %v1623_v14 = vsel %vm127_vm5, %v1621_v34, %v1622_v43 }
 0x18e   :  { %v845_v2 = vadd.f32 %v840_v11, %v824_v49  ;;  %v825_v60 = vadd.f32 %v3175_v47, %v804_v4  ;;  %v1734_v49 = vmul.f32 %v1733_v38, %v2760_v6  ;;  %v1736_v4 = vmul.f32 %v1733_v38, %v2902_v58 }
 0x18f   :  { %1523 = vrot.lane.b32.xlu1 %v1518_v9, %s2310_s13  ;;  %1542 = vrot.lane.b32.xlu0 %v1539_v21, %s2310_s13  ;;  %v1656_v9 = vstv %s3203_s19  ;;  %s2315_s19 = smov [#allocation8]  }
 0x190   :  { %v859_v21 = vadd.f32 %v2676_v19, %v845_v2  ;;  %v1657_v25 = vmul.f32 %v1656_v9, %v2760_v6  ;;  %v1644_v19 = vsel %vm277_vm10, %v1642_v27, %v1643_v62  ;;  %v1658_v18 = vmul.f32 %v1656_v9, %v2403_v17  ;;  %s2106_s20 = sshll.u32 %s2315_s19, 4  ;;  %s2107_s20 = int_to_ptr.vmem [resolvable:$true] %s2106_s20 }
 0x191   :  { %v842_v50 = vpop.permute.xlu1 %841  ;;  %v3188_v56 = vpop.permute.xlu0 %874  ;;  %v1670_v46 = vstv %s3198_s11  ;;  %v1740_v28 = vrot.slane %v1734_v49, 4  ;;  %v1741_v9 = vrot.slane %v1735_v22, 4  ;;  %s3573_s11 = sld [smem:[#allocation7 + $0x5a]]  ;;  %s2274_s21 = scalar_lea.vmem %s2107_s20, 512 }
 0x192   :  { %v846_v47 = vadd.f32 %v842_v50, %v825_v60  ;;  %v1671_v54 = vmul.f32 %v1670_v46, %v2760_v6  ;;  %v1672_v52 = vmul.f32 %v1670_v46, %v2403_v17  ;;  %v1673_v50 = vmul.f32 %v1670_v46, %v2902_v58  ;;  %p2275_p13 = scmp.ne.s32.totalorder %s2107_s20, %s2274_s21  ;;  %p2279_p0 = scmp.lt.s32.totalorder %s2107_s20, %s2107_s20 }
 0x193   :  { %1544 = vrot.lane.b32.xlu1 %v1541_v12, %s2310_s13  ;;  %1563 = vrot.lane.b32.xlu0 %v1560_v51, %s2310_s13  ;;  %v1625_v12 = vsel %vm127_vm5, %v1622_v43, %v1624_v53  ;;  %v880_v61 = vadd.f32 %v3188_v56, %v859_v21  ;;  %v1713_v56 = vmul.f32 %v1712_v10, %v2760_v6  ;;  %v1722_v60 = vrot.slane %v1715_v13, 3  ;;  %p2280_p1 = scmp.lt.s32.totalorder %s2274_s21, %s2274_s21 }
 0x194   :  { %v860_v39 = vadd.f32 %v2708_v35, %v846_v47  ;;  %v1677_v48 = vrot.slane %v1671_v54, 1  ;;  %v1678_v51 = vrot.slane %v1672_v52, 1  ;;  %v1694_v35 = vmul.f32 %v1691_v57, %v2902_v58 }
 0x195   :  { %v3205_v32 = vpop.permute.xlu1 %876  ;;  %v3207_v16 = vpop.permute.xlu0 %895  ;;  %v1719_v34 = vrot.slane %v1713_v56, 3  ;;  %v1743_v54 = vrot.slane %v1736_v4, 4  ;;  %v1128_v10 = vstv %s3281_s26  ;;  %p2281_p2 = por %p2280_p1, %p2279_p0 }
 0x196   :  { %v901_v31 = vadd.f32 %v3207_v16, %v880_v61  ;;  %v881_v26 = vadd.f32 %v3205_v32, %v860_v39  ;;  %v1679_v41 = vsel %vm188_vm6, %v1677_v48, %v1678_v51  ;;  %v1754_v16 = vstv %s3246_s2 }
 0x197   :  { %1565 = vrot.lane.b32.xlu1 %v1562_v29, %s2310_s13  ;;  %1584 = vrot.lane.b32.xlu0 %v1581_v45, %s2310_s13  ;;  %v1646_v29 = vsel %vm277_vm10, %v1643_v62, %v1645_v0  ;;  %v1680_v45 = vrot.slane %v1673_v50, 1  ;;  %v1755_v2 = vmul.f32 %v1754_v16, %v2760_v6  ;;  %v1757_v27 = vmul.f32 %v1754_v16, %v2902_v58  ;;  %p2282_p3 = pnand %p2281_p2, %p2275_p13 }
 0x198   :  { %v1721_v47 = vsel %vm224_vm8, %v1719_v34, %v1720_v30  ;;  %v1744_v20 = vsel %vm242_vm9, %v1741_v9, %v1743_v54  ;;  %v1810_v54 = vstv %s3341_s30 }
 0x199   :  { %v3222_v5 = vpop.permute.xlu1 %897  ;;  %v917_v23 = vpop.permute.xlu0 %916  ;;  %v1681_v46 = vsel %vm188_vm6, %v1678_v51, %v1680_v45  ;;  %v1761_v52 = vrot.slane %v1755_v2, 5  ;;  %v1764_v48 = vrot.slane %v1757_v27, 5  ;;  %v3324_v51 = vstv %s3284_s27 }
 0x19a   :  { %v922_v63 = vadd.f32 %v917_v23, %v901_v31  ;;  %v902_v32 = vadd.f32 %v3222_v5, %v881_v26  ;;  %v1701_v23 = vrot.slane %v1694_v35, 2  ;;  %v1152_v13 = vmul.f32 %v3324_v51, %v2760_v6 }
 0x19b   :  { %1586 = vrot.lane.b32.xlu1 %v1583_v55, %s2310_s13  ;;  %1605 = vrot.lane.b32.xlu0 %v1602_v8, %s2310_s13  ;;  %v3289_v55 = vmul.f32 %v1754_v16, %v2403_v17  ;;  %v3353_v26 = vmul.f32 %v3324_v51, %v2403_v17 }
 0x19c   :  { %v1702_v53 = vsel %vm206_vm7, %v1699_v33, %v1701_v23 }
 0x19d   :  { %v3240_v42 = vpop.permute.xlu1 %918  ;;  %v938_v11 = vpop.permute.xlu0 %937  ;;  %v1762_v0 = vrot.slane %v3289_v55, 5  ;;  %v1158_v55 = vrot.slane %v1152_v13, 2  ;;  %v1154_v13 = vmul.f32 %v3324_v51, %v2902_v58 }
 0x19e   :  { %v943_v44 = vadd.f32 %v938_v11, %v922_v63  ;;  %v923_v5 = vadd.f32 %v3240_v42, %v902_v32  ;;  %v3303_v11 = vstv %s3263_s23 }
 0x19f   :  { %1607 = vrot.lane.b32.xlu1 %v1604_v24, %s2310_s13  ;;  %1626 = vrot.lane.b32.xlu0 %v1623_v14, %s2310_s13  ;;  %v1700_v24 = vsel %vm206_vm7, %v1698_v59, %v1699_v33  ;;  %v3320_v50 = vmul.f32 %v3303_v11, %v2403_v17  ;;  %v1763_v31 = vsel %vm127_vm5, %v1761_v52, %v1762_v0 }
 0x1a1   :  { %v940_v7 = vpop.permute.xlu1 %939  ;;  %v959_v15 = vpop.permute.xlu0 %958 }
 0x1a2   :  { %v964_v8 = vadd.f32 %v959_v15, %v943_v44  ;;  %v944_v42 = vadd.f32 %v940_v7, %v923_v5  ;;  %v1723_v15 = vsel %vm224_vm8, %v1720_v30, %v1722_v60  ;;  %v3311_v7 = vstv %s3275_s24 }
 0x1a3   :  { %1628 = vrot.lane.b32.xlu1 %v1625_v12, %s2310_s13  ;;  %1647 = vrot.lane.b32.xlu0 %v1644_v19, %s2310_s13  ;;  %v1742_v12 = vsel %vm242_vm9, %v1740_v28, %v1741_v9  ;;  %v1776_v19 = vmul.f32 %v3303_v11, %v2760_v6  ;;  %v1135_v35 = vmul.f32 %v3311_v7, %v2760_v6  ;;  %v1159_v5 = vrot.slane %v3353_v26, 2 }
 0x1a4   :  { %v3347_v1 = vmul.f32 %v3311_v7, %v2403_v17  ;;  %v3380_v30 = vmul.f32 %v1128_v10, %v2760_v6  ;;  %v3390_v60 = vstv %s3326_s0 }
 0x1a5   :  { %v961_v3 = vpop.permute.xlu1 %960  ;;  %v980_v40 = vpop.permute.xlu0 %979  ;;  %v1782_v45 = vrot.slane %v1776_v19, 6  ;;  %v1141_v4 = vrot.slane %v1135_v35, 1  ;;  %v1220_v52 = vmul.f32 %v3390_v60, %v2760_v6  ;;  %v1831_v35 = vstv %s3382_s5 }
 0x1a6   :  { %v985_v14 = vadd.f32 %v980_v40, %v964_v8  ;;  %v3336_v40 = vstv %s3295_s28  ;;  %v1142_v2 = vrot.slane %v3347_v1, 1  ;;  %v1832_v51 = vmul.f32 %v1831_v35, %v2760_v6 }
 0x1a7   :  { %1649 = vrot.lane.b32.xlu1 %v1646_v29, %s2310_s13  ;;  %1661 = vrot.lane.b32.xlu0 %v1657_v25, %s2311_s15  ;;  %s3291_s13 = sld [smem:[#allocation7 + $0x46]]  ;;  %v965_v25 = vadd.f32 %v961_v3, %v944_v42  ;;  %v3339_v29 = vstv %s3297_s29  ;;  %v1186_v22 = vmul.f32 %v3336_v40, %v2760_v6  ;;  %v3368_v32 = vmul.f32 %v3336_v40, %v2403_v17 }
 0x1a8   :  { %v1203_v44 = vmul.f32 %v3339_v29, %v2760_v6  ;;  %v3374_v23 = vmul.f32 %v3339_v29, %v2403_v17 }
 0x1a9   :  { %v982_v43 = vpop.permute.xlu1 %981  ;;  %v994_v36 = vpop.permute.xlu0 %993  ;;  %v1192_v42 = vrot.slane %v1186_v22, 4 }
 0x1aa   :  { %v999_v57 = vadd.f32 %v994_v36, %v985_v14  ;;  %v986_v39 = vadd.f32 %v982_v43, %v965_v25  ;;  %v1765_v36 = vsel %vm127_vm5, %v1762_v0, %v1764_v48  ;;  %v1193_v14 = vrot.slane %v3368_v32, 4 }
 0x1ab   :  { %1663 = vrot.lane.b32.xlu1 %v1658_v18, %s2311_s15  ;;  %1682 = vrot.lane.b32.xlu0 %v1679_v41, %s2311_s15  ;;  %v1783_v41 = vrot.slane %v3320_v50, 6  ;;  %v1210_v27 = vrot.slane %v3374_v23, 5  ;;  %v3411_v0 = vmul.f32 %v3390_v60, %v2403_v17  ;;  %v3416_v25 = vsel %vm206_vm7, %v1158_v55, %v1159_v5 }
 0x1ac   :  { %v3429_v48 = vsel %vm242_vm9, %v1192_v42, %v1193_v14  ;;  %v3459_v50 = vmul.f32 %v1831_v35, %v2403_v17  ;;  %v1852_v55 = vstv %s3400_s6 }
 0x1ad   :  { %v996_v62 = vpop.permute.xlu1 %995  ;;  %v1015_v21 = vpop.permute.xlu0 %1014  ;;  %v3333_v56 = vstv %s3291_s13 }
 0x1ae   :  { %v1020_v61 = vadd.f32 %v1015_v21, %v999_v57  ;;  %v1000_v38 = vadd.f32 %v996_v62, %v986_v39  ;;  %v1169_v16 = vmul.f32 %v3333_v56, %v2760_v6  ;;  %v3360_v59 = vmul.f32 %v3333_v56, %v2403_v17 }
 0x1af   :  { %1684 = vrot.lane.b32.xlu1 %v1681_v46, %s2311_s15  ;;  %1703 = vrot.lane.b32.xlu0 %v1700_v24, %s2311_s15  ;;  %v1778_v24 = vmul.f32 %v3303_v11, %v2902_v58  ;;  %v1143_v11 = vsel %vm188_vm6, %v1141_v4, %v1142_v2 }
 0x1b0   :  { %v1175_v8 = vrot.slane %v1169_v16, 3  ;;  %v1176_v46 = vrot.slane %v3360_v59, 3 }
 0x1b1   :  { %v1017_v18 = vpop.permute.xlu1 %1016  ;;  %v1036_v37 = vpop.permute.xlu0 %1035  ;;  %v1785_v57 = vrot.slane %v1778_v24, 6  ;;  %v1834_v24 = vmul.f32 %v1831_v35, %v2902_v58 }
 0x1b2   :  { %v1041_v3 = vadd.f32 %v1036_v37, %v1020_v61  ;;  %v1021_v63 = vadd.f32 %v1017_v18, %v1000_v38  ;;  %v3424_v61 = vsel %vm224_vm8, %v1175_v8, %v1176_v46  ;;  %v1811_v37 = vmul.f32 %v1810_v54, %v2760_v6 }
 0x1b3   :  { %1705 = vrot.lane.b32.xlu1 %v1702_v53, %s2311_s15  ;;  %1724 = vrot.lane.b32.xlu0 %v1721_v47, %s2311_s15  ;;  %v1209_v53 = vrot.slane %v1203_v44, 5  ;;  %v1784_v47 = vsel %vm277_vm10, %v1782_v45, %v1783_v41  ;;  %v1226_v38 = vrot.slane %v1220_v52, 6  ;;  %v1205_v8 = vmul.f32 %v3339_v29, %v2902_v58 }
 0x1b4   :  { %v1853_v52 = vmul.f32 %v1852_v55, %v2760_v6 }
 0x1b5   :  { %v1038_v33 = vpop.permute.xlu1 %1037  ;;  %v1057_v49 = vpop.permute.xlu0 %1056  ;;  %v3434_v18 = vsel %vm127_vm5, %v1209_v53, %v1210_v27 }
 0x1b6   :  { %v1042_v34 = vadd.f32 %v1038_v33, %v1021_v63  ;;  %v1062_v43 = vadd.f32 %v1057_v49, %v1041_v3  ;;  %v1227_v3 = vrot.slane %v3411_v0, 6  ;;  %v1786_v63 = vsel %vm277_vm10, %v1783_v41, %v1785_v57 }
 0x1b7   :  { %1726 = vrot.lane.b32.xlu1 %v1723_v15, %s2311_s15  ;;  %1745 = vrot.lane.b32.xlu0 %v1742_v12, %s2311_s15  ;;  %v1796_v15 = vstv %s3362_s4  ;;  %v1137_v12 = vmul.f32 %v3311_v7, %v2902_v58  ;;  %v1171_v33 = vmul.f32 %v3333_v56, %v2902_v58  ;;  %v1813_v49 = vmul.f32 %v1810_v54, %v2902_v58 }
 0x1b8   :  { %v1797_v45 = vmul.f32 %v1796_v15, %v2760_v6  ;;  %v3467_v56 = vsel %vm277_vm10, %v1226_v38, %v1227_v3  ;;  %v1798_v42 = vmul.f32 %v1796_v15, %v2403_v17  ;;  %v1873_v57 = vstv %s3437_s8 }
 0x1b9   :  { %v1059_v28 = vpop.permute.xlu1 %1058  ;;  %v1078_v9 = vpop.permute.xlu0 %1077  ;;  %v1144_v16 = vrot.slane %v1137_v12, 1  ;;  %v1820_v53 = vrot.slane %v1813_v49, 1  ;;  %v1859_v38 = vrot.slane %v1853_v52, 3  ;;  %v1212_v49 = vrot.slane %v1205_v8, 5 }
 0x1ba   :  { %v1063_v62 = vadd.f32 %v1059_v28, %v1042_v34  ;;  %v1083_v21 = vadd.f32 %v1078_v9, %v1062_v43  ;;  %v3455_v34 = vmul.f32 %v3336_v40, %v2902_v58  ;;  %v1817_v43 = vrot.slane %v1811_v37, 1 }
 0x1bb   :  { %1747 = vrot.lane.b32.xlu1 %v1744_v20, %s2311_s15  ;;  %1766 = vrot.lane.b32.xlu0 %v1763_v31, %s2311_s15  ;;  %v1812_v31 = vmul.f32 %v1810_v54, %v2403_v17  ;;  %v1161_v40 = vrot.slane %v1154_v13, 2  ;;  %v1130_v9 = vmul.f32 %v1128_v10, %v2403_v17  ;;  %v1839_v54 = vrot.slane %v3459_v50, 2 }
 0x1bc   :  { %v1195_v10 = vrot.slane %v3455_v34, 4  ;;  %v1145_v15 = vsel %vm188_vm6, %v1142_v2, %v1144_v16  ;;  %v1841_v37 = vrot.slane %v1834_v24, 2  ;;  %v1875_v13 = vmul.f32 %v1873_v57, %v2403_v17 }
 0x1bd   :  { %v1080_v19 = vpop.permute.xlu1 %1079  ;;  %v1099_v39 = vpop.permute.xlu0 %1098  ;;  %v1818_v4 = vrot.slane %v1812_v31, 1  ;;  %v1855_v31 = vmul.f32 %v1852_v55, %v2902_v58  ;;  %v1876_v50 = vmul.f32 %v1873_v57, %v2902_v58  ;;  %v1213_v24 = vsel %vm127_vm5, %v1210_v27, %v1212_v49 }
 0x1be   :  { %v1084_v7 = vadd.f32 %v1080_v19, %v1063_v62  ;;  %v1104_v20 = vadd.f32 %v1099_v39, %v1083_v21  ;;  %v1178_v39 = vrot.slane %v1171_v33, 3  ;;  %v1196_v8 = vsel %vm242_vm9, %v1193_v14, %v1195_v10 }
 0x1bf   :  { %1768 = vrot.lane.b32.xlu1 %v1765_v36, %s2311_s15  ;;  %1787 = vrot.lane.b32.xlu0 %v1784_v47, %s2311_s15  ;;  %v1838_v47 = vrot.slane %v1832_v51, 2  ;;  %v1819_v19 = vsel %vm188_vm6, %v1817_v43, %v1818_v4  ;;  %v1862_v51 = vrot.slane %v1855_v31, 3 }
 0x1c0   :  { %v1179_v34 = vsel %vm224_vm8, %v1176_v46, %v1178_v39 }
 0x1c1   :  { %v1101_v22 = vpop.permute.xlu1 %1100  ;;  %v1120_v44 = vpop.permute.xlu0 %1119  ;;  %v1840_v2 = vsel %vm206_vm7, %v1838_v47, %v1839_v54 }
 0x1c2   :  { %v1105_v41 = vadd.f32 %v1101_v22, %v1084_v7  ;;  %v1125_v36 = vadd.f32 %v1120_v44, %v1104_v20  ;;  %v1821_v20 = vsel %vm188_vm6, %v1818_v4, %v1820_v53  ;;  %v1222_v22 = vmul.f32 %v3390_v60, %v2902_v58 }
 0x1c3   :  { %1789 = vrot.lane.b32.xlu1 %v1786_v63, %s2311_s15  ;;  %1801 = vrot.lane.b32.xlu0 %v1797_v45, %s2312_s17  ;;  %s3492_s15 = sld [smem:[#allocation7 + $0x60]]  ;;  %v1874_v45 = vmul.f32 %v1873_v57, %v2760_v6  ;;  %v1162_v44 = vsel %vm206_vm7, %v1159_v5, %v1161_v40  ;;  %v1883_v53 = vrot.slane %v1876_v50, 4 }
 0x1c4   :  { %v1131_v28 = vadd.f32 %v3380_v30, %v1125_v36  ;;  %v1854_v30 = vmul.f32 %v1852_v55, %v2403_v17  ;;  %v1881_v36 = vrot.slane %v1875_v13, 4  ;;  %v1229_v40 = vrot.slane %v1222_v22, 6 }
 0x1c5   :  { %v1122_v62 = vpop.permute.xlu1 %1121  ;;  %v3479_v21 = vpop.permute.xlu0 %1241  ;;  %v1880_v26 = vrot.slane %v1874_v45, 4  ;;  %v1971_v22 = vstv %s3541_s12 }
 0x1c6   :  { %v1148_v29 = vadd.f32 %v1143_v11, %v1131_v28  ;;  %v1126_v12 = vadd.f32 %v1122_v62, %v1105_v41  ;;  %v1860_v33 = vrot.slane %v1854_v30, 3  ;;  %v1884_v30 = vsel %vm242_vm9, %v1881_v36, %v1883_v53 }
 0x1c7   :  { %1803 = vrot.lane.b32.xlu1 %v1798_v42, %s2312_s17  ;;  %1822 = vrot.lane.b32.xlu0 %v1819_v19, %s2312_s17  ;;  %v1882_v14 = vsel %vm242_vm9, %v1880_v26, %v1881_v36  ;;  %v1972_v26 = vmul.f32 %v1971_v22, %v2760_v6  ;;  %v1973_v36 = vmul.f32 %v1971_v22, %v2403_v17 }
 0x1c8   :  { %v1165_v11 = vadd.f32 %v3416_v25, %v1148_v29  ;;  %v1132_v7 = vadd.f32 %v1130_v9, %v1126_v12  ;;  %v1894_v25 = vstv %s3462_s7  ;;  %v1861_v55 = vsel %vm224_vm8, %v1859_v38, %v1860_v33 }
 0x1c9   :  { %v3497_v35 = vpop.permute.xlu1 %1243  ;;  %v1263_v1 = vpop.permute.xlu0 %1262  ;;  %v1895_v5 = vmul.f32 %v1894_v25, %v2760_v6  ;;  %v1896_v59 = vmul.f32 %v1894_v25, %v2403_v17  ;;  %v1915_v28 = vstv %s3492_s15  ;;  %v1863_v42 = vsel %vm224_vm8, %v1860_v33, %v1862_v51 }
 0x1ca   :  { %v1182_v63 = vadd.f32 %v3424_v61, %v1165_v11  ;;  %v1149_v16 = vadd.f32 %v1145_v15, %v1132_v7  ;;  %v1897_v27 = vmul.f32 %v1894_v25, %v2902_v58  ;;  %v1917_v57 = vmul.f32 %v1915_v28, %v2403_v17 }
 0x1cb   :  { %1824 = vrot.lane.b32.xlu1 %v1821_v20, %s2312_s17  ;;  %1843 = vrot.lane.b32.xlu0 %v1840_v2, %s2312_s17  ;;  %v1901_v23 = vrot.slane %v1895_v5, 5  ;;  %v1902_v47 = vrot.slane %v1896_v59, 5  ;;  %v1230_v29 = vsel %vm277_vm10, %v1227_v3, %v1229_v40  ;;  %v1950_v11 = vstv %s3518_s9 }
 0x1cc   :  { %v1199_v61 = vadd.f32 %v3429_v48, %v1182_v63  ;;  %v1166_v43 = vadd.f32 %v1162_v44, %v1149_v16  ;;  %v1842_v48 = vsel %vm206_vm7, %v1839_v54, %v1841_v37  ;;  %v1904_v15 = vrot.slane %v1897_v27, 5 }
 0x1cd   :  { %v1265_v41 = vpop.permute.xlu1 %1264  ;;  %v1284_v60 = vpop.permute.xlu0 %1283  ;;  %v1903_v10 = vsel %vm127_vm5, %v1901_v23, %v1902_v47  ;;  %v1918_v37 = vmul.f32 %v1915_v28, %v2902_v58  ;;  %v1923_v20 = vrot.slane %v1917_v57, 6  ;;  %v1936_v2 = vstv %s3534_s10 }
 0x1ce   :  { %v1216_v46 = vadd.f32 %v3434_v18, %v1199_v61  ;;  %v1183_v4 = vadd.f32 %v1179_v34, %v1166_v43  ;;  %v1905_v13 = vsel %vm127_vm5, %v1902_v47, %v1904_v15  ;;  %v1952_v16 = vmul.f32 %v1950_v11, %v2403_v17 }
 0x1cf   :  { %1845 = vrot.lane.b32.xlu1 %v1842_v48, %s2312_s17  ;;  %1864 = vrot.lane.b32.xlu0 %v1861_v55, %s2312_s17  ;;  %v1925_v63 = vrot.slane %v1918_v37, 6  ;;  %v1937_v61 = vmul.f32 %v1936_v2, %v2760_v6  ;;  %v1953_v43 = vmul.f32 %v1950_v11, %v2902_v58  ;;  %v1938_v55 = vmul.f32 %v1936_v2, %v2403_v17 }
 0x1d0   :  { %v1233_v18 = vadd.f32 %v3467_v56, %v1216_v46  ;;  %v1200_v9 = vadd.f32 %v1196_v8, %v1183_v4  ;;  %v1916_v56 = vmul.f32 %v1915_v28, %v2760_v6  ;;  %v1992_v4 = vstv %s3553_s14 }
 0x1d1   :  { %v1286_v32 = vpop.permute.xlu1 %1285  ;;  %v1305_v62 = vpop.permute.xlu0 %1304  ;;  %v1926_v46 = vsel %vm277_vm10, %v1923_v20, %v1925_v63  ;;  %v1960_v40 = vrot.slane %v1953_v43, 1  ;;  %v1974_v8 = vmul.f32 %v1971_v22, %v2902_v58  ;;  %v1993_v53 = vmul.f32 %v1992_v4, %v2760_v6 }
 0x1d2   :  { %v1217_v54 = vadd.f32 %v1213_v24, %v1200_v9  ;;  %v1247_v52 = vadd.f32 %v3479_v21, %v1233_v18  ;;  %v1922_v7 = vrot.slane %v1916_v56, 6  ;;  %v1978_v9 = vrot.slane %v1972_v26, 2 }
 0x1d3   :  { %1866 = vrot.lane.b32.xlu1 %v1863_v42, %s2312_s17  ;;  %1885 = vrot.lane.b32.xlu0 %v1882_v14, %s2312_s17  ;;  %v1979_v42 = vrot.slane %v1973_v36, 2  ;;  %v1994_v14 = vmul.f32 %v1992_v4, %v2403_v17  ;;  %v2013_v23 = vstv %s3563_s16  ;;  %v1981_v27 = vrot.slane %v1974_v8, 2 }
 0x1d4   :  { %v1234_v12 = vadd.f32 %v1230_v29, %v1217_v54  ;;  %v1268_v19 = vadd.f32 %v1263_v1, %v1247_v52  ;;  %v1924_v49 = vsel %vm277_vm10, %v1922_v7, %v1923_v20  ;;  %v1995_v54 = vmul.f32 %v1992_v4, %v2902_v58 }
 0x1d5   :  { %v1307_v21 = vpop.permute.xlu1 %1306  ;;  %v1326_v39 = vpop.permute.xlu0 %1325  ;;  %v1980_v57 = vsel %vm206_vm7, %v1978_v9, %v1979_v42  ;;  %v1999_v29 = vrot.slane %v1993_v53, 3  ;;  %v1982_v15 = vsel %vm206_vm7, %v1979_v42, %v1981_v27  ;;  %v2016_v20 = vmul.f32 %v2013_v23, %v2902_v58 }
 0x1d6   :  { %v1248_v0 = vadd.f32 %v3497_v35, %v1234_v12  ;;  %v1289_v3 = vadd.f32 %v1284_v60, %v1268_v19  ;;  %v1951_v35 = vmul.f32 %v1950_v11, %v2760_v6  ;;  %v1958_v60 = vrot.slane %v1952_v16, 1 }
 0x1d7   :  { %1887 = vrot.lane.b32.xlu1 %v1884_v30, %s2312_s17  ;;  %1906 = vrot.lane.b32.xlu0 %v1903_v10, %s2312_s17  ;;  %v2014_v12 = vmul.f32 %v2013_v23, %v2760_v6  ;;  %v2015_v19 = vmul.f32 %v2013_v23, %v2403_v17  ;;  %v2034_v10 = vstv %s3573_s11  ;;  %v2002_v37 = vrot.slane %v1995_v54, 3 }
 0x1d8   :  { %v1269_v31 = vadd.f32 %v1265_v41, %v1248_v0  ;;  %v1310_v1 = vadd.f32 %v1305_v62, %v1289_v3  ;;  %v1957_v41 = vrot.slane %v1951_v35, 1  ;;  %v1961_v47 = vsel %vm188_vm6, %v1958_v60, %v1960_v40 }
 0x1d9   :  { %v1328_v38 = vpop.permute.xlu1 %1327  ;;  %v1347_v45 = vpop.permute.xlu0 %1346  ;;  %v2020_v3 = vrot.slane %v2014_v12, 4  ;;  %v2021_v7 = vrot.slane %v2015_v19, 4  ;;  %v2037_v22 = vmul.f32 %v2034_v10, %v2902_v58 }
 0x1da   :  { %v1290_v33 = vadd.f32 %v1286_v32, %v1269_v31  ;;  %v1331_v25 = vadd.f32 %v1326_v39, %v1310_v1  ;;  %v1959_v18 = vsel %vm188_vm6, %v1957_v41, %v1958_v60  ;;  %v2000_v39 = vrot.slane %v1994_v14, 3 }
 0x1db   :  { %1908 = vrot.lane.b32.xlu1 %v1905_v13, %s2312_s17  ;;  %1927 = vrot.lane.b32.xlu0 %v1924_v49, %s2312_s17  ;;  %v2035_v31 = vmul.f32 %v2034_v10, %v2760_v6  ;;  %v2044_v60 = vrot.slane %v2037_v22, 5 }
 0x1dc   :  { %v1311_v44 = vadd.f32 %v1307_v21, %v1290_v33  ;;  %v1352_v34 = vadd.f32 %v1347_v45, %v1331_v25  ;;  %v2036_v45 = vmul.f32 %v2034_v10, %v2403_v17  ;;  %v2003_v63 = vsel %vm224_vm8, %v2000_v39, %v2002_v37 }
 0x1dd   :  { %v1349_v51 = vpop.permute.xlu1 %1348  ;;  %v1368_v50 = vpop.permute.xlu0 %1367  ;;  %v2022_v33 = vsel %vm242_vm9, %v2020_v3, %v2021_v7  ;;  %v2023_v25 = vrot.slane %v2016_v20, 4  ;;  %v2041_v49 = vrot.slane %v2035_v31, 5 }
 0x1de   :  { %v1332_v5 = vadd.f32 %v1328_v38, %v1311_v44  ;;  %v1373_v59 = vadd.f32 %v1368_v50, %v1352_v34  ;;  %v2001_v38 = vsel %vm224_vm8, %v1999_v29, %v2000_v39  ;;  %v2042_v34 = vrot.slane %v2036_v45, 5 }
 0x1df   :  { %1929 = vrot.lane.b32.xlu1 %v1926_v46, %s2312_s17  ;;  %1941 = vrot.lane.b32.xlu0 %v1937_v61, %s2313_s18  ;;  %s3585_s17 = sld [smem:[#allocation7 + $0x61]]  ;;  %v2024_v41 = vsel %vm242_vm9, %v2021_v7, %v2023_v25 }
 0x1e0   :  { %v1353_v48 = vadd.f32 %v1349_v51, %v1332_v5  ;;  %v2043_v26 = vsel %vm127_vm5, %v2041_v49, %v2042_v34  ;;  %v2045_v46 = vsel %vm127_vm5, %v2042_v34, %v2044_v60 }
 0x1e1   :  { %v1370_v24 = vpop.permute.xlu1 %1369  ;;  %v1382_v28 = vpop.permute.xlu0 %1381 }
 0x1e2   :  { %v1374_v32 = vadd.f32 %v1370_v24, %v1353_v48  ;;  %v1387_v62 = vadd.f32 %v1382_v28, %v1373_v59 }
 0x1e3   :  { %1943 = vrot.lane.b32.xlu1 %v1938_v55, %s2313_s18  ;;  %1962 = vrot.lane.b32.xlu0 %v1959_v18, %s2313_s18 }
 0x1e5   :  { %v1384_v52 = vpop.permute.xlu1 %1383  ;;  %v1403_v56 = vpop.permute.xlu0 %1402  ;;  %v2055_v13 = vstv %s3585_s17 }
 0x1e6   :  { %v1388_v30 = vadd.f32 %v1384_v52, %v1374_v32  ;;  %v1408_v21 = vadd.f32 %v1403_v56, %v1387_v62  ;;  %v2056_v61 = vmul.f32 %v2055_v13, %v2760_v6  ;;  %v2057_v43 = vmul.f32 %v2055_v13, %v2403_v17 }
 0x1e7   :  { %1964 = vrot.lane.b32.xlu1 %v1961_v47, %s2313_s18  ;;  %1983 = vrot.lane.b32.xlu0 %v1980_v57, %s2313_s18  ;;  %v2058_v59 = vmul.f32 %v2055_v13, %v2902_v58 }
 0x1e8   :  { %v2062_v36 = vrot.slane %v2056_v61, 6  ;;  %v2063_v5 = vrot.slane %v2057_v43, 6 }
 0x1e9   :  { %v1405_v11 = vpop.permute.xlu1 %1404  ;;  %v1424_v0 = vpop.permute.xlu0 %1423  ;;  %v2065_v48 = vrot.slane %v2058_v59, 6 }
 0x1ea   :  { %v1409_v1 = vadd.f32 %v1405_v11, %v1388_v30  ;;  %v3598_v2 = vadd.f32 %v1424_v0, %v1408_v21  ;;  %v2064_v4 = vsel %vm277_vm10, %v2062_v36, %v2063_v5 }
 0x1eb   :  { %1985 = vrot.lane.b32.xlu1 %v1982_v15, %s2313_s18  ;;  %2004 = vrot.lane.b32.xlu0 %v2001_v38, %s2313_s18  ;;  %v2066_v8 = vsel %vm277_vm10, %v2063_v5, %v2065_v48 }
 0x1ed   :  { %v1426_v35 = vpop.permute.xlu1 %1425  ;;  %v1445_v16 = vpop.permute.xlu0 %1444 }
 0x1ee   :  { %v1430_v44 = vadd.f32 %v1426_v35, %v1409_v1  ;;  %v1450_v15 = vadd.f32 %v1445_v16, %v3598_v2 }
 0x1ef   :  { %2006 = vrot.lane.b32.xlu1 %v2003_v63, %s2313_s18  ;;  %2025 = vrot.lane.b32.xlu0 %v2022_v33, %s2313_s18 }
 0x1f1   :  { %v1447_v51 = vpop.permute.xlu1 %1446  ;;  %v1466_v50 = vpop.permute.xlu0 %1465 }
 0x1f2   :  { %v1471_v0 = vadd.f32 %v1466_v50, %v1450_v15  ;;  %v1451_v3 = vadd.f32 %v1447_v51, %v1430_v44 }
 0x1f3   :  { %2027 = vrot.lane.b32.xlu1 %v2024_v41, %s2313_s18  ;;  %2046 = vrot.lane.b32.xlu0 %v2043_v26, %s2313_s18 }
 0x1f5   :  { %v1468_v17 = vpop.permute.xlu1 %1467  ;;  %v1487_v6 = vpop.permute.xlu0 %1486 }
 0x1f6   :  { %v1492_v7 = vadd.f32 %v1487_v6, %v1471_v0  ;;  %v1472_v1 = vadd.f32 %v1468_v17, %v1451_v3 }
 0x1f7   :  { %2048 = vrot.lane.b32.xlu1 %v2045_v46, %s2313_s18  ;;  %2067 = vrot.lane.b32.xlu0 %v2064_v4, %s2313_s18 }
 0x1f9   :  { %v1489_v55 = vpop.permute.xlu1 %1488  ;;  %v1508_v40 = vpop.permute.xlu0 %1507 }
 0x1fa   :  { %v1513_v38 = vadd.f32 %v1508_v40, %v1492_v7  ;;  %v1493_v45 = vadd.f32 %v1489_v55, %v1472_v1 }
 0x1fb   :  { %2069 = vrot.lane.b32.xlu1 %v2066_v8, %s2313_s18  ;;  %s2314_s18 = smov 106  }
 0x1fd   :  { %v1510_v58 = vpop.permute.xlu1 %1509  ;;  %v1522_v24 = vpop.permute.xlu0 %1521 }
 0x1fe   :  { %v1527_v13 = vadd.f32 %v1522_v24, %v1513_v38  ;;  %v1514_v33 = vadd.f32 %v1510_v58, %v1493_v45 }
 0x201   :  { %v1524_v28 = vpop.permute.xlu1 %1523  ;;  %v1543_v18 = vpop.permute.xlu0 %1542 }
 0x202   :  { %v1548_v25 = vadd.f32 %v1543_v18, %v1527_v13  ;;  %v1528_v49 = vadd.f32 %v1524_v28, %v1514_v33 }
 0x205   :  { %v1545_v9 = vpop.permute.xlu1 %1544  ;;  %v1564_v42 = vpop.permute.xlu0 %1563 }
 0x206   :  { %v1569_v22 = vadd.f32 %v1564_v42, %v1548_v25  ;;  %v1549_v2 = vadd.f32 %v1545_v9, %v1528_v49 }
 0x209   :  { %v1566_v53 = vpop.permute.xlu1 %1565  ;;  %v1585_v32 = vpop.permute.xlu0 %1584 }
 0x20a   :  { %v1590_v16 = vadd.f32 %v1585_v32, %v1569_v22  ;;  %v1570_v43 = vadd.f32 %v1566_v53, %v1549_v2 }
 0x20d   :  { %v1587_v62 = vpop.permute.xlu1 %1586  ;;  %v1606_v14 = vpop.permute.xlu0 %1605 }
 0x20e   :  { %v1611_v50 = vadd.f32 %v1606_v14, %v1590_v16  ;;  %v1591_v41 = vadd.f32 %v1587_v62, %v1570_v43 }
 0x211   :  { %v1608_v23 = vpop.permute.xlu1 %1607  ;;  %v1627_v47 = vpop.permute.xlu0 %1626 }
 0x212   :  { %v1632_v60 = vadd.f32 %v1627_v47, %v1611_v50  ;;  %v1612_v26 = vadd.f32 %v1608_v23, %v1591_v41 }
 0x215   :  { %v1629_v27 = vpop.permute.xlu1 %1628  ;;  %v1648_v54 = vpop.permute.xlu0 %1647 }
 0x216   :  { %v1653_v36 = vadd.f32 %v1648_v54, %v1632_v60  ;;  %v1633_v17 = vadd.f32 %v1629_v27, %v1612_v26 }
 0x219   :  { %v1650_v52 = vpop.permute.xlu1 %1649  ;;  %v1662_v56 = vpop.permute.xlu0 %1661 }
 0x21a   :  { %v1667_v6 = vadd.f32 %v1662_v56, %v1653_v36  ;;  %v1654_v46 = vadd.f32 %v1650_v52, %v1633_v17 }
 0x21d   :  { %v1664_v57 = vpop.permute.xlu1 %1663  ;;  %v1683_v29 = vpop.permute.xlu0 %1682 }
 0x21e   :  { %v1688_v4 = vadd.f32 %v1683_v29, %v1667_v6  ;;  %v1668_v40 = vadd.f32 %v1664_v57, %v1654_v46 }
 0x221   :  { %v1685_v12 = vpop.permute.xlu1 %1684  ;;  %v1704_v19 = vpop.permute.xlu0 %1703 }
 0x222   :  { %v1709_v8 = vadd.f32 %v1704_v19, %v1688_v4  ;;  %v1689_v58 = vadd.f32 %v1685_v12, %v1668_v40 }
 0x225   :  { %v1706_v30 = vpop.permute.xlu1 %1705  ;;  %v1725_v21 = vpop.permute.xlu0 %1724 }
 0x226   :  { %v1730_v24 = vadd.f32 %v1725_v21, %v1709_v8  ;;  %v1710_v9 = vadd.f32 %v1706_v30, %v1689_v58 }
 0x229   :  { %v1727_v39 = vpop.permute.xlu1 %1726  ;;  %v1746_v10 = vpop.permute.xlu0 %1745 }
 0x22a   :  { %v1751_v42 = vadd.f32 %v1746_v10, %v1730_v24  ;;  %v1731_v53 = vadd.f32 %v1727_v39, %v1710_v9 }
 0x22d   :  { %v1748_v37 = vpop.permute.xlu1 %1747  ;;  %v1767_v11 = vpop.permute.xlu0 %1766 }
 0x22e   :  { %v1772_v32 = vadd.f32 %v1767_v11, %v1751_v42  ;;  %v1752_v23 = vadd.f32 %v1748_v37, %v1731_v53 }
 0x231   :  { %v1769_v20 = vpop.permute.xlu1 %1768  ;;  %v1788_v31 = vpop.permute.xlu0 %1787 }
 0x232   :  { %v1793_v47 = vadd.f32 %v1788_v31, %v1772_v32  ;;  %v1773_v27 = vadd.f32 %v1769_v20, %v1752_v23 }
 0x235   :  { %v1790_v63 = vpop.permute.xlu1 %1789  ;;  %v1802_v35 = vpop.permute.xlu0 %1801 }
 0x236   :  { %v1807_v54 = vadd.f32 %v1802_v35, %v1793_v47  ;;  %v1794_v29 = vadd.f32 %v1790_v63, %v1773_v27 }
 0x239   :  { %v1804_v34 = vpop.permute.xlu1 %1803  ;;  %v1823_v61 = vpop.permute.xlu0 %1822 }
 0x23a   :  { %v1828_v15 = vadd.f32 %v1823_v61, %v1807_v54  ;;  %v1808_v57 = vadd.f32 %v1804_v34, %v1794_v29 }
 0x23d   :  { %v1825_v44 = vpop.permute.xlu1 %1824  ;;  %v1844_v51 = vpop.permute.xlu0 %1843 }
 0x23e   :  { %v1849_v19 = vadd.f32 %v1844_v51, %v1828_v15  ;;  %v1829_v0 = vadd.f32 %v1825_v44, %v1808_v57 }
 0x241   :  { %v1846_v5 = vpop.permute.xlu1 %1845  ;;  %v1865_v59 = vpop.permute.xlu0 %1864 }
 0x242   :  { %v1870_v3 = vadd.f32 %v1865_v59, %v1849_v19  ;;  %v1850_v30 = vadd.f32 %v1846_v5, %v1829_v0 }
 0x245   :  { %v1867_v48 = vpop.permute.xlu1 %1866  ;;  %v1886_v55 = vpop.permute.xlu0 %1885 }
 0x246   :  { %v1891_v10 = vadd.f32 %v1886_v55, %v1870_v3  ;;  %v1871_v7 = vadd.f32 %v1867_v48, %v1850_v30 }
 0x249   :  { %v1888_v28 = vpop.permute.xlu1 %1887  ;;  %v1907_v18 = vpop.permute.xlu0 %1906 }
 0x24a   :  { %v1912_v1 = vadd.f32 %v1907_v18, %v1891_v10  ;;  %v1892_v37 = vadd.f32 %v1888_v28, %v1871_v7 }
 0x24d   :  { %v1909_v62 = vpop.permute.xlu1 %1908  ;;  %v1928_v14 = vpop.permute.xlu0 %1927 }
 0x24e   :  { %v1933_v31 = vadd.f32 %v1928_v14, %v1912_v1  ;;  %v1913_v45 = vadd.f32 %v1909_v62, %v1892_v37 }
 0x251   :  { %v1930_v52 = vpop.permute.xlu1 %1929  ;;  %v1942_v56 = vpop.permute.xlu0 %1941 }
 0x252   :  { %v1947_v13 = vadd.f32 %v1942_v56, %v1933_v31  ;;  %v1934_v63 = vadd.f32 %v1930_v52, %v1913_v45 }
 0x255   :  { %v1944_v12 = vpop.permute.xlu1 %1943  ;;  %v1963_v21 = vpop.permute.xlu0 %1962 }
 0x256   :  { %v1968_v35 = vadd.f32 %v1963_v21, %v1947_v13  ;;  %v1948_v49 = vadd.f32 %v1944_v12, %v1934_v63 }
 0x259   :  { %v1965_v39 = vpop.permute.xlu1 %1964  ;;  %v1984_v11 = vpop.permute.xlu0 %1983 }
 0x25a   :  { %v1989_v22 = vadd.f32 %v1984_v11, %v1968_v35  ;;  %v1969_v34 = vadd.f32 %v1965_v39, %v1948_v49 }
 0x25d   :  { %v1986_v20 = vpop.permute.xlu1 %1985  ;;  %v2005_v38 = vpop.permute.xlu0 %2004 }
 0x25e   :  { %v2010_v61 = vadd.f32 %v2005_v38, %v1989_v22  ;;  %v1990_v43 = vadd.f32 %v1986_v20, %v1969_v34 }
 0x261   :  { %v2007_v33 = vpop.permute.xlu1 %2006  ;;  %v2026_v25 = vpop.permute.xlu0 %2025 }
 0x262   :  { %v2031_v50 = vadd.f32 %v2026_v25, %v2010_v61  ;;  %v2011_v44 = vadd.f32 %v2007_v33, %v1990_v43 }
 0x265   :  { %v2028_v2 = vpop.permute.xlu1 %2027  ;;  %v2047_v16 = vpop.permute.xlu0 %2046 }
 0x266   :  { %v2052_v51 = vadd.f32 %v2047_v16, %v2031_v50  ;;  %v2032_v26 = vadd.f32 %v2028_v2, %v2011_v44 }
 0x269   :  { %v2049_v41 = vpop.permute.xlu1 %2048  ;;  %v2068_v60 = vpop.permute.xlu0 %2067 }
 0x26a   :  { %v2073_v36 = vadd.f32 %v2068_v60, %v2052_v51  ;;  %v2053_v5 = vadd.f32 %v2049_v41, %v2032_v26 }
 0x26c   :  { %v2216_v59 = vmul.f32 -1.442695, %v2073_v36 }
 0x26d   :  { %v2070_v17 = vpop.permute.xlu1 %2069 }
 0x26e   :  { %2232 = vpow2.f32 %v2216_v59  ;;  %v2074_v6 = vadd.f32 %v2070_v17, %v2053_v5 }
 0x270   :  { %v2217_v46 = vmul.f32 -1.442695, %v2074_v6 }
 0x272   :  { %2234 = vpow2.f32 %v2217_v46 }
 0x278   :  { %v2233_v4 = vpop.eup %2232 }
 0x279   :  { %v2081_v48 = vadd.f32 1.0, %v2233_v4 }
 0x27b   :  { %2236 = vrcp.f32 %v2081_v48 }
 0x27c   :  { %v2235_v55 = vpop.eup %2234 }
 0x27d   :  { %v2082_v40 = vadd.f32 1.0, %v2235_v55 }
 0x27f   :  { %2238 = vrcp.f32 %v2082_v40 }
 0x285   :  { %v2237_v8 = vpop.eup %2236 }
 0x286   :  { %2092 = vrot.lane.b32.xlu0 %v2237_v8, %s2314_s18  ;;  %2088 = vst.msk [vmem:[#allocation8] sm:$0xff] %vm2087_vm11, %v2237_v8 }
 0x289   :  { %v2239_v58 = vpop.eup %2238 }
 0x28a   :  { %2094 = vrot.lane.b32.xlu1 %v2239_v58, %s2314_s18  ;;  %2089 = vst.msk [vmem:[#allocation8 + $0x8] sm:$0xff] %vm2087_vm11, %v2239_v58 }
 0x2f8   :  { %v2093_v24 = vpop.permute.xlu0 %2092 }
 0x2f9   :  { %2099 = vst.msk [vmem:[#allocation8 + $0x10] sm:$0xff] %vm2087_vm11, %v2093_v24 }
 0x2fc   :  { %v2095_v28 = vpop.permute.xlu1 %2094 }
 0x2fd   :  { %2100 = vst.msk [vmem:[#allocation8 + $0x18] sm:$0xff] %vm2087_vm11, %v2095_v28 }
 0x2fe   :  { %2285 = shalt.err (!%p2282_p3)
}
 0x2ff   :  { %s2286_s23 = scalar_lea.hbm %s3642_s3, 512 }
 0x300   :  { %p2287_p4 = scmp.ne.s32.totalorder %s3642_s3, %s2286_s23  ;;  %p2290_p5 = scmp.lt.u32.totalorder %s2286_s23, %s3642_s3 }
 0x302   :  { %p2292_p6 = pnand %p2290_p5, %p2287_p4 }
 0x304   :  { %2295 = shalt.err (!%p2292_p6)
}
 0x305   :  { %2112 = dma.vmem_to_hbm [thread:$0]  %s2107_s20, 512, %s3642_s3, [#allocation5], %s2303_s1, %s2303_s1, %s2304_s25  }
 0x306   :  { %2300 = dma.done.wait [#allocation5], 512  }
 0x307   :  { %2301 = vsyncadd [#allocation5], 4294966784 }
 0x308   :  { %2116 = vsyncpa [#allocation4], 1 }
 0x309   :  { %2117 = vsyncpa [#allocation5], 1 }
 0x30a   :  { %2118 = vsyncpa [#allocation6], 1 }

</bundles_post_ra>
